<compile_context>
chip_gen: v6e
topology: v6e:2x2x1
jax: 0.10.0
libtpu: 0.0.40
codegen_flags: <defaults>
</compile_context>

<pallas_src>
import jax
import jax.numpy as jnp
from jax import lax
from jax.experimental import pallas as pl
from jax.experimental.pallas import tpu as pltpu

HI = lax.Precision.HIGHEST  # reference only


def _make_ca_kernel(mode, H, W, d):
    """Build the fused CA kernel body.

    Everything closed over is a Python scalar (never a jax array), so nothing is
    captured as a pallas constant.
    """
    HW = H * W
    f32 = jnp.float32
    NEG = -1e30                        # additive-mask sentinel; exp underflows to exactly 0
    d_f = float(d)
    h_f = float(H)
    w_f = float(W)
    k_f = float((2 * d + 1) ** 2)      # number of displacements K
    w_pow2 = (W & (W - 1)) == 0
    shift = max(W.bit_length() - 1, 0)

    def rowcol(idx_i32):
        # linear index -> (row, col) as f32, no integer div/mod on the VPU.
        if w_pow2:
            row = jnp.right_shift(idx_i32, shift).astype(f32)
            col = jnp.bitwise_and(idx_i32, W - 1).astype(f32)
            return row, col
        fidx = idx_i32.astype(f32)
        row = jnp.floor((fidx + 0.5) * (1.0 / w_f))
        return row, fidx - row * w_f

    def kernel(x_ref, xT_ref, xr_ref, xrT_ref,
               wt_ref, bt_ref, wp_ref, bp_ref,
               wg_ref, bg_ref, wo_ref, bo_ref, out_ref):
        x = x_ref[0]            # (C, HW)  lane-dense current frame (residual)
        xT = xT_ref[0]          # (HW, C)  current frame
        xr = xr_ref[0]          # (C, HW)  reference frame, lane-dense
        xrT = xrT_ref[0]        # (HW, C)  reference frame

        # ---- 1x1 convs as MXU matmuls (logit scale pre-folded into theta w/b) ----
        thetaT = jnp.dot(xT, wt_ref[...], preferred_element_type=f32) + bt_ref[...]   # (HW, Ci)
        phi = jnp.dot(wp_ref[...], xr, preferred_element_type=f32) + bp_ref[...]      # (Ci, HW)
        gT_aug = jnp.dot(xrT, wg_ref[...], preferred_element_type=f32) + bg_ref[...]  # (HW, Ci+1), col0==1

        # ---- MxCorrelation(kernel_size=1) scores: plain (HW,Ci)x(Ci,HW) matmul ----
        logits = jnp.dot(thetaT, phi, preferred_element_type=f32)                     # (HW, HW)

        # ---- displacement-window membership, generated in-kernel (no O(HW^2) stream) ----
        p_idx = lax.broadcasted_iota(jnp.int32, (HW, 1), 0)
        q_idx = lax.broadcasted_iota(jnp.int32, (1, HW), 1)
        p_row, p_col = rowcol(p_idx)            # (HW, 1)
        q_row, q_col = rowcol(q_idx)            # (1, HW)
        inside = ((jnp.abs(p_row - q_row) <= d_f) &
                  (jnp.abs(p_col - q_col) <= d_f))                                    # (HW, HW)

        if mode == "embedded_gaussian":
            # zero-padded out-of-image displacement count per query (MxCorrelation semantics)
            in_r = jnp.minimum(p_row, d_f) + jnp.minimum(h_f - 1.0 - p_row, d_f) + 1.0
            in_c = jnp.minimum(p_col, d_f) + jnp.minimum(w_f - 1.0 - p_col, d_f) + 1.0
            noob = k_f - in_r * in_c                                                  # (HW, 1)

            masked = jnp.where(inside, logits, NEG)
            row_max = jnp.max(masked, axis=-1, keepdims=True)
            m = jnp.maximum(row_max, jnp.where(noob > 0.0, 0.0, NEG))
            e = jnp.exp(masked - m)       # out-of-window -> exp(-1e30 - m) == 0 exactly

            # ---- MxAssemble + softmax row-sum in ONE matmul (col 0 of gT_aug is ones) ----
            y_aug = jnp.dot(e, gT_aug, preferred_element_type=f32)                    # (HW, Ci+1)
            denom = y_aug[:, 0:1] + noob * jnp.exp(-m)
            y_aug = y_aug * pl.reciprocal(denom, approx=True)   # normalize after the matmul
        else:  # dot_product: weights = corr * 256 / W (scale folded into theta), no softmax
            pw = jnp.where(inside, logits, 0.0)
            y_aug = jnp.dot(pw, gT_aug, preferred_element_type=f32)                   # (HW, Ci+1)

        # ---- conv_out back to lane-dense (C, HW); wo's zero col drops the sum column ----
        conv = lax.dot_general(wo_ref[...], y_aug, (((1,), (1,)), ((), ())),
                               preferred_element_type=f32)                            # (C, HW)
        out_ref[0] = x + conv + bo_ref[...]

    return kernel


def ca_pallas(x, x_refframe, params, *, corr_disp, use_scale=True,
              mode="embedded_gaussian"):
    assert mode in ("embedded_gaussian", "dot_product")
    N, C, H, W = x.shape
    HW = H * W
    d = corr_disp
    wg, bg, wt, bt, wp, bp, wo, bo = params
    Ci = wg.shape[0]
    f32 = jnp.float32

    if mode == "embedded_gaussian":
        scale = (256.0 / float(W) ** 0.5) if use_scale else 1.0
    else:
        scale = 256.0 / float(W)
    logit_scale = scale / float(Ci)     # fold MxCorrelation's 1/Ci channel-mean too

    # lane-dense + transposed layouts (cheap one-time XLA reshapes/transposes)
    x_lane = x.reshape(N, C, HW).astype(f32)
    xT = jnp.transpose(x_lane, (0, 2, 1))
    xr_lane = x_refframe.reshape(N, C, HW).astype(f32)
    xrT = jnp.transpose(xr_lane, (0, 2, 1))

    # ---- host-side weight prep ----
    wt_s = (wt.T * logit_scale).astype(f32)                  # (C, Ci)  scale folded in
    bt_s = (bt * logit_scale).reshape(1, Ci).astype(f32)     # (1, Ci)
    wp2 = wp.astype(f32)                                     # (Ci, C)  -> phi lane-dense
    bp_col = bp.reshape(Ci, 1).astype(f32)                   # (Ci, 1)
    # g augmented with a leading all-ones output column (row-sum on the MXU)
    wg_aug = jnp.concatenate([jnp.zeros((C, 1), f32), wg.T.astype(f32)], axis=1)    # (C, Ci+1)
    bg_aug = jnp.concatenate([jnp.ones((1, 1), f32),
                              bg.reshape(1, Ci).astype(f32)], axis=1)               # (1, Ci+1)
    # conv_out augmented with a matching zero column (drops the row-sum column)
    wo_aug = jnp.concatenate([jnp.zeros((C, 1), f32), wo.astype(f32)], axis=1)      # (C, Ci+1)
    bo_col = bo.reshape(C, 1).astype(f32)                                           # (C, 1)

    kernel = _make_ca_kernel(mode, H, W, d)

    def ex_spec(shape):      # one example per grid step
        return pl.BlockSpec((1,) + shape, lambda n: (n,) + (0,) * len(shape))

    def full_spec(shape):    # small constant array, resident for the whole grid
        nz = (0,) * len(shape)
        return pl.BlockSpec(shape, lambda n, _nz=nz: _nz)

    out = pl.pallas_call(
        kernel,
        out_shape=jax.ShapeDtypeStruct((N, C, HW), f32),
        grid=(N,),
        in_specs=[
            ex_spec((C, HW)),            # x   (residual, lane-dense)
            ex_spec((HW, C)),            # x^T (theta)
            ex_spec((C, HW)),            # x_ref lane-dense (phi)
            ex_spec((HW, C)),            # x_ref^T (g)
            full_spec((C, Ci)), full_spec((1, Ci)),          # theta w/b (scale folded)
            full_spec((Ci, C)), full_spec((Ci, 1)),          # phi w/b
            full_spec((C, Ci + 1)), full_spec((1, Ci + 1)),  # g w/b (ones-augmented)
            full_spec((C, Ci + 1)), full_spec((C, 1)),       # conv_out w/b (zero-augmented)
        ],
        out_specs=ex_spec((C, HW)),
        compiler_params=pltpu.CompilerParams(dimension_semantics=("parallel",)),
    )(x_lane, xT, xr_lane, xrT, wt_s, bt_s, wp2, bp_col, wg_aug, bg_aug, wo_aug, bo_col)
    return out.reshape(N, C, H, W)


def ca_reference(x, x_refframe, params, *, corr_disp, use_scale=True,
                 mode="embedded_gaussian"):
    """Pure-JAX reference of the same forward (for validation)."""
    wg, bg, wt, bt, wp, bp, wo, bo = params
    N, C, H, W = x.shape
    d = corr_disp

    def conv1x1(inp, w, b):
        return jnp.einsum("nchw,oc->nohw", inp, w, precision=HI) + b[None, :, None, None]

    theta = conv1x1(x, wt, bt)
    phi = conv1x1(x_refframe, wp, bp)
    g = conv1x1(x_refframe, wg, bg)
    Ci = theta.shape[1]
    phi_p = jnp.pad(phi, ((0, 0), (0, 0), (d, d), (d, d)))
    g_p = jnp.pad(g, ((0, 0), (0, 0), (d, d), (d, d)))
    disps = [(di, dj) for di in range(-d, d + 1) for dj in range(-d, d + 1)]
    corr = jnp.stack(
        [jnp.mean(theta * phi_p[:, :, d + di:d + di + H, d + dj:d + dj + W], axis=1)
         for (di, dj) in disps], axis=1)                       # (N, K, H, W)
    if mode == "embedded_gaussian":
        if use_scale:
            corr = corr * 256.0 / float(W) ** 0.5
        pw = jax.nn.softmax(corr, axis=1)
    else:
        pw = corr * 256.0 / float(W)
    y = jnp.zeros((N, Ci, H, W), jnp.float32)
    for k, (di, dj) in enumerate(disps):
        y = y + pw[:, k:k + 1] * g_p[:, :, d + di:d + di + H, d + dj:d + dj + W]
    out = jnp.einsum("nchw,oc->nohw", y, wo, precision=HI) + bo[None, :, None, None]
    return x + out


if __name__ == "__main__":
    N, C, H, W = 2, 8, 16, 16          # small NCHW input
    corr_disp = 2                       # -> (2*2+1)^2 = 25 displacements
    reduction = 2
    Ci = C // reduction

    key = jax.random.PRNGKey(0)
    k1, k2, k3, k4, k5, k6 = jax.random.split(key, 6)
    x = jax.random.normal(k1, (N, C, H, W), jnp.float32)
    x_refframe = jax.random.normal(k2, (N, C, H, W), jnp.float32)

    std = 0.01
    wg = std * jax.random.normal(k3, (Ci, C), jnp.float32)   # g.conv     weight (Ci, C, 1, 1)
    wt = std * jax.random.normal(k4, (Ci, C), jnp.float32)   # theta.conv
    wp = std * jax.random.normal(k5, (Ci, C), jnp.float32)   # phi.conv
    # NOTE: CA.init_weights() zero-inits conv_out (output would equal x exactly);
    # use a small deterministic normal init instead so the kernel path is exercised.
    wo = std * jax.random.normal(k6, (C, Ci), jnp.float32)   # conv_out.conv weight (C, Ci, 1, 1)
    bg = jnp.full((Ci,), 0.01, jnp.float32)
    bt = jnp.full((Ci,), -0.01, jnp.float32)
    bp = jnp.full((Ci,), 0.02, jnp.float32)
    bo = jnp.full((C,), 0.005, jnp.float32)
    params = (wg, bg, wt, bt, wp, bp, wo, bo)

    out = ca_pallas(x, x_refframe, params, corr_disp=corr_disp)
    out = jax.block_until_ready(out)

    ref = ca_reference(x, x_refframe, params, corr_disp=corr_disp)
    err = float(jnp.max(jnp.abs(out - ref)))
    assert err < 1e-4, f"max abs error vs reference: {err}"
    print("KERNEL_OK")
</pallas_src>

<mosaic_0001>
module attributes {stable_mosaic.version = 11 : i64} {
  func.func @kernel(%arg0: i32, %arg1: memref<1x8x256xf32, #tpu.memory_space<vmem>>, %arg2: memref<1x256x8xf32, #tpu.memory_space<vmem>>, %arg3: memref<1x8x256xf32, #tpu.memory_space<vmem>>, %arg4: memref<1x256x8xf32, #tpu.memory_space<vmem>>, %arg5: memref<8x4xf32, #tpu.memory_space<vmem>>, %arg6: memref<1x4xf32, #tpu.memory_space<vmem>>, %arg7: memref<4x8xf32, #tpu.memory_space<vmem>>, %arg8: memref<4x1xf32, #tpu.memory_space<vmem>>, %arg9: memref<8x5xf32, #tpu.memory_space<vmem>>, %arg10: memref<1x5xf32, #tpu.memory_space<vmem>>, %arg11: memref<8x5xf32, #tpu.memory_space<vmem>>, %arg12: memref<8x1xf32, #tpu.memory_space<vmem>>, %arg13: memref<1x8x256xf32, #tpu.memory_space<vmem>>) attributes {dimension_semantics = [#tpu.dimension_semantics<parallel>], iteration_bounds = array<i64: 2>, scalar_prefetch = 0 : i64, scratch_operands = 0 : i64, tpu.core_type = #tpu.core_type<tc>, window_params = [{transform_indices = @transform_0, window_bounds = array<i64: 1, 8, 256>}, {transform_indices = @transform_1, window_bounds = array<i64: 1, 256, 8>}, {transform_indices = @transform_2, window_bounds = array<i64: 1, 8, 256>}, {transform_indices = @transform_3, window_bounds = array<i64: 1, 256, 8>}, {pipeline_mode = #tpu.pipeline_mode<synchronous>, transform_indices = @transform_4, window_bounds = array<i64: 8, 4>}, {pipeline_mode = #tpu.pipeline_mode<synchronous>, transform_indices = @transform_5, window_bounds = array<i64: 1, 4>}, {pipeline_mode = #tpu.pipeline_mode<synchronous>, transform_indices = @transform_6, window_bounds = array<i64: 4, 8>}, {pipeline_mode = #tpu.pipeline_mode<synchronous>, transform_indices = @transform_7, window_bounds = array<i64: 4, 1>}, {pipeline_mode = #tpu.pipeline_mode<synchronous>, transform_indices = @transform_8, window_bounds = array<i64: 8, 5>}, {pipeline_mode = #tpu.pipeline_mode<synchronous>, transform_indices = @transform_9, window_bounds = array<i64: 1, 5>}, {pipeline_mode = #tpu.pipeline_mode<synchronous>, transform_indices = @transform_10, window_bounds = array<i64: 8, 5>}, {pipeline_mode = #tpu.pipeline_mode<synchronous>, transform_indices = @transform_11, window_bounds = array<i64: 8, 1>}, {transform_indices = @transform_12, window_bounds = array<i64: 1, 8, 256>}]} {
    %c0 = arith.constant 0 : index
    %c0_0 = arith.constant 0 : index
    %c0_1 = arith.constant 0 : index
    %0 = vector.load %arg1[%c0, %c0_0, %c0_1] : memref<1x8x256xf32, #tpu.memory_space<vmem>>, vector<1x8x256xf32>
    %1 = vector.shape_cast %0 : vector<1x8x256xf32> to vector<8x256xf32>
    %c0_2 = arith.constant 0 : index
    %c0_3 = arith.constant 0 : index
    %c0_4 = arith.constant 0 : index
    %2 = vector.load %arg2[%c0_2, %c0_3, %c0_4] : memref<1x256x8xf32, #tpu.memory_space<vmem>>, vector<1x256x8xf32>
    %3 = vector.shape_cast %2 : vector<1x256x8xf32> to vector<256x8xf32>
    %c0_5 = arith.constant 0 : index
    %c0_6 = arith.constant 0 : index
    %c0_7 = arith.constant 0 : index
    %4 = vector.load %arg3[%c0_5, %c0_6, %c0_7] : memref<1x8x256xf32, #tpu.memory_space<vmem>>, vector<1x8x256xf32>
    %5 = vector.shape_cast %4 : vector<1x8x256xf32> to vector<8x256xf32>
    %c0_8 = arith.constant 0 : index
    %c0_9 = arith.constant 0 : index
    %c0_10 = arith.constant 0 : index
    %6 = vector.load %arg4[%c0_8, %c0_9, %c0_10] : memref<1x256x8xf32, #tpu.memory_space<vmem>>, vector<1x256x8xf32>
    %7 = vector.shape_cast %6 : vector<1x256x8xf32> to vector<256x8xf32>
    %c0_11 = arith.constant 0 : index
    %c0_12 = arith.constant 0 : index
    %8 = vector.load %arg5[%c0_11, %c0_12] : memref<8x4xf32, #tpu.memory_space<vmem>>, vector<8x4xf32>
    %cst = arith.constant dense<0.000000e+00> : vector<256x4xf32>
    %9 = tpu.matmul %3, %8, %cst {dimension_numbers = #tpu.dot_dimension_numbers<[1], [0], [0], [1], [0, 0, 1, 1], [], []>} : vector<256x8xf32>, vector<8x4xf32>, vector<256x4xf32> -> vector<256x4xf32>
    %c0_13 = arith.constant 0 : index
    %c0_14 = arith.constant 0 : index
    %10 = vector.load %arg6[%c0_13, %c0_14] : memref<1x4xf32, #tpu.memory_space<vmem>>, vector<1x4xf32>
    %11 = vector.broadcast %10 : vector<1x4xf32> to vector<256x4xf32>
    %12 = arith.addf %9, %11 : vector<256x4xf32>
    %c0_15 = arith.constant 0 : index
    %c0_16 = arith.constant 0 : index
    %13 = vector.load %arg7[%c0_15, %c0_16] : memref<4x8xf32, #tpu.memory_space<vmem>>, vector<4x8xf32>
    %cst_17 = arith.constant dense<0.000000e+00> : vector<4x256xf32>
    %14 = tpu.matmul %13, %5, %cst_17 {dimension_numbers = #tpu.dot_dimension_numbers<[1], [0], [0], [1], [0, 0, 1, 1], [], []>} : vector<4x8xf32>, vector<8x256xf32>, vector<4x256xf32> -> vector<4x256xf32>
    %c0_18 = arith.constant 0 : index
    %c0_19 = arith.constant 0 : index
    %15 = vector.load %arg8[%c0_18, %c0_19] : memref<4x1xf32, #tpu.memory_space<vmem>>, vector<4x1xf32>
    %16 = vector.broadcast %15 : vector<4x1xf32> to vector<4x256xf32>
    %17 = arith.addf %14, %16 : vector<4x256xf32>
    %c0_20 = arith.constant 0 : index
    %c0_21 = arith.constant 0 : index
    %18 = vector.load %arg9[%c0_20, %c0_21] : memref<8x5xf32, #tpu.memory_space<vmem>>, vector<8x5xf32>
    %cst_22 = arith.constant dense<0.000000e+00> : vector<256x5xf32>
    %19 = tpu.matmul %7, %18, %cst_22 {dimension_numbers = #tpu.dot_dimension_numbers<[1], [0], [0], [1], [0, 0, 1, 1], [], []>} : vector<256x8xf32>, vector<8x5xf32>, vector<256x5xf32> -> vector<256x5xf32>
    %c0_23 = arith.constant 0 : index
    %c0_24 = arith.constant 0 : index
    %20 = vector.load %arg10[%c0_23, %c0_24] : memref<1x5xf32, #tpu.memory_space<vmem>>, vector<1x5xf32>
    %21 = vector.broadcast %20 : vector<1x5xf32> to vector<256x5xf32>
    %22 = arith.addf %19, %21 : vector<256x5xf32>
    %cst_25 = arith.constant dense<0.000000e+00> : vector<256x256xf32>
    %23 = tpu.matmul %12, %17, %cst_25 {dimension_numbers = #tpu.dot_dimension_numbers<[1], [0], [0], [1], [0, 0, 1, 1], [], []>} : vector<256x4xf32>, vector<4x256xf32>, vector<256x256xf32> -> vector<256x256xf32>
    %24 = tpu.iota {dimensions = array<i32: 0>} : vector<256x1xi32>
    %25 = tpu.iota {dimensions = array<i32: 1>} : vector<1x256xi32>
    %c4_i32 = arith.constant 4 : i32
    %26 = vector.broadcast %c4_i32 : i32 to vector<256x1xi32>
    %27 = arith.shrsi %24, %26 : vector<256x1xi32>
    %28 = arith.sitofp %27 : vector<256x1xi32> to vector<256x1xf32>
    %c15_i32 = arith.constant 15 : i32
    %29 = vector.broadcast %c15_i32 : i32 to vector<256x1xi32>
    %30 = arith.andi %24, %29 : vector<256x1xi32>
    %31 = arith.sitofp %30 : vector<256x1xi32> to vector<256x1xf32>
    %c4_i32_26 = arith.constant 4 : i32
    %32 = vector.broadcast %c4_i32_26 : i32 to vector<1x256xi32>
    %33 = arith.shrsi %25, %32 : vector<1x256xi32>
    %34 = arith.sitofp %33 : vector<1x256xi32> to vector<1x256xf32>
    %c15_i32_27 = arith.constant 15 : i32
    %35 = vector.broadcast %c15_i32_27 : i32 to vector<1x256xi32>
    %36 = arith.andi %25, %35 : vector<1x256xi32>
    %37 = arith.sitofp %36 : vector<1x256xi32> to vector<1x256xf32>
    %38 = vector.broadcast %28 : vector<256x1xf32> to vector<256x256xf32>
    %39 = vector.broadcast %34 : vector<1x256xf32> to vector<256x256xf32>
    %40 = arith.subf %38, %39 : vector<256x256xf32>
    %41 = math.absf %40 : vector<256x256xf32>
    %cst_28 = arith.constant 2.000000e+00 : f32
    %42 = vector.broadcast %cst_28 : f32 to vector<256x256xf32>
    %43 = arith.cmpf ole, %41, %42 : vector<256x256xf32>
    %44 = vector.broadcast %31 : vector<256x1xf32> to vector<256x256xf32>
    %45 = vector.broadcast %37 : vector<1x256xf32> to vector<256x256xf32>
    %46 = arith.subf %44, %45 : vector<256x256xf32>
    %47 = math.absf %46 : vector<256x256xf32>
    %cst_29 = arith.constant 2.000000e+00 : f32
    %48 = vector.broadcast %cst_29 : f32 to vector<256x256xf32>
    %49 = arith.cmpf ole, %47, %48 : vector<256x256xf32>
    %50 = arith.andi %43, %49 : vector<256x256xi1>
    %cst_30 = arith.constant 2.000000e+00 : f32
    %51 = vector.broadcast %cst_30 : f32 to vector<256x1xf32>
    %52 = arith.minimumf %28, %51 : vector<256x1xf32>
    %cst_31 = arith.constant 1.500000e+01 : f32
    %53 = vector.broadcast %cst_31 : f32 to vector<256x1xf32>
    %54 = arith.subf %53, %28 : vector<256x1xf32>
    %cst_32 = arith.constant 2.000000e+00 : f32
    %55 = vector.broadcast %cst_32 : f32 to vector<256x1xf32>
    %56 = arith.minimumf %54, %55 : vector<256x1xf32>
    %57 = arith.addf %52, %56 : vector<256x1xf32>
    %cst_33 = arith.constant 1.000000e+00 : f32
    %58 = vector.broadcast %cst_33 : f32 to vector<256x1xf32>
    %59 = arith.addf %57, %58 : vector<256x1xf32>
    %cst_34 = arith.constant 2.000000e+00 : f32
    %60 = vector.broadcast %cst_34 : f32 to vector<256x1xf32>
    %61 = arith.minimumf %31, %60 : vector<256x1xf32>
    %cst_35 = arith.constant 1.500000e+01 : f32
    %62 = vector.broadcast %cst_35 : f32 to vector<256x1xf32>
    %63 = arith.subf %62, %31 : vector<256x1xf32>
    %cst_36 = arith.constant 2.000000e+00 : f32
    %64 = vector.broadcast %cst_36 : f32 to vector<256x1xf32>
    %65 = arith.minimumf %63, %64 : vector<256x1xf32>
    %66 = arith.addf %61, %65 : vector<256x1xf32>
    %cst_37 = arith.constant 1.000000e+00 : f32
    %67 = vector.broadcast %cst_37 : f32 to vector<256x1xf32>
    %68 = arith.addf %66, %67 : vector<256x1xf32>
    %69 = arith.mulf %59, %68 : vector<256x1xf32>
    %cst_38 = arith.constant 2.500000e+01 : f32
    %70 = vector.broadcast %cst_38 : f32 to vector<256x1xf32>
    %71 = arith.subf %70, %69 : vector<256x1xf32>
    %cst_39 = arith.constant -1.000000e+30 : f32
    %72 = vector.broadcast %cst_39 : f32 to vector<256x256xf32>
    %73 = arith.select %50, %23, %72 : vector<256x256xi1>, vector<256x256xf32>
    %cst_40 = arith.constant dense<0xFF800000> : vector<256xf32>
    %74 = vector.multi_reduction <maximumf>, %73, %cst_40 [1] : vector<256x256xf32> to vector<256xf32>
    %75 = vector.shape_cast %74 : vector<256xf32> to vector<256x1xf32>
    %cst_41 = arith.constant 0.000000e+00 : f32
    %76 = vector.broadcast %cst_41 : f32 to vector<256x1xf32>
    %77 = arith.cmpf ogt, %71, %76 : vector<256x1xf32>
    %cst_42 = arith.constant 0.000000e+00 : f32
    %cst_43 = arith.constant -1.000000e+30 : f32
    %78 = vector.broadcast %cst_42 : f32 to vector<256x1xf32>
    %79 = vector.broadcast %cst_43 : f32 to vector<256x1xf32>
    %80 = arith.select %77, %78, %79 : vector<256x1xi1>, vector<256x1xf32>
    %81 = arith.maximumf %75, %80 : vector<256x1xf32>
    %82 = vector.broadcast %81 : vector<256x1xf32> to vector<256x256xf32>
    %83 = arith.subf %73, %82 : vector<256x256xf32>
    %84 = math.exp %83 : vector<256x256xf32>
    %cst_44 = arith.constant dense<0.000000e+00> : vector<256x5xf32>
    %85 = tpu.matmul %84, %22, %cst_44 {dimension_numbers = #tpu.dot_dimension_numbers<[1], [0], [0], [1], [0, 0, 1, 1], [], []>} : vector<256x256xf32>, vector<256x5xf32>, vector<256x5xf32> -> vector<256x5xf32>
    %86 = vector.extract_strided_slice %85 {offsets = [0, 0], sizes = [256, 1], strides = [1, 1]} : vector<256x5xf32> to vector<256x1xf32>
    %cst_45 = arith.constant 0.000000e+00 : f32
    %87 = vector.broadcast %cst_45 : f32 to vector<256x1xf32>
    %88 = arith.subf %87, %81 : vector<256x1xf32>
    %89 = math.exp %88 : vector<256x1xf32>
    %90 = arith.mulf %71, %89 : vector<256x1xf32>
    %91 = arith.addf %86, %90 : vector<256x1xf32>
    %92 = tpu.reciprocal %91 {approx = true} : vector<256x1xf32> -> vector<256x1xf32>
    %93 = vector.broadcast %92 : vector<256x1xf32> to vector<256x5xf32>
    %94 = arith.mulf %85, %93 : vector<256x5xf32>
    %c0_46 = arith.constant 0 : index
    %c0_47 = arith.constant 0 : index
    %95 = vector.load %arg11[%c0_46, %c0_47] : memref<8x5xf32, #tpu.memory_space<vmem>>, vector<8x5xf32>
    %cst_48 = arith.constant dense<0.000000e+00> : vector<8x256xf32>
    %96 = tpu.matmul %95, %94, %cst_48 {dimension_numbers = #tpu.dot_dimension_numbers<[1], [1], [0], [0], [0, 0, 1, 0], [], []>} : vector<8x5xf32>, vector<256x5xf32>, vector<8x256xf32> -> vector<8x256xf32>
    %97 = arith.addf %1, %96 : vector<8x256xf32>
    %c0_49 = arith.constant 0 : index
    %c0_50 = arith.constant 0 : index
    %98 = vector.load %arg12[%c0_49, %c0_50] : memref<8x1xf32, #tpu.memory_space<vmem>>, vector<8x1xf32>
    %99 = vector.broadcast %98 : vector<8x1xf32> to vector<8x256xf32>
    %100 = arith.addf %97, %99 : vector<8x256xf32>
    %c0_51 = arith.constant 0 : index
    %c0_52 = arith.constant 0 : index
    %c0_53 = arith.constant 0 : index
    %101 = vector.load %arg13[%c0_51, %c0_52, %c0_53] : memref<1x8x256xf32, #tpu.memory_space<vmem>>, vector<1x8x256xf32>
    %102 = vector.shape_cast %101 : vector<1x8x256xf32> to vector<8x256xf32>
    %103 = vector.shape_cast %100 : vector<8x256xf32> to vector<1x8x256xf32>
    tpu.vector_store %arg13[%c0_51, %c0_52, %c0_53], %103 {strides = array<i32>} : memref<1x8x256xf32, #tpu.memory_space<vmem>>, vector<1x8x256xf32>,
    return
  }
  func.func @transform_0(%arg0: i32) -> (i32, i32, i32) {
    %c0_i32 = arith.constant 0 : i32
    %c0_i32_0 = arith.constant 0 : i32
    %c0_i32_1 = arith.constant 0 : i32
    return %arg0, %c0_i32, %c0_i32_0 : i32, i32, i32
  }
  func.func @transform_1(%arg0: i32) -> (i32, i32, i32) {
    %c0_i32 = arith.constant 0 : i32
    %c0_i32_0 = arith.constant 0 : i32
    %c0_i32_1 = arith.constant 0 : i32
    return %arg0, %c0_i32, %c0_i32_0 : i32, i32, i32
  }
  func.func @transform_2(%arg0: i32) -> (i32, i32, i32) {
    %c0_i32 = arith.constant 0 : i32
    %c0_i32_0 = arith.constant 0 : i32
    %c0_i32_1 = arith.constant 0 : i32
    return %arg0, %c0_i32, %c0_i32_0 : i32, i32, i32
  }
  func.func @transform_3(%arg0: i32) -> (i32, i32, i32) {
    %c0_i32 = arith.constant 0 : i32
    %c0_i32_0 = arith.constant 0 : i32
    %c0_i32_1 = arith.constant 0 : i32
    return %arg0, %c0_i32, %c0_i32_0 : i32, i32, i32
  }
  func.func @transform_4(%arg0: i32) -> (i32, i32) {
    %c0_i32 = arith.constant 0 : i32
    %c0_i32_0 = arith.constant 0 : i32
    %c0_i32_1 = arith.constant 0 : i32
    return %c0_i32, %c0_i32_0 : i32, i32
  }
  func.func @transform_5(%arg0: i32) -> (i32, i32) {
    %c0_i32 = arith.constant 0 : i32
    %c0_i32_0 = arith.constant 0 : i32
    %c0_i32_1 = arith.constant 0 : i32
    return %c0_i32, %c0_i32_0 : i32, i32
  }
  func.func @transform_6(%arg0: i32) -> (i32, i32) {
    %c0_i32 = arith.constant 0 : i32
    %c0_i32_0 = arith.constant 0 : i32
    %c0_i32_1 = arith.constant 0 : i32
    return %c0_i32, %c0_i32_0 : i32, i32
  }
  func.func @transform_7(%arg0: i32) -> (i32, i32) {
    %c0_i32 = arith.constant 0 : i32
    %c0_i32_0 = arith.constant 0 : i32
    %c0_i32_1 = arith.constant 0 : i32
    return %c0_i32, %c0_i32_0 : i32, i32
  }
  func.func @transform_8(%arg0: i32) -> (i32, i32) {
    %c0_i32 = arith.constant 0 : i32
    %c0_i32_0 = arith.constant 0 : i32
    %c0_i32_1 = arith.constant 0 : i32
    return %c0_i32, %c0_i32_0 : i32, i32
  }
  func.func @transform_9(%arg0: i32) -> (i32, i32) {
    %c0_i32 = arith.constant 0 : i32
    %c0_i32_0 = arith.constant 0 : i32
    %c0_i32_1 = arith.constant 0 : i32
    return %c0_i32, %c0_i32_0 : i32, i32
  }
  func.func @transform_10(%arg0: i32) -> (i32, i32) {
    %c0_i32 = arith.constant 0 : i32
    %c0_i32_0 = arith.constant 0 : i32
    %c0_i32_1 = arith.constant 0 : i32
    return %c0_i32, %c0_i32_0 : i32, i32
  }
  func.func @transform_11(%arg0: i32) -> (i32, i32) {
    %c0_i32 = arith.constant 0 : i32
    %c0_i32_0 = arith.constant 0 : i32
    %c0_i32_1 = arith.constant 0 : i32
    return %c0_i32, %c0_i32_0 : i32, i32
  }
  func.func @transform_12(%arg0: i32) -> (i32, i32, i32) {
    %c0_i32 = arith.constant 0 : i32
    %c0_i32_0 = arith.constant 0 : i32
    %c0_i32_1 = arith.constant 0 : i32
    return %arg0, %c0_i32, %c0_i32_0 : i32, i32, i32
  }
}

</mosaic_0001>

<bundles_post_ra>
// kernel: tpu_custom_call.1
= control target key start
LH: loop header
LB: loop body
LE: loop exit
PB: predicated region body
PF: predicated region fallthrough
CT: control target
= control target key end

     0   :  { %s7889_s0 = inlined_call_operand.vmem [shape: f32[2,8,256], index: 0, kind: input, shape index: {}]   ;;  %s7890_s1 = inlined_call_operand.vmem [shape: f32[2,256,8], index: 1, kind: input, shape index: {}]   ;;  %s7891_s2 = inlined_call_operand.vmem [shape: f32[2,8,256], index: 2, kind: input, shape index: {}]   ;;  %s7892_s3 = inlined_call_operand.vmem [shape: f32[2,256,8], index: 3, kind: input, shape index: {}]   ;;  %s7893_s4 = inlined_call_operand.vmem [shape: f32[8,4], index: 4, kind: input, shape index: {}]   ;;  %s7894_s5 = inlined_call_operand.vmem [shape: f32[1,4], index: 5, kind: input, shape index: {}]   ;;  %s7895_s6 = inlined_call_operand.vmem [shape: f32[4,8], index: 6, kind: input, shape index: {}]   ;;  %s7896_s7 = inlined_call_operand.vmem [shape: f32[4,1], index: 7, kind: input, shape index: {}]   ;;  %s7897_s8 = inlined_call_operand.vmem [shape: f32[8,5], index: 8, kind: input, shape index: {}]   ;;  %s7898_s9 = inlined_call_operand.vmem [shape: f32[1,5], index: 9, kind: input, shape index: {}]   ;;  %s7899_s10 = inlined_call_operand.vmem [shape: f32[8,5], index: 10, kind: input, shape index: {}]   ;;  %s7900_s11 = inlined_call_operand.vmem [shape: f32[8,1], index: 11, kind: input, shape index: {}]   ;;  %s7901_s12 = inlined_call_operand.hbm [shape: f32[2,8,256], index: 12, kind: output, shape index: {}]  }
   0x1   :  { %8131 = sst [smem:[#allocation105_spill]] %s7889_s0 }
   0x2   :  { %8132 = sst [smem:[#allocation106_spill]] %s7893_s4 }
   0x3   :  { %8133 = sst [smem:[#allocation107_spill]] %s7896_s7 }
   0x4   :  { %17 = vsyncpa [#allocation3], 0 }
   0x5   :  { %19 = vsyncpa [#allocation3 + $0x1], 0  ;;  %s4784_s21 = smov 0   ;;  %s4786_s22 = smov 0  }
   0x6   :  { %s4788_s23 = smov 0   ;;  %s4790_s24 = smov 0  }
   0x7 LB: > { %s4805_s25 = sadd.s32 4294967295, %s4713_s24   ;;  %s3996_s26 = sadd.s32 4294967294, %s4713_s24   ;;  %s4713_s24 = sphi %s4790_s24, %s8639_s24   ;;  %s4709_s23 = sphi %s4788_s23, %s8638_s23   ;;  %s4705_s22 = sphi %s4786_s22, %s8637_s22   ;;  %s4701_s21 = sphi %s4784_s21, %s8636_s21  }
   0x8   : > { %s4809_s27 = sadd.s32 1, %s4713_s24   ;;  %s304_s28 = sadd.s32 1, %s4709_s23 }
   0x9   : > { %s301_s29 = ssub.s32 %s4713_s24, %s4809_s27  ;;  %p314_p0 = scmp.ne.s32.totalorder %s4709_s23, %s4705_s22 }
   0xa   : > { %p302_p1 = scmp.eq.s32.totalorder %s301_s29, 0  ;;  %p315_p2 = scmp.eq.s32.totalorder %s4805_s25, 1 }
   0xb   : > { %p320_p3 = scmp.ne.s32.totalorder %s4705_s22, %s4701_s21  ;;  %p321_p4 = scmp.eq.s32.totalorder %s3996_s26, 1 }
   0xc   : > { %s4820_s30 = scalar_select %p302_p1, %s4709_s23, %s304_s28  }
   0xd   : > { %p4822_p5 = por %p315_p2, %p314_p0  ;;  %p4826_p6 = por %p321_p4, %p320_p3 }
   0xe   : > { %p3999_p7 = scmp.ge.s32.totalorder %s4713_s24, 1  ;;  %p395_p8 = scmp.lt.s32.totalorder %s4713_s24, 3 }
  0x10   : > { %p396_p9 = pnand %p3999_p7, %p395_p8 }
  0x12   : > { %399 = sbr.rel (%p396_p9) target bundleno = 1345 (0x541), region = 68 }
  0x17   : > { %s8136_s4 = sld [smem:[#allocation106_spill]]  ;;  %p452_p10 = scmp.lt.s32.totalorder %s4805_s25, 1  ;;  %v4715_v1 = vmov 0.0   ;;  %v4716_v3 = vmov 0   ;;  %vm548_vm0 = vcmask 64512   ;;  %v951_v39 = vld [vmem:[%s7897_s8] sm:$0xff] }
  0x18   : > { %944 = vmatprep.mubr.f32.mxu1 %v4715_v1  ;;  %s8137_s7 = sld [smem:[#allocation107_spill]]  ;;  %4395 = vset.pattern.permute.xlu0 %v4716_v3  ;;  %v870_v4 = vld [vmem:[%s7895_s6] sm:$0xf]  ;;  %vm1377_vm1 = vcmask 1043456   ;;  %vm1280_vm2 = vcmask 31744   ;;  %s449_s16 = sand.u32 1, %s4705_s22  }
  0x19   : > { %s4841_s19 = scalar_select %p452_p10, %s4805_s25, 1  ;;  %4396 = vset.pattern.permute.xlu1 %v4716_v3 }
  0x1a   : > { %s8635_s0 = sld [smem:[#allocation105_spill]] }
  0x1b   : > { %s4148_s20 = sshll.u32 %s4841_s19, 4  ;;  %s4149_s26 = sshll.u32 %s4841_s19, 8 }
  0x1c   : > { %s4850_s15 = scalar_lea.vmem %s7890_s1, %s4149_s26  ;;  %s466_s18 = scalar_lea.vmem %s7891_s2, %s4148_s20 }
  0x1d   : > { %v540_v0 = vld [vmem:[%s8136_s4] sm:$0xff]  ;;  %v507_v5 = vld [vmem:[%s466_s18 + $0x8] sm:$0xff]  ;;  %v476_v9 = vld [vmem:[%s4850_s15 + $0x10] sm:$0xff]  ;;  %s4931_s28 = scalar_lea.vmem %s7892_s3, %s4149_s26  ;;  %s4152_s4 = sshll.u32 %s4805_s25, 8 }
  0x1e   : > { %4253 = vmatprep.subr.mxu0 %v540_v0  ;;  %v871_v2 = vld [vmem:[%s8137_s7] sm:$0xf]  ;;  %910 = vmatprep.subr.mxu1 %v507_v5  ;;  %v475_v8 = vld [vmem:[%s4850_s15 + $0x8] sm:$0xff]  ;;  %v477_v10 = vld [vmem:[%s4850_s15 + $0x18] sm:$0xff]  ;;  %s3899_s26 = scalar_lea.hbm %s7901_s12, %s4152_s4 }
  0x1f   : > { %4254 = vmatpush3.msra.mxu0 %v540_v0  ;;  %874 = vperm.xlu0 %4395, %v871_v2   ;;  %v474_v6 = vld [vmem:[%s4850_s15] sm:$0xff]  ;;  %v479_v12 = vld [vmem:[%s4850_s15 + $0x28] sm:$0xff]  ;;  %v480_v13 = vld [vmem:[%s4850_s15 + $0x30] sm:$0xff] }
  0x20   : > { %v506_v7 = vld [vmem:[%s466_s18] sm:$0xff]  ;;  %4255 = vmatprep.mubr.msk.f32.mxu0 %vm548_vm0, %v474_v6  ;;  %v481_v14 = vld [vmem:[%s4850_s15 + $0x38] sm:$0xff]  ;;  %v483_v16 = vld [vmem:[%s4850_s15 + $0x48] sm:$0xff]  ;;  %s456_s17 = scalar_lea.vmem %s8635_s0, %s4148_s20  ;;  %s4000_s18 = sshll.u32 %s449_s16, 4 }
  0x21   : > { %911 = vmatpush1.msra.mxu1 %v506_v7  ;;  %4256 = vmatmul.mubr.msk.f32.vlgmr.msra.gmra.mxu0 %vm548_vm0, %v475_v8  ;;  %v478_v11 = vld [vmem:[%s4850_s15 + $0x20] sm:$0xff]  ;;  %v484_v17 = vld [vmem:[%s4850_s15 + $0x50] sm:$0xff]  ;;  %v485_v18 = vld [vmem:[%s4850_s15 + $0x58] sm:$0xff]  ;;  %s451_s7 = scalar_lea.vmem [#allocation2], %s4000_s18  ;;  %s3887_s20 = scalar_lea.sflag [#allocation3], %s449_s16 }
  0x22   : > { %4042 = vmatmul.mubr.msk.f32.vlgmr.msra.gmra.mxu1 %vm548_vm0, %v870_v4  ;;  %4258 = vmatprep.mubr.msk.f32.mxu0 %vm548_vm0, %v476_v9  ;;  %v482_v15 = vld [vmem:[%s4850_s15 + $0x40] sm:$0xff]  ;;  %v487_v20 = vld [vmem:[%s4850_s15 + $0x68] sm:$0xff]  ;;  %v488_v21 = vld [vmem:[%s4850_s15 + $0x70] sm:$0xff] }
  0x23   : > { %v486_v19 = vld [vmem:[%s4850_s15 + $0x60] sm:$0xff]  ;;  %v489_v22 = vld [vmem:[%s4850_s15 + $0x78] sm:$0xff]  ;;  %v491_v24 = vld [vmem:[%s4850_s15 + $0x88] sm:$0xff]  ;;  %4303 = vmatprep.subr.mxu1 %v951_v39 }
  0x24   : > { %v490_v23 = vld [vmem:[%s4850_s15 + $0x80] sm:$0xff]  ;;  %v492_v25 = vld [vmem:[%s4850_s15 + $0x90] sm:$0xff]  ;;  %v493_v26 = vld [vmem:[%s4850_s15 + $0x98] sm:$0xff]  ;;  %4304 = vmatpush3.msra.mxu1 %v951_v39 }
  0x25   : > { %4259 = vmatmul.mubr.msk.f32.gmra.mxu0 %vm548_vm0, %v477_v10  ;;  %v494_v27 = vld [vmem:[%s4850_s15 + $0xa0] sm:$0xff]  ;;  %v495_v28 = vld [vmem:[%s4850_s15 + $0xa8] sm:$0xff]  ;;  %v496_v29 = vld [vmem:[%s4850_s15 + $0xb0] sm:$0xff]  ;;  %3093 = vmatprep.subr.mxu1 %v4715_v1 }
  0x26   : > { %4261 = vmatprep.mubr.msk.f32.mxu0 %vm548_vm0, %v478_v11  ;;  %v497_v30 = vld [vmem:[%s4850_s15 + $0xb8] sm:$0xff]  ;;  %v498_v31 = vld [vmem:[%s4850_s15 + $0xc0] sm:$0xff]  ;;  %v499_v32 = vld [vmem:[%s4850_s15 + $0xc8] sm:$0xff] }
  0x27   : > { %v500_v33 = vld [vmem:[%s4850_s15 + $0xd0] sm:$0xff]  ;;  %v501_v34 = vld [vmem:[%s4850_s15 + $0xd8] sm:$0xff]  ;;  %v502_v35 = vld [vmem:[%s4850_s15 + $0xe0] sm:$0xff] }
  0x28   : > { %v503_v36 = vld [vmem:[%s4850_s15 + $0xe8] sm:$0xff]  ;;  %v504_v37 = vld [vmem:[%s4850_s15 + $0xf0] sm:$0xff]  ;;  %v505_v38 = vld [vmem:[%s4850_s15 + $0xf8] sm:$0xff] }
  0x29   : > { %4262 = vmatmul.mubr.msk.f32.gmra.mxu0 %vm548_vm0, %v479_v12  ;;  %v508_v40 = vld [vmem:[%s4931_s28] sm:$0xff]  ;;  %v509_v41 = vld [vmem:[%s4931_s28 + $0x8] sm:$0xff]  ;;  %v510_v42 = vld [vmem:[%s4931_s28 + $0x10] sm:$0xff] }
  0x2a   : > { %4264 = vmatprep.mubr.msk.f32.mxu0 %vm548_vm0, %v480_v13  ;;  %4305 = vmatprep.mubr.msk.f32.mxu1 %vm548_vm0, %v508_v40  ;;  %v511_v43 = vld [vmem:[%s4931_s28 + $0x18] sm:$0xff]  ;;  %v512_v44 = vld [vmem:[%s4931_s28 + $0x20] sm:$0xff]  ;;  %v513_v45 = vld [vmem:[%s4931_s28 + $0x28] sm:$0xff] }
  0x2b   : > { %4306 = vmatmul.mubr.msk.f32.vlgmr.msra.gmra.mxu1 %vm548_vm0, %v509_v41  ;;  %v514_v46 = vld [vmem:[%s4931_s28 + $0x30] sm:$0xff]  ;;  %v515_v47 = vld [vmem:[%s4931_s28 + $0x38] sm:$0xff]  ;;  %v516_v48 = vld [vmem:[%s4931_s28 + $0x40] sm:$0xff] }
  0x2c   : > { %4308 = vmatprep.mubr.msk.f32.mxu1 %vm548_vm0, %v510_v42  ;;  %v517_v49 = vld [vmem:[%s4931_s28 + $0x48] sm:$0xff]  ;;  %v518_v50 = vld [vmem:[%s4931_s28 + $0x50] sm:$0xff]  ;;  %v519_v51 = vld [vmem:[%s4931_s28 + $0x58] sm:$0xff] }
  0x2d   : > { %4265 = vmatmul.mubr.msk.f32.gmra.mxu0 %vm548_vm0, %v481_v14  ;;  %v520_v52 = vld [vmem:[%s4931_s28 + $0x60] sm:$0xff]  ;;  %v521_v53 = vld [vmem:[%s4931_s28 + $0x68] sm:$0xff]  ;;  %v522_v54 = vld [vmem:[%s4931_s28 + $0x70] sm:$0xff] }
  0x2e   : > { %4267 = vmatprep.mubr.msk.f32.mxu0 %vm548_vm0, %v482_v15  ;;  %v523_v55 = vld [vmem:[%s4931_s28 + $0x78] sm:$0xff]  ;;  %v524_v56 = vld [vmem:[%s4931_s28 + $0x80] sm:$0xff]  ;;  %v525_v57 = vld [vmem:[%s4931_s28 + $0x88] sm:$0xff] }
  0x2f   : > { %4309 = vmatmul.mubr.msk.f32.gmra.mxu1 %vm548_vm0, %v511_v43  ;;  %v526_v58 = vld [vmem:[%s4931_s28 + $0x90] sm:$0xff]  ;;  %v527_v59 = vld [vmem:[%s4931_s28 + $0x98] sm:$0xff]  ;;  %v528_v60 = vld [vmem:[%s4931_s28 + $0xa0] sm:$0xff] }
  0x30   : > { %4311 = vmatprep.mubr.msk.f32.mxu1 %vm548_vm0, %v512_v44  ;;  %v529_v61 = vld [vmem:[%s4931_s28 + $0xa8] sm:$0xff]  ;;  %v530_v62 = vld [vmem:[%s4931_s28 + $0xb0] sm:$0xff]  ;;  %v531_v63 = vld [vmem:[%s4931_s28 + $0xb8] sm:$0xff] }
  0x31   : > { %4268 = vmatmul.mubr.msk.f32.gmra.mxu0 %vm548_vm0, %v483_v16  ;;  %v532_v0 = vld [vmem:[%s4931_s28 + $0xc0] sm:$0xff]  ;;  %v533_v2 = vld [vmem:[%s4931_s28 + $0xc8] sm:$0xff]  ;;  %v534_v3 = vld [vmem:[%s4931_s28 + $0xd0] sm:$0xff] }
  0x32   : > { %4270 = vmatprep.mubr.msk.f32.mxu0 %vm548_vm0, %v484_v17  ;;  %v535_v4 = vld [vmem:[%s4931_s28 + $0xd8] sm:$0xff]  ;;  %v536_v5 = vld [vmem:[%s4931_s28 + $0xe0] sm:$0xff]  ;;  %v537_v6 = vld [vmem:[%s4931_s28 + $0xe8] sm:$0xff] }
  0x33   : > { %4312 = vmatmul.mubr.msk.f32.gmra.mxu1 %vm548_vm0, %v513_v45  ;;  %v538_v7 = vld [vmem:[%s4931_s28 + $0xf0] sm:$0xff]  ;;  %v539_v8 = vld [vmem:[%s4931_s28 + $0xf8] sm:$0xff]  ;;  %v5004_v12 = vld [vmem:[%s7894_s5] ss:$0 sm:$0xff]  ;;  %s3901_s28 = sshll.u32 %s451_s7, 4  ;;  %s3902_s28 = int_to_ptr.vmem [resolvable:$true] %s3901_s28 }
  0x34   : > { %4314 = vmatprep.mubr.msk.f32.mxu1 %vm548_vm0, %v514_v46  ;;  %s4653_s15 = scalar_lea.vmem %s3902_s28, 256 }
  0x35   : > { %4271 = vmatmul.mubr.msk.f32.gmra.mxu0 %vm548_vm0, %v485_v18  ;;  %p4654_p11 = scmp.ne.s32.totalorder %s3902_s28, %s4653_s15 }
  0x36   : > { %4273 = vmatprep.mubr.msk.f32.mxu0 %vm548_vm0, %v486_v19 }
  0x37   : > { %4315 = vmatmul.mubr.msk.f32.gmra.mxu1 %vm548_vm0, %v515_v47  ;;  %p4655_p12 = pnand %p4654_p11, %p4822_p5 }
  0x38   : > { %4317 = vmatprep.mubr.msk.f32.mxu1 %vm548_vm0, %v516_v48 }
  0x39   : > { %4274 = vmatmul.mubr.msk.f32.gmra.mxu0 %vm548_vm0, %v487_v20  ;;  %p4656_p13 = pneg %p4655_p12 }
  0x3a   : > { %4276 = vmatprep.mubr.msk.f32.mxu0 %vm548_vm0, %v488_v21 }
  0x3b   : > { %4318 = vmatmul.mubr.msk.f32.gmra.mxu1 %vm548_vm0, %v517_v49 }
  0x3c   : > { %4320 = vmatprep.mubr.msk.f32.mxu1 %vm548_vm0, %v518_v50 }
  0x3d   : > { %4277 = vmatmul.mubr.msk.f32.gmra.mxu0 %vm548_vm0, %v489_v22 }
  0x3e   : > { %4279 = vmatprep.mubr.msk.f32.mxu0 %vm548_vm0, %v490_v23 }
  0x3f   : > { %4321 = vmatmul.mubr.msk.f32.gmra.mxu1 %vm548_vm0, %v519_v51 }
  0x40   : > { %4323 = vmatprep.mubr.msk.f32.mxu1 %vm548_vm0, %v520_v52 }
  0x41   : > { %4280 = vmatmul.mubr.msk.f32.gmra.mxu0 %vm548_vm0, %v491_v24 }
  0x42   : > { %4282 = vmatprep.mubr.msk.f32.mxu0 %vm548_vm0, %v492_v25 }
  0x43   : > { %4324 = vmatmul.mubr.msk.f32.gmra.mxu1 %vm548_vm0, %v521_v53 }
  0x44   : > { %4326 = vmatprep.mubr.msk.f32.mxu1 %vm548_vm0, %v522_v54 }
  0x45   : > { %4283 = vmatmul.mubr.msk.f32.gmra.mxu0 %vm548_vm0, %v493_v26 }
  0x46   : > { %4285 = vmatprep.mubr.msk.f32.mxu0 %vm548_vm0, %v494_v27 }
  0x47   : > { %4327 = vmatmul.mubr.msk.f32.gmra.mxu1 %vm548_vm0, %v523_v55 }
  0x48   : > { %4329 = vmatprep.mubr.msk.f32.mxu1 %vm548_vm0, %v524_v56 }
  0x49   : > { %4286 = vmatmul.mubr.msk.f32.gmra.mxu0 %vm548_vm0, %v495_v28 }
  0x4a   : > { %4288 = vmatprep.mubr.msk.f32.mxu0 %vm548_vm0, %v496_v29 }
  0x4b   : > { %4330 = vmatmul.mubr.msk.f32.gmra.mxu1 %vm548_vm0, %v525_v57 }
  0x4c   : > { %4332 = vmatprep.mubr.msk.f32.mxu1 %vm548_vm0, %v526_v58 }
  0x4d   : > { %4289 = vmatmul.mubr.msk.f32.gmra.mxu0 %vm548_vm0, %v497_v30 }
  0x4e   : > { %4291 = vmatprep.mubr.msk.f32.mxu0 %vm548_vm0, %v498_v31 }
  0x4f   : > { %4333 = vmatmul.mubr.msk.f32.gmra.mxu1 %vm548_vm0, %v527_v59 }
  0x50   : > { %4335 = vmatprep.mubr.msk.f32.mxu1 %vm548_vm0, %v528_v60 }
  0x51   : > { %4292 = vmatmul.mubr.msk.f32.gmra.mxu0 %vm548_vm0, %v499_v32 }
  0x52   : > { %4294 = vmatprep.mubr.msk.f32.mxu0 %vm548_vm0, %v500_v33 }
  0x53   : > { %4336 = vmatmul.mubr.msk.f32.gmra.mxu1 %vm548_vm0, %v529_v61 }
  0x54   : > { %4338 = vmatprep.mubr.msk.f32.mxu1 %vm548_vm0, %v530_v62 }
  0x55   : > { %4295 = vmatmul.mubr.msk.f32.gmra.mxu0 %vm548_vm0, %v501_v34 }
  0x56   : > { %4297 = vmatprep.mubr.msk.f32.mxu0 %vm548_vm0, %v502_v35 }
  0x57   : > { %4339 = vmatmul.mubr.msk.f32.gmra.mxu1 %vm548_vm0, %v531_v63 }
  0x58   : > { %4341 = vmatprep.mubr.msk.f32.mxu1 %vm548_vm0, %v532_v0 }
  0x59   : > { %4298 = vmatmul.mubr.msk.f32.gmra.mxu0 %vm548_vm0, %v503_v36 }
  0x5a   : > { %4300 = vmatprep.mubr.msk.f32.mxu0 %vm548_vm0, %v504_v37 }
  0x5b   : > { %4342 = vmatmul.mubr.msk.f32.gmra.mxu1 %vm548_vm0, %v533_v2 }
  0x5c   : > { %4344 = vmatprep.mubr.msk.f32.mxu1 %vm548_vm0, %v534_v3 }
  0x5d   : > { %4301 = vmatmul.mubr.msk.f32.gmra.mxu0 %vm548_vm0, %v505_v38 }
  0x5e   : > { %1448 = vmatprep.mubr.f32.mxu0 %v4715_v1 }
  0x5f   : > { %4345 = vmatmul.mubr.msk.f32.gmra.mxu1 %vm548_vm0, %v535_v4 }
  0x60   : > { %4347 = vmatprep.mubr.msk.f32.mxu1 %vm548_vm0, %v536_v5 }
  0x63   : > { %4348 = vmatmul.mubr.msk.f32.gmra.mxu1 %vm548_vm0, %v537_v6 }
  0x64   : > { %4350 = vmatprep.mubr.msk.f32.mxu1 %vm548_vm0, %v538_v7 }
  0x67   : > { %4351 = vmatmul.mubr.msk.f32.gmra.mxu1 %vm548_vm0, %v539_v8 }
  0x9a   : > { %v875_v11 = vpop.permute.xlu0 %874 }
  0xe1   : > { %v4257_v9 = vpop.f32.mrf.mxu0 }
  0xe2   : > { %v946_v10 = vpop.f32.mrf.mxu1  ;;  %v717_v19 = vadd.f32 %v4257_v9, %v5004_v12 }
  0xe3   : > { %v711_v13 = vpop.f32.mrf.mxu0  ;;  %v947_v16 = vadd.f32 %v946_v10, %v875_v11 }
  0xe4   : > { %v948_v14 = vpop.f32.mrf.mxu1  ;;  %v712_v17 = vadd.f32 %v5004_v12, %v711_v13 }
  0xe5   : > { %v949_v15 = vadd.f32 %v948_v14, %v875_v11  ;;  %v4260_v18 = vpop.f32.mrf.mxu0 }
  0xe6   : > { %v727_v23 = vadd.f32 %v4260_v18, %v5004_v12 }
  0xe7   : > { %4076 = vmatprep.subr.msk.mxu0 %vm1377_vm1, %v949_v15  ;;  %v721_v20 = vpop.f32.mrf.mxu0 }
  0xe8   : > { %4077 = vmatpush1.msk.msra.mxu0 %vm1377_vm1, %v947_v16  ;;  %v722_v21 = vadd.f32 %v5004_v12, %v721_v20 }
  0xe9   : > { %4078 = vmatmul.mubr.msk.f32.vlgmr.msra.gmra.mxu0 %vm1280_vm2, %v712_v17  ;;  %v4263_v22 = vpop.f32.mrf.mxu0 }
  0xea   : > { %1454 = vmatprep.mubr.f32.mxu0 %v4715_v1  ;;  %v737_v27 = vadd.f32 %v4263_v22, %v5004_v12  ;;  %v5104_v22 = vld [vmem:[%s7898_s9] ss:$0 sm:$0xff] }
  0xeb   : > { %v731_v24 = vpop.f32.mrf.mxu0  ;;  %v5066_v57 = vpop.f32.mrf.mxu1 }
  0xec   : > { %v732_v25 = vadd.f32 %v5004_v12, %v731_v24 }
  0xed   : > { %4079 = vmatmul.mubr.msk.f32.gmra.mxu0 %vm1280_vm2, %v717_v19  ;;  %v4266_v26 = vpop.f32.mrf.mxu0  ;;  %v5069_v60 = vpop.f32.mrf.mxu1 }
  0xee   : > { %1460 = vmatprep.mubr.f32.mxu0 %v4715_v1  ;;  %v747_v31 = vadd.f32 %v4266_v26, %v5004_v12 }
  0xef   : > { %v741_v28 = vpop.f32.mrf.mxu0  ;;  %v5073_v61 = vpop.f32.mrf.mxu1 }
  0xf0   : > { %v742_v29 = vadd.f32 %v5004_v12, %v741_v28 }
  0xf1   : > { %4080 = vmatmul.mubr.msk.f32.gmra.mxu0 %vm1280_vm2, %v722_v21  ;;  %v4269_v30 = vpop.f32.mrf.mxu0  ;;  %v5076_v0 = vpop.f32.mrf.mxu1 }
  0xf2   : > { %1466 = vmatprep.mubr.f32.mxu0 %v4715_v1  ;;  %v757_v35 = vadd.f32 %v4269_v30, %v5004_v12 }
  0xf3   : > { %v751_v32 = vpop.f32.mrf.mxu0  ;;  %v5080_v2 = vpop.f32.mrf.mxu1 }
  0xf4   : > { %v752_v33 = vadd.f32 %v5004_v12, %v751_v32 }
  0xf5   : > { %4081 = vmatmul.mubr.msk.f32.gmra.mxu0 %vm1280_vm2, %v727_v23  ;;  %v4272_v34 = vpop.f32.mrf.mxu0  ;;  %v5083_v5 = vpop.f32.mrf.mxu1 }
  0xf6   : > { %1472 = vmatprep.mubr.f32.mxu0 %v4715_v1  ;;  %v767_v39 = vadd.f32 %v4272_v34, %v5004_v12 }
  0xf7   : > { %v761_v36 = vpop.f32.mrf.mxu0  ;;  %v5087_v6 = vpop.f32.mrf.mxu1 }
  0xf8   : > { %v762_v37 = vadd.f32 %v5004_v12, %v761_v36 }
  0xf9   : > { %4082 = vmatmul.mubr.msk.f32.gmra.mxu0 %vm1280_vm2, %v732_v25  ;;  %v4275_v38 = vpop.f32.mrf.mxu0  ;;  %v5090_v9 = vpop.f32.mrf.mxu1 }
  0xfa   : > { %1478 = vmatprep.mubr.f32.mxu0 %v4715_v1  ;;  %v777_v43 = vadd.f32 %v4275_v38, %v5004_v12 }
  0xfb   : > { %v771_v40 = vpop.f32.mrf.mxu0  ;;  %v4319_v10 = vpop.f32.mrf.mxu1 }
  0xfc   : > { %v772_v41 = vadd.f32 %v5004_v12, %v771_v40 }
  0xfd   : > { %4083 = vmatmul.mubr.msk.f32.gmra.mxu0 %vm1280_vm2, %v737_v27  ;;  %v4278_v42 = vpop.f32.mrf.mxu0  ;;  %v1161_v14 = vpop.f32.mrf.mxu1 }
  0xfe   : > { %1484 = vmatprep.mubr.f32.mxu0 %v4715_v1  ;;  %v787_v47 = vadd.f32 %v4278_v42, %v5004_v12  ;;  %v1167_v42 = vadd.f32 %v4319_v10, %v5104_v22 }
  0xff   : > { %v781_v44 = vpop.f32.mrf.mxu0  ;;  %v4322_v15 = vpop.f32.mrf.mxu1 }
 0x100   : > { %v782_v45 = vadd.f32 %v5004_v12, %v781_v44  ;;  %v1177_v36 = vadd.f32 %v4322_v15, %v5104_v22 }
 0x101   : > { %4084 = vmatmul.mubr.msk.f32.gmra.mxu0 %vm1280_vm2, %v742_v29  ;;  %v4281_v46 = vpop.f32.mrf.mxu0  ;;  %v1171_v18 = vpop.f32.mrf.mxu1 }
 0x102   : > { %1490 = vmatprep.mubr.f32.mxu0 %v4715_v1  ;;  %v797_v51 = vadd.f32 %v4281_v46, %v5004_v12  ;;  %v1172_v40 = vadd.f32 %v5104_v22, %v1171_v18 }
 0x103   : > { %v791_v48 = vpop.f32.mrf.mxu0  ;;  %v4325_v19 = vpop.f32.mrf.mxu1 }
 0x104   : > { %v792_v49 = vadd.f32 %v5004_v12, %v791_v48  ;;  %v1187_v29 = vadd.f32 %v4325_v19, %v5104_v22 }
 0x105   : > { %4085 = vmatmul.mubr.msk.f32.gmra.mxu0 %vm1280_vm2, %v747_v31  ;;  %v4284_v50 = vpop.f32.mrf.mxu0  ;;  %v1181_v23 = vpop.f32.mrf.mxu1 }
 0x106   : > { %1496 = vmatprep.mubr.f32.mxu0 %v4715_v1  ;;  %v807_v55 = vadd.f32 %v4284_v50, %v5004_v12  ;;  %v1182_v34 = vadd.f32 %v5104_v22, %v1181_v23 }
 0x107   : > { %v801_v52 = vpop.f32.mrf.mxu0  ;;  %v4328_v24 = vpop.f32.mrf.mxu1 }
 0x108   : > { %v802_v53 = vadd.f32 %v5004_v12, %v801_v52  ;;  %v1197_v26 = vadd.f32 %v4328_v24, %v5104_v22 }
 0x109   : > { %4086 = vmatmul.mubr.msk.f32.gmra.mxu0 %vm1280_vm2, %v752_v33  ;;  %v4287_v54 = vpop.f32.mrf.mxu0  ;;  %v1191_v28 = vpop.f32.mrf.mxu1 }
 0x10a   : > { %1502 = vmatprep.mubr.f32.mxu0 %v4715_v1  ;;  %v817_v62 = vadd.f32 %v4287_v54, %v5004_v12  ;;  %3094 = vmatpush1.msra.mxu1 %v1197_v26  ;;  %v1192_v30 = vadd.f32 %v5104_v22, %v1191_v28  ;;  %v1142_v54 = vadd.f32 %v5104_v22, %v5083_v5 }
 0x10b   : > { %v811_v56 = vpop.f32.mrf.mxu0  ;;  %v5114_v31 = vpop.f32.mrf.mxu1  ;;  %3095 = vmatprep.subr.mxu1 %v4715_v1 }
 0x10c   : > { %v812_v58 = vadd.f32 %v5004_v12, %v811_v56  ;;  %3096 = vmatpush1.msra.mxu1 %v1192_v30  ;;  %v1137_v56 = vadd.f32 %v5073_v61, %v5104_v22  ;;  %v1122_v61 = vadd.f32 %v5104_v22, %v5069_v60 }
 0x10d   : > { %4087 = vmatmul.mubr.msk.f32.gmra.mxu0 %vm1280_vm2, %v757_v35  ;;  %v4290_v59 = vpop.f32.mrf.mxu0  ;;  %v5119_v35 = vpop.f32.mrf.mxu1  ;;  %3097 = vmatprep.subr.mxu1 %v4715_v1 }
 0x10e   : > { %1508 = vmatprep.mubr.f32.mxu0 %v4715_v1  ;;  %v827_v7 = vadd.f32 %v4290_v59, %v5004_v12  ;;  %3098 = vmatpush1.msra.mxu1 %v1187_v29  ;;  %v1132_v59 = vadd.f32 %v5104_v22, %v5076_v0 }
 0x10f   : > { %v821_v63 = vpop.f32.mrf.mxu0  ;;  %3099 = vmatprep.subr.mxu1 %v4715_v1 }
 0x110   : > { %v822_v3 = vadd.f32 %v5004_v12, %v821_v63  ;;  %3100 = vmatpush1.msra.mxu1 %v1182_v34  ;;  %v1127_v63 = vadd.f32 %v5066_v57, %v5104_v22 }
 0x111   : > { %4088 = vmatmul.mubr.msk.f32.gmra.mxu0 %vm1280_vm2, %v762_v37  ;;  %v4293_v4 = vpop.f32.mrf.mxu0  ;;  %v5125_v37 = vpop.f32.mrf.mxu1  ;;  %3101 = vmatprep.subr.mxu1 %v4715_v1 }
 0x112   : > { %1514 = vmatprep.mubr.f32.mxu0 %v4715_v1  ;;  %v837_v16 = vadd.f32 %v4293_v4, %v5004_v12  ;;  %3102 = vmatpush1.msra.mxu1 %v1177_v36  ;;  %v1641_v4 = vlaneseq }
 0x113   : > { %v831_v8 = vpop.f32.mrf.mxu0  ;;  %3103 = vmatprep.subr.mxu1 %v4715_v1 }
 0x114   : > { %v832_v11 = vadd.f32 %v5004_v12, %v831_v8  ;;  %3104 = vmatpush1.msra.mxu1 %v1172_v40  ;;  %v1675_v57 = vand.u32 127, %v1641_v4 }
 0x115   : > { %4089 = vmatmul.mubr.msk.f32.gmra.mxu0 %vm1280_vm2, %v767_v39  ;;  %v4296_v13 = vpop.f32.mrf.mxu0  ;;  %3105 = vmatprep.subr.mxu1 %v4715_v1 }
 0x116   : > { %1520 = vmatprep.mubr.f32.mxu0 %v4715_v1  ;;  %v847_v25 = vadd.f32 %v4296_v13, %v5004_v12  ;;  %3106 = vmatpush1.msra.mxu1 %v1167_v42  ;;  %v1805_v13 = vshra.s32 %v1675_v57, 4 }
 0x117   : > { %v841_v17 = vpop.f32.mrf.mxu0  ;;  %3107 = vmatprep.subr.mxu1 %v4715_v1 }
 0x118   : > { %v842_v20 = vadd.f32 %v5004_v12, %v841_v17  ;;  %v5196_v24 = vcvt.s32.f32 %v1805_v13 }
 0x119   : > { %4090 = vmatmul.mubr.msk.f32.gmra.mxu0 %vm1280_vm2, %v772_v41  ;;  %v4299_v21 = vpop.f32.mrf.mxu0  ;;  %v5130_v41 = vpop.f32.mrf.mxu1 }
 0x11a   : > { %1526 = vmatprep.mubr.f32.mxu0 %v4715_v1  ;;  %v857_v38 = vadd.f32 %v4299_v21, %v5004_v12 }
 0x11b   : > { %v851_v27 = vpop.f32.mrf.mxu0 }
 0x11c   : > { %v852_v32 = vadd.f32 %v5004_v12, %v851_v27 }
 0x11d   : > { %4091 = vmatmul.mubr.msk.f32.gmra.mxu0 %vm1280_vm2, %v777_v43  ;;  %v4302_v33 = vpop.f32.mrf.mxu0  ;;  %v5136_v43 = vpop.f32.mrf.mxu1 }
 0x11e   : > { %1532 = vmatprep.mubr.f32.mxu0 %v4715_v1  ;;  %v867_v48 = vadd.f32 %v4302_v33, %v5004_v12 }
 0x11f   : > { %v861_v39 = vpop.f32.mrf.mxu0  ;;  %v5141_v46 = vpop.f32.mrf.mxu1 }
 0x120   : > { %v862_v44 = vadd.f32 %v5004_v12, %v861_v39 }
 0x121   : > { %4092 = vmatmul.mubr.msk.f32.gmra.mxu0 %vm1280_vm2, %v782_v45  ;;  %v1162_v45 = vadd.f32 %v5104_v22, %v1161_v14 }
 0x122   : > { %1538 = vmatprep.mubr.f32.mxu0 %v4715_v1 }
 0x123   : > { %3108 = vmatpush1.msra.mxu1 %v1162_v45 }
 0x124   : > { %3109 = vmatprep.subr.mxu1 %v4715_v1 }
 0x125   : > { %4093 = vmatmul.mubr.msk.f32.gmra.mxu0 %vm1280_vm2, %v787_v47  ;;  %v5146_v47 = vpop.f32.mrf.mxu1 }
 0x126   : > { %1544 = vmatprep.mubr.f32.mxu0 %v4715_v1  ;;  %v1237_v39 = vadd.f32 %v5146_v47, %v5104_v22 }
 0x127   : > { %v5152_v50 = vpop.f32.mrf.mxu1 }
 0x128   : > { %v1232_v45 = vadd.f32 %v5104_v22, %v5152_v50  ;;  %v1227_v50 = vadd.f32 %v5136_v43, %v5104_v22  ;;  %v1222_v43 = vadd.f32 %v5104_v22, %v5141_v46 }
 0x129   : > { %4094 = vmatmul.mubr.msk.f32.gmra.mxu0 %vm1280_vm2, %v792_v49  ;;  %v1157_v49 = vadd.f32 %v5087_v6, %v5104_v22  ;;  %v4343_v52 = vpop.f32.mrf.mxu1  ;;  %v5180_v6 = vshrl.u32 %v1641_v4, 7 }
 0x12a   : > { %1550 = vmatprep.mubr.f32.mxu0 %v4715_v1 }
 0x12b   : > { %3110 = vmatpush1.msra.mxu1 %v1157_v49  ;;  %v1241_v12 = vpop.f32.mrf.mxu1  ;;  %v1643_v10 = vadd.s32 8, %v5180_v6  ;;  %v1741_v15 = vand.u32 15, %v5180_v6  ;;  %v1644_v21 = vadd.s32 16, %v5180_v6 }
 0x12c   : > { %3111 = vmatprep.subr.mxu1 %v4715_v1  ;;  %v1242_v29 = vadd.f32 %v5104_v22, %v1241_v12  ;;  %v1646_v12 = vadd.s32 32, %v5180_v6 }
 0x12d   : > { %4095 = vmatmul.mubr.msk.f32.gmra.mxu0 %vm1280_vm2, %v797_v51  ;;  %v1152_v51 = vadd.f32 %v5104_v22, %v5090_v9  ;;  %v1676_v9 = vadd.s32 128, %v1675_v57  ;;  %v1742_v26 = vand.u32 15, %v1643_v10  ;;  %v5200_v27 = vcvt.s32.f32 %v1741_v15 }
 0x12e   : > { %1556 = vmatprep.mubr.f32.mxu0 %v4715_v1  ;;  %v1679_v34 = vshra.s32 %v1644_v21, 4  ;;  %v1743_v42 = vand.u32 15, %v1644_v21 }
 0x12f   : > { %3112 = vmatpush1.msra.mxu1 %v1152_v51  ;;  %v1806_v18 = vshra.s32 %v1676_v9, 4  ;;  %v1810_v19 = vand.u32 15, %v1676_v9  ;;  %8138 = vst [vmem:[#allocation5_spill] sm:$0xff] %v5200_v27  ;;  %v5217_v40 = vcvt.s32.f32 %v1742_v26 }
 0x130   : > { %3113 = vmatprep.subr.mxu1 %v4715_v1  ;;  %v5230_v51 = vcvt.s32.f32 %v1679_v34 }
 0x131   : > { %4096 = vmatmul.mubr.msk.f32.gmra.mxu0 %vm1280_vm2, %v802_v53  ;;  %v1147_v53 = vadd.f32 %v5080_v2, %v5104_v22  ;;  %v5205_v30 = vcvt.s32.f32 %v1806_v18  ;;  %8140 = vst [vmem:[#allocation7_spill] sm:$0xff] %v5217_v40 }
 0x132   : > { %1562 = vmatprep.mubr.f32.mxu0 %v4715_v1  ;;  %8141 = vst [vmem:[#allocation8_spill] sm:$0xff] %v5230_v51 }
 0x133   : > { %3114 = vmatpush1.msra.mxu1 %v1147_v53  ;;  %v1818_v15 = vsub.f32 %v5230_v51, %v5205_v30 }
 0x134   : > { %3115 = vmatprep.subr.mxu1 %v4715_v1 }
 0x135   : > { %4097 = vmatmul.mubr.msk.f32.gmra.mxu0 %vm1280_vm2, %v807_v55  ;;  %v4346_v55 = vpop.f32.mrf.mxu1  ;;  %3116 = vmatpush1.msra.mxu1 %v1142_v54 }
 0x136   : > { %1568 = vmatprep.mubr.f32.mxu0 %v4715_v1  ;;  %3117 = vmatprep.subr.mxu1 %v4715_v1  ;;  %v1257_v14 = vadd.f32 %v4346_v55, %v5104_v22 }
 0x137   : > { %3118 = vmatpush1.msra.mxu1 %v1137_v56  ;;  %v5242_v56 = vcvt.s32.f32 %v1743_v42 }
 0x138   : > { %3119 = vmatprep.subr.mxu1 %v4715_v1 }
 0x139   : > { %4098 = vmatmul.mubr.msk.f32.gmra.mxu0 %vm1280_vm2, %v812_v58  ;;  %v1251_v58 = vpop.f32.mrf.mxu1  ;;  %3120 = vmatpush1.msra.mxu1 %v1132_v59  ;;  %8142 = vst [vmem:[#allocation9_spill] sm:$0xff] %v5242_v56 }
 0x13a   : > { %1574 = vmatprep.mubr.f32.mxu0 %v4715_v1  ;;  %3121 = vmatprep.subr.mxu1 %v4715_v1  ;;  %v1252_v17 = vadd.f32 %v5104_v22, %v1251_v58 }
 0x13b   : > { %3122 = vmatpush1.msra.mxu1 %v1127_v63  ;;  %v1647_v63 = vadd.s32 40, %v5180_v6 }
 0x13c   : > { %3123 = vmatprep.subr.mxu1 %v4715_v1 }
 0x13d   : > { %4099 = vmatmul.mubr.msk.f32.gmra.mxu0 %vm1280_vm2, %v817_v62  ;;  %v4349_v62 = vpop.f32.mrf.mxu1  ;;  %3124 = vmatpush1.msra.mxu1 %v1122_v61  ;;  %v1746_v13 = vand.u32 15, %v1647_v63 }
 0x13e   : > { %1580 = vmatprep.mubr.f32.mxu0 %v4715_v1  ;;  %3125 = vmatprep.subr.mxu1 %v4715_v1  ;;  %v1267_v60 = vadd.f32 %v4349_v62, %v5104_v22 }
 0x13f   : > { %v1261_v2 = vpop.f32.mrf.mxu1 }
 0x140   : > { %v1262_v8 = vadd.f32 %v5104_v22, %v1261_v2 }
 0x141   : > { %4100 = vmatmul.mubr.msk.f32.gmra.mxu0 %vm1280_vm2, %v822_v3  ;;  %v4352_v3 = vpop.f32.mrf.mxu1 }
 0x142   : > { %1586 = vmatprep.mubr.f32.mxu0 %v4715_v1  ;;  %v1277_v0 = vadd.f32 %v4352_v3, %v5104_v22 }
 0x143   : > { %v1271_v5 = vpop.f32.mrf.mxu1 }
 0x144   : > { %3126 = vmatpush2.msra.mxu1 %v1277_v0  ;;  %v1817_v0 = vsub.f32 %v5230_v51, %v5196_v24 }
 0x145   : > { %4101 = vmatmul.mubr.msk.f32.gmra.mxu0 %vm1280_vm2, %v827_v7  ;;  %3127 = vmatprep.subr.mxu1 %v4715_v1  ;;  %v1272_v7 = vadd.f32 %v5104_v22, %v1271_v5  ;;  %v1681_v5 = vshra.s32 %v1646_v12, 4 }
 0x146   : > { %1592 = vmatprep.mubr.f32.mxu0 %v4715_v1 }
 0x147   : > { %3128 = vmatpush2.msra.mxu1 %v1272_v7 }
 0x148   : > { %3129 = vmatprep.subr.mxu1 %v4715_v1 }
 0x149   : > { %4102 = vmatmul.mubr.msk.f32.gmra.mxu0 %vm1280_vm2, %v832_v11  ;;  %v1677_v11 = vshra.s32 %v5180_v6, 4  ;;  %3130 = vmatpush2.msra.mxu1 %v1267_v60  ;;  %v1217_v60 = vadd.f32 %v5125_v37, %v5104_v22  ;;  %v5278_v37 = vand.u32 2147483647, %v1817_v0 }
 0x14a   : > { %1598 = vmatprep.mubr.f32.mxu0 %v4715_v1  ;;  %3131 = vmatprep.subr.mxu1 %v4715_v1 }
 0x14b   : > { %3132 = vmatpush2.msra.mxu1 %v1262_v8  ;;  %v5194_v23 = vcvt.s32.f32 %v1677_v11  ;;  %v1682_v11 = vshra.s32 %v1647_v63, 4  ;;  %vm1945_vm11 = vcmp.le.f32.partialorder %v5278_v37, 2.0 }
 0x14c   : > { %3133 = vmatprep.subr.mxu1 %v4715_v1 }
 0x14d   : > { %4103 = vmatmul.mubr.msk.f32.gmra.mxu0 %vm1280_vm2, %v837_v16  ;;  %v1809_v16 = vand.u32 15, %v1675_v57  ;;  %3134 = vmatpush2.msra.mxu1 %v1257_v14  ;;  %v1813_v36 = vsub.f32 %v5194_v23, %v5196_v24  ;;  %v1745_v57 = vand.u32 15, %v1646_v12  ;;  %v1212_v14 = vadd.f32 %v5104_v22, %v5130_v41 }
 0x14e   : > { %1604 = vmatprep.mubr.f32.mxu0 %v4715_v1  ;;  %3135 = vmatprep.subr.mxu1 %v4715_v1  ;;  %v1207_v41 = vadd.f32 %v5114_v31, %v5104_v22  ;;  %v1202_v31 = vadd.f32 %v5104_v22, %v5119_v35 }
 0x14f   : > { %v5202_v28 = vcvt.s32.f32 %v1809_v16  ;;  %3136 = vmatpush2.msra.mxu1 %v1252_v17  ;;  %v1648_v17 = vadd.s32 48, %v5180_v6 }
 0x150   : > { %3137 = vmatprep.subr.mxu1 %v4715_v1 }
 0x151   : > { %4104 = vmatmul.mubr.msk.f32.gmra.mxu0 %vm1280_vm2, %v842_v20  ;;  %v1678_v20 = vshra.s32 %v1643_v10, 4  ;;  %v2007_v54 = vsub.f32 %v5217_v40, %v5202_v28  ;;  %v2009_v8 = vsub.f32 %v5242_v56, %v5202_v28 }
 0x152   : > { %1610 = vmatprep.mubr.f32.mxu0 %v4715_v1 }
 0x153   : > { %v5209_v33 = vcvt.s32.f32 %v1678_v20  ;;  %v5265_v46 = vand.u32 2147483647, %v2007_v54  ;;  %v5290_v20 = vcvt.s32.f32 %v1745_v57  ;;  %v5294_v21 = vand.u32 2147483647, %v2009_v8 }
 0x155   : > { %4105 = vmatmul.mubr.msk.f32.gmra.mxu0 %vm1280_vm2, %v847_v25  ;;  %v1247_v25 = vadd.f32 %v4343_v52, %v5104_v22  ;;  %8139 = vst [vmem:[#allocation6_spill] sm:$0xff] %v5209_v33  ;;  %v1815_v47 = vsub.f32 %v5209_v33, %v5196_v24  ;;  %v5233_v52 = vand.u32 2147483647, %v1813_v36  ;;  %v1816_v55 = vsub.f32 %v5209_v33, %v5205_v30 }
 0x156   : > { %1616 = vmatprep.mubr.f32.mxu0 %v4715_v1  ;;  %8146 = vst [vmem:[#allocation13_spill] sm:$0xff] %v5290_v20  ;;  %v5304_v36 = vcvt.s32.f32 %v1682_v11  ;;  %vm2135_vm8 = vcmp.le.f32.partialorder %v5265_v46, 2.0  ;;  %vm2137_vm12 = vcmp.le.f32.partialorder %v5294_v21, 2.0  ;;  %v1656_v33 = vadd.s32 112, %v5180_v6 }
 0x157   : > { %3138 = vmatpush2.msra.mxu1 %v1247_v25  ;;  %v5256_v3 = vand.u32 2147483647, %v1815_v47  ;;  %v5267_v7 = vand.u32 2147483647, %v1816_v55  ;;  %v2013_v47 = vsub.f32 %v5290_v20, %v5202_v28  ;;  %vm1941_vm3 = vcmp.le.f32.partialorder %v5233_v52, 2.0 }
 0x158   : > { %3139 = vmatprep.subr.mxu1 %v4715_v1  ;;  %8147 = vst [vmem:[#allocation14_spill] sm:$0xff] %v5304_v36 }
 0x159   : > { %4106 = vmatmul.mubr.msk.f32.gmra.mxu0 %vm1280_vm2, %v852_v32  ;;  %v5207_v32 = vcvt.s32.f32 %v1810_v19  ;;  %3140 = vmatpush2.msra.mxu1 %v1242_v29  ;;  %v5288_v19 = vcvt.s32.f32 %v1681_v5  ;;  %v1649_v29 = vadd.s32 56, %v5180_v6  ;;  %v1651_v5 = vadd.s32 72, %v5180_v6 }
 0x15a   : > { %1622 = vmatprep.mubr.f32.mxu0 %v4715_v1  ;;  %3141 = vmatprep.subr.mxu1 %v4715_v1  ;;  %v5344_v57 = vand.u32 2147483647, %v2013_v47  ;;  %vm1943_vm7 = vcmp.le.f32.partialorder %v5256_v3, 2.0  ;;  %vm1944_vm9 = vcmp.le.f32.partialorder %v5267_v7, 2.0 }
 0x15b   : > { %v2006_v49 = vsub.f32 %v5200_v27, %v5207_v32  ;;  %3142 = vmatpush2.msra.mxu1 %v1237_v39  ;;  %v2008_v62 = vsub.f32 %v5217_v40, %v5207_v32  ;;  %v2010_v16 = vsub.f32 %v5242_v56, %v5207_v32  ;;  %8145 = vst [vmem:[#allocation12_spill] sm:$0xff] %v5288_v19  ;;  %v5310_v39 = vand.u32 2147483647, %v1818_v15 }
 0x15c   : > { %3143 = vmatprep.subr.mxu1 %v4715_v1  ;;  %v1822_v12 = vsub.f32 %v5288_v19, %v5205_v30  ;;  %v2014_v55 = vsub.f32 %v5290_v20, %v5207_v32  ;;  %v1748_v0 = vand.u32 15, %v1649_v29  ;;  %v1652_v15 = vadd.s32 80, %v5180_v6 }
 0x15d   : > { %4107 = vmatmul.mubr.msk.f32.gmra.mxu0 %vm1280_vm2, %v857_v38  ;;  %v1645_v38 = vadd.s32 24, %v5180_v6  ;;  %3144 = vmatpush2.msra.mxu1 %v1232_v45  ;;  %v5254_v61 = vand.u32 2147483647, %v2006_v49  ;;  %v5274_v10 = vand.u32 2147483647, %v2008_v62  ;;  %v1747_v45 = vand.u32 15, %v1648_v17 }
 0x15e   : > { %1628 = vmatprep.mubr.f32.mxu0 %v4715_v1  ;;  %3145 = vmatprep.subr.mxu1 %v4715_v1  ;;  %v5312_v42 = vand.u32 2147483647, %v2010_v16  ;;  %v1821_v49 = vsub.f32 %v5288_v19, %v5196_v24  ;;  %v5348_v11 = vand.u32 2147483647, %v1822_v12  ;;  %v5353_v16 = vand.u32 2147483647, %v2014_v55 }
 0x15f   : > { %v1680_v53 = vshra.s32 %v1645_v38, 4  ;;  %v1744_v58 = vand.u32 15, %v1645_v38  ;;  %3146 = vmatpush2.msra.mxu1 %v1227_v50  ;;  %v5306_v38 = vcvt.s32.f32 %v1746_v13  ;;  %v1684_v50 = vshra.s32 %v1649_v29, 4 }
 0x160   : > { %3147 = vmatprep.subr.mxu1 %v4715_v1  ;;  %v5365_v29 = vcvt.s32.f32 %v1748_v0  ;;  %vm2134_vm6 = vcmp.le.f32.partialorder %v5254_v61, 2.0  ;;  %v1653_v0 = vadd.s32 88, %v5180_v6  ;;  %vm2136_vm10 = vcmp.le.f32.partialorder %v5274_v10, 2.0 }
 0x161   : > { %4108 = vmatmul.mubr.msk.f32.gmra.mxu0 %vm1280_vm2, %v862_v44  ;;  %v2005_v44 = vsub.f32 %v5200_v27, %v5202_v28  ;;  %v5261_v4 = vcvt.s32.f32 %v1680_v53  ;;  %v5271_v9 = vcvt.s32.f32 %v1744_v58  ;;  %3148 = vmatpush2.msra.mxu1 %v1222_v43  ;;  %8148 = vst [vmem:[#allocation15_spill] sm:$0xff] %v5306_v38  ;;  %v1650_v53 = vadd.s32 64, %v5180_v6 }
 0x162   : > { %1634 = vmatprep.mubr.f32.mxu0 %v4715_v1  ;;  %3149 = vmatprep.subr.mxu1 %v4715_v1  ;;  %v1823_v58 = vsub.f32 %v5304_v36, %v5196_v24  ;;  %v2015_v62 = vsub.f32 %v5306_v38, %v5202_v28  ;;  %v5339_v43 = vcvt.s32.f32 %v1747_v45  ;;  %v5350_v13 = vcvt.s32.f32 %v1684_v50  ;;  %8152 = vst [vmem:[#allocation19_spill] sm:$0xff] %v5365_v29 }
 0x163   : > { %v5245_v59 = vand.u32 2147483647, %v2005_v44  ;;  %8143 = vst [vmem:[#allocation10_spill] sm:$0xff] %v5261_v4  ;;  %8144 = vst [vmem:[#allocation11_spill] sm:$0xff] %v5271_v9  ;;  %v1819_v18 = vsub.f32 %v5261_v4, %v5196_v24  ;;  %3150 = vmatpush2.msra.mxu1 %v1217_v60  ;;  %v2011_v25 = vsub.f32 %v5271_v9, %v5202_v28  ;;  %v1683_v44 = vshra.s32 %v1648_v17, 4 }
 0x164   : > { %v1820_v26 = vsub.f32 %v5261_v4, %v5205_v30  ;;  %3151 = vmatprep.subr.mxu1 %v4715_v1  ;;  %v2012_v34 = vsub.f32 %v5271_v9, %v5207_v32  ;;  %8150 = vst [vmem:[#allocation17_spill] sm:$0xff] %v5339_v43  ;;  %v1824_v60 = vsub.f32 %v5304_v36, %v5205_v30  ;;  %v1685_v8 = vshra.s32 %v1650_v53, 4 }
 0x165   : > { %4109 = vmatmul.mubr.msk.f32.gmra.mxu0 %vm1280_vm2, %v867_v48  ;;  %v1814_v48 = vsub.f32 %v5194_v23, %v5205_v30  ;;  %3152 = vmatpush2.msra.mxu1 %v1212_v14  ;;  %v5322_v22 = vand.u32 2147483647, %v2011_v25  ;;  %v5337_v63 = vcvt.s32.f32 %v1683_v44  ;;  %8151 = vst [vmem:[#allocation18_spill] sm:$0xff] %v5350_v13  ;;  %v1749_v14 = vand.u32 15, %v1650_v53 }
 0x166   : > { %3153 = vmatprep.subr.mxu1 %v4715_v1  ;;  %v5324_v35 = vand.u32 2147483647, %v1820_v26  ;;  %v5329_v54 = vand.u32 2147483647, %v2012_v34  ;;  %v5355_v17 = vand.u32 2147483647, %v1823_v58  ;;  %v2017_v26 = vsub.f32 %v5339_v43, %v5202_v28 }
 0x167   : > { %v5252_v2 = vand.u32 2147483647, %v1814_v48  ;;  %v5315_v48 = vand.u32 2147483647, %v1819_v18  ;;  %3154 = vmatpush2.msra.mxu1 %v1207_v41  ;;  %8149 = vst [vmem:[#allocation16_spill] sm:$0xff] %v5337_v63  ;;  %v2016_v41 = vsub.f32 %v5306_v38, %v5207_v32  ;;  %v1825_v25 = vsub.f32 %v5337_v63, %v5196_v24 }
 0x168   : > { %3155 = vmatprep.subr.mxu1 %v4715_v1  ;;  %v5342_v1 = vand.u32 2147483647, %v1821_v49  ;;  %v5357_v18 = vand.u32 2147483647, %v2015_v62  ;;  %v1686_v34 = vshra.s32 %v1651_v5, 4  ;;  %vm2133_vm4 = vcmp.le.f32.partialorder %v5245_v59, 2.0 }
 0x169   : > { %3156 = vmatpush2.msra.mxu1 %v1202_v31  ;;  %v5369_v31 = vand.u32 2147483647, %v1824_v60  ;;  %v1826_v44 = vsub.f32 %v5337_v63, %v5205_v30  ;;  %v5373_v45 = vcvt.s32.f32 %v1685_v8  ;;  %v1750_v49 = vand.u32 15, %v1651_v5  ;;  %vm5457_vm14 = vmand %vm1941_vm3, %vm2133_vm4 }
 0x16a   : > { %vm1942_vm5 = vcmp.le.f32.partialorder %v5252_v2, 2.0  ;;  %v2018_v47 = vsub.f32 %v5339_v43, %v5207_v32  ;;  %v1827_v53 = vsub.f32 %v5350_v13, %v5196_v24  ;;  %v5381_v12 = vcvt.s32.f32 %v1749_v14 }
 0x16b   : > { %8153 = vst [vmem:[#allocation20_spill] sm:$0xff] %v5373_v45  ;;  %v1687_v50 = vshra.s32 %v1652_v15, 4  ;;  %v5383_v55 = vand.u32 2147483647, %v2016_v41  ;;  %v1828_v58 = vsub.f32 %v5350_v13, %v5205_v30  ;;  %v1751_v62 = vand.u32 15, %v1652_v15  ;;  %vm5470_vm0 = vmand %vm1942_vm5, %vm2134_vm6 }
 0x16c   : > { %8154 = vst [vmem:[#allocation21_spill] sm:$0xff] %v5381_v12  ;;  %v5388_v5 = vand.u32 2147483647, %v1825_v25  ;;  %v5390_v60 = vand.u32 2147483647, %v2017_v26  ;;  %v2019_v8 = vsub.f32 %v5365_v29, %v5202_v28  ;;  %v5394_v43 = vcvt.s32.f32 %v1686_v34  ;;  %vm5509_vm5 = vmand %vm1943_vm7, %vm2135_vm8 }
 0x16d   : > { %v5398_v14 = vand.u32 2147483647, %v1826_v44  ;;  %v2020_v15 = vsub.f32 %v5365_v29, %v5207_v32  ;;  %v1829_v41 = vsub.f32 %v5373_v45, %v5196_v24  ;;  %v5404_v25 = vcvt.s32.f32 %v1750_v49  ;;  %vm5521_vm6 = vmand %vm1944_vm9, %vm2136_vm10 }
 0x16e   : > { %8155 = vst [vmem:[#allocation22_spill] sm:$0xff] %v5394_v43  ;;  %v5408_v26 = vand.u32 2147483647, %v2018_v47  ;;  %v5410_v34 = vand.u32 2147483647, %v1827_v53  ;;  %v2021_v44 = vsub.f32 %v5381_v12, %v5202_v28  ;;  %v5414_v13 = vcvt.s32.f32 %v1687_v50  ;;  %vm5558_vm9 = vmand %vm1945_vm11, %vm2137_vm12 }
 0x16f   : > { %8156 = vst [vmem:[#allocation23_spill] sm:$0xff] %v5404_v25  ;;  %v5416_v63 = vand.u32 2147483647, %v1828_v58  ;;  %v1830_v29 = vsub.f32 %v5373_v45, %v5205_v30  ;;  %v5420_v49 = vcvt.s32.f32 %v1751_v62  ;;  %v1688_v38 = vshra.s32 %v1653_v0, 4 }
 0x170   : > { %8157 = vst [vmem:[#allocation24_spill] sm:$0xff] %v5414_v13  ;;  %v5422_v36 = vand.u32 2147483647, %v2019_v8  ;;  %v2022_v47 = vsub.f32 %v5381_v12, %v5207_v32  ;;  %v1831_v53 = vsub.f32 %v5394_v43, %v5196_v24  ;;  %v1654_v20 = vadd.s32 96, %v5180_v6 }
 0x171   : > { %8158 = vst [vmem:[#allocation25_spill] sm:$0xff] %v5420_v49  ;;  %v5431_v50 = vand.u32 2147483647, %v2020_v15  ;;  %v5433_v58 = vand.u32 2147483647, %v1829_v41  ;;  %v2023_v62 = vsub.f32 %v5404_v25, %v5202_v28  ;;  %v1832_v8 = vsub.f32 %v5394_v43, %v5205_v30 }
 0x172   : > { %vm1946_vm13 = vcmp.le.f32.partialorder %v5310_v39, 2.0  ;;  %v5440_v12 = vand.u32 2147483647, %v2021_v44  ;;  %v2024_v45 = vsub.f32 %v5404_v25, %v5207_v32  ;;  %v1833_v19 = vsub.f32 %v5414_v13, %v5196_v24 }
 0x173   : > { %v1752_v15 = vand.u32 15, %v1653_v0  ;;  %v5446_v9 = vand.u32 2147483647, %v1830_v29  ;;  %v2025_v41 = vsub.f32 %v5420_v49, %v5202_v28  ;;  %v5450_v4 = vcvt.s32.f32 %v1688_v38 }
 0x174   : > { %v1655_v43 = vadd.s32 104, %v5180_v6  ;;  %vm2138_vm15 = vcmp.le.f32.partialorder %v5312_v42, 2.0  ;;  %v5462_v0 = vand.u32 2147483647, %v2022_v47  ;;  %v5464_v29 = vand.u32 2147483647, %v1831_v53 }
 0x175   : > { %8159 = vst [vmem:[#allocation26_spill] sm:$0xff] %v5450_v4  ;;  %v1689_v25 = vshra.s32 %v1654_v20, 4  ;;  %vm1947_vm1 = vcmp.le.f32.partialorder %v5315_v48, 2.0  ;;  %vm2139_vm2 = vcmp.le.f32.partialorder %v5322_v22, 2.0  ;;  %v5476_v52 = vand.u32 2147483647, %v2023_v62  ;;  %vm5572_vm10 = vmand %vm1946_vm13, %vm2138_vm15 }
 0x176   : > { %v5478_v38 = vand.u32 2147483647, %v1832_v8  ;;  %v1834_v47 = vsub.f32 %v5414_v13, %v5205_v30  ;;  %v1753_v53 = vand.u32 15, %v1654_v20  ;;  %vm1948_vm3 = vcmp.le.f32.partialorder %v5324_v35, 2.0  ;;  %vm5610_vm13 = vmand %vm1947_vm1, %vm2139_vm2 }
 0x177   : > { %vm2140_vm4 = vcmp.le.f32.partialorder %v5329_v54, 2.0  ;;  %v5484_v2 = vand.u32 2147483647, %v2024_v45  ;;  %v5486_v61 = vand.u32 2147483647, %v1833_v19  ;;  %v2026_v51 = vsub.f32 %v5420_v49, %v5207_v32 }
 0x178   : > { %v5490_v40 = vcvt.s32.f32 %v1752_v15  ;;  %v5492_v8 = vand.u32 2147483647, %v2025_v41  ;;  %v1835_v13 = vsub.f32 %v5450_v4, %v5196_v24  ;;  %v1690_v20 = vshra.s32 %v1655_v43, 4  ;;  %vm5624_vm15 = vmand %vm1948_vm3, %vm2140_vm4 }
 0x179   : > { %v5513_v41 = vcvt.s32.f32 %v1689_v25  ;;  %v1754_v49 = vand.u32 15, %v1655_v43  ;;  %vm1949_vm7 = vcmp.le.f32.partialorder %v5342_v1, 2.0  ;;  %vm2141_vm8 = vcmp.le.f32.partialorder %v5344_v57, 2.0 }
 0x17a   : > { %8164 = vst [vmem:[#allocation27_spill] sm:$0xff] %v5490_v40  ;;  %v5527_v3 = vand.u32 2147483647, %v1834_v47  ;;  %v1836_v46 = vsub.f32 %v5450_v4, %v5205_v30  ;;  %v5531_v43 = vcvt.s32.f32 %v1753_v53  ;;  %v5535_v7 = vand.u32 2147483647, %v2026_v51  ;;  %vm5665_vm3 = vmand %vm1949_vm7, %vm2141_vm8 }
 0x17b   : > { %8169 = vst [vmem:[#allocation30_spill] sm:$0xff] %v5513_v41  ;;  %v2027_v10 = vsub.f32 %v5490_v40, %v5202_v28  ;;  %v2028_v25 = vsub.f32 %v5490_v40, %v5207_v32  ;;  %v1657_v59 = vadd.s32 120, %v5180_v6  ;;  %v5544_v53 = vcvt.s32.f32 %v1690_v20 }
 0x17c   : > { %8172 = vst [vmem:[#allocation31_spill] sm:$0xff] %v5531_v43  ;;  %vm1951_vm11 = vcmp.le.f32.partialorder %v5355_v17, 2.0  ;;  %vm2143_vm12 = vcmp.le.f32.partialorder %v5357_v18, 2.0  ;;  %v5578_v37 = vand.u32 2147483647, %v1836_v46  ;;  %v1838_v15 = vsub.f32 %v5513_v41, %v5205_v30 }
 0x17d   : > { %8173 = vst [vmem:[#allocation32_spill] sm:$0xff] %v5544_v53  ;;  %v5586_v39 = vand.u32 2147483647, %v2027_v10  ;;  %v5588_v42 = vand.u32 2147483647, %v2028_v25  ;;  %v2030_v44 = vsub.f32 %v5531_v43, %v5207_v32  ;;  %v1756_v40 = vand.u32 15, %v1657_v59 }
 0x17e   : > { %vm1953_vm1 = vcmp.le.f32.partialorder %v5388_v5, 2.0  ;;  %vm2145_vm2 = vcmp.le.f32.partialorder %v5390_v60, 2.0  ;;  %v1840_v35 = vsub.f32 %v5544_v53, %v5205_v30  ;;  %vm2147_vm7 = vcmp.le.f32.partialorder %v5422_v36, 2.0 }
 0x17f   : > { %v5637_v54 = vand.u32 2147483647, %v2030_v44  ;;  %v5651_v44 = vcvt.s32.f32 %v1756_v40  ;;  %vm1956_vm8 = vcmp.le.f32.partialorder %v5416_v63, 2.0 }
 0x180   : > { %v5687_v22 = vand.u32 2147483647, %v1840_v35 }
 0x181   : > { %8190 = vst [vmem:[#allocation41_spill] sm:$0xff] %v5651_v44 }
 0x1a9   : > { %v1450_v56 = vpop.f32.mrf.mxu0 }
 0x1aa   : > { %v5499_v45 = vsel %vm5457_vm14, %v1450_v56, -1e+30  ;;  %vm1950_vm14 = vcmp.le.f32.partialorder %v5348_v11, 2.0 }
 0x1ab   : > { %v1452_v62 = vpop.f32.mrf.mxu0  ;;  %8165 = vst [vmem:[#allocation28_spill] sm:$0xff] %v5499_v45 }
 0x1ac   : > { %v5503_v19 = vsel %vm5470_vm0, %v1452_v62, -1e+30  ;;  %vm2142_vm0 = vcmp.le.f32.partialorder %v5353_v16, 2.0  ;;  %v5542_v62 = vand.u32 2147483647, %v1835_v13  ;;  %v1837_v13 = vsub.f32 %v5513_v41, %v5196_v24 }
 0x1ad   : > { %8166 = vst [vmem:[#allocation29_spill] sm:$0xff] %v5503_v19  ;;  %v1456_v27 = vpop.f32.mrf.mxu0  ;;  %v2709_v56 = vmax.f32 %v5499_v45, %v5503_v19  ;;  %v1691_v19 = vshra.s32 %v1656_v33, 4  ;;  %v1755_v45 = vand.u32 15, %v1656_v33  ;;  %v5564_v33 = vcvt.s32.f32 %v1754_v49  ;;  %vm5677_vm4 = vmand %vm1950_vm14, %vm2142_vm0 }
 0x1ae   : > { %v5548_v51 = vsel %vm5509_vm5, %v1456_v27, -1e+30  ;;  %v2029_v49 = vsub.f32 %v5531_v43, %v5202_v28  ;;  %vm1952_vm5 = vcmp.le.f32.partialorder %v5369_v31, 2.0  ;;  %v2035_v43 = vsub.f32 %v5651_v44, %v5202_v28  ;;  %vm5713_vm14 = vmand %vm1951_vm11, %vm2143_vm12 }
 0x1af   : > { %2710 = vmax.xlane.f32.xlu0 %v2709_v56  ;;  %v1458_v47 = vpop.f32.mrf.mxu0  ;;  %8174 = vst [vmem:[#allocation33_spill] sm:$0xff] %v5548_v51  ;;  %8178 = vst [vmem:[#allocation35_spill] sm:$0xff] %v5564_v33  ;;  %v5596_v41 = vcvt.s32.f32 %v1755_v45  ;;  %v2031_v45 = vsub.f32 %v5564_v33, %v5202_v28  ;;  %v2032_v21 = vsub.f32 %v5564_v33, %v5207_v32  ;;  %vm2148_vm0 = vcmp.le.f32.partialorder %v5431_v50, 2.0 }
 0x1b0   : > { %v5552_v4 = vsel %vm5521_vm6, %v1458_v47, -1e+30  ;;  %vm2144_vm6 = vcmp.le.f32.partialorder %v5383_v55, 2.0  ;;  %v1692_v47 = vshra.s32 %v1657_v59, 4  ;;  %v5630_v48 = vand.u32 2147483647, %v2029_v49 }
 0x1b1   : > { %8175 = vst [vmem:[#allocation34_spill] sm:$0xff] %v5552_v4  ;;  %v1462_v20 = vpop.f32.mrf.mxu0  ;;  %v2712_v27 = vmax.f32 %v5548_v51, %v5552_v4  ;;  %v1839_v4 = vsub.f32 %v5544_v53, %v5196_v24  ;;  %v5594_v51 = vcvt.s32.f32 %v1691_v19  ;;  %8182 = vst [vmem:[#allocation37_spill] sm:$0xff] %v5596_v41  ;;  %v5614_v19 = vand.u32 2147483647, %v1837_v13 }
 0x1b2   : > { %v5600_v10 = vsel %vm5558_vm9, %v1462_v20, -1e+30  ;;  %v5632_v13 = vand.u32 2147483647, %v1838_v15  ;;  %v1658_v20 = vadd.s32 128, %v5180_v6  ;;  %vm1954_vm9 = vcmp.le.f32.partialorder %v5398_v14, 2.0 }
 0x1b3   : > { %2713 = vmax.xlane.f32.xlu1 %v2712_v27  ;;  %v1464_v46 = vpop.f32.mrf.mxu0  ;;  %8181 = vst [vmem:[#allocation36_spill] sm:$0xff] %v5594_v51  ;;  %8183 = vst [vmem:[#allocation38_spill] sm:$0xff] %v5600_v10  ;;  %v5645_v15 = vand.u32 2147483647, %v1839_v4  ;;  %v1842_v1 = vsub.f32 %v5594_v51, %v5205_v30  ;;  %v5689_v16 = vand.u32 2147483647, %v2032_v21  ;;  %v2034_v11 = vsub.f32 %v5596_v41, %v5207_v32 }
 0x1b4   : > { %v5604_v25 = vsel %vm5572_vm10, %v1464_v46, -1e+30  ;;  %vm2146_vm10 = vcmp.le.f32.partialorder %v5408_v26, 2.0  ;;  %v5643_v46 = vcvt.s32.f32 %v1692_v47  ;;  %v1693_v57 = vshra.s32 %v1658_v20, 4 }
 0x1b5   : > { %8184 = vst [vmem:[#allocation39_spill] sm:$0xff] %v5604_v25  ;;  %v1468_v59 = vpop.f32.mrf.mxu0  ;;  %v2715_v56 = vmax.f32 %v5600_v10, %v5604_v25  ;;  %v1841_v25 = vsub.f32 %v5594_v51, %v5196_v24  ;;  %v2033_v10 = vsub.f32 %v5596_v41, %v5202_v28  ;;  %vm1957_vm11 = vcmp.le.f32.partialorder %v5433_v58, 2.0 }
 0x1b6   : > { %8189 = vst [vmem:[#allocation40_spill] sm:$0xff] %v5643_v46  ;;  %v5655_v53 = vsel %vm5610_vm13, %v1468_v59, -1e+30  ;;  %vm1955_vm13 = vcmp.le.f32.partialorder %v5410_v34, 2.0  ;;  %v1843_v51 = vsub.f32 %v5643_v46, %v5196_v24  ;;  %vm2149_vm12 = vcmp.le.f32.partialorder %v5440_v12, 2.0 }
 0x1b7   : > { %2716 = vmax.xlane.f32.xlu1 %v2715_v56  ;;  %v1470_v49 = vpop.f32.mrf.mxu0  ;;  %8191 = vst [vmem:[#allocation42_spill] sm:$0xff] %v5655_v53  ;;  %v5669_v56 = vand.u32 2147483647, %v2031_v45  ;;  %v1659_v45 = vadd.s32 136, %v5180_v6  ;;  %v5695_v33 = vand.u32 2147483647, %v2033_v10  ;;  %v1844_v31 = vsub.f32 %v5643_v46, %v5205_v30 }
 0x1b8   : > { %v5659_v47 = vsel %vm5624_vm15, %v1470_v49, -1e+30  ;;  %v1757_v49 = vand.u32 15, %v1658_v20  ;;  %vm5725_vm15 = vmand %vm1952_vm5, %vm2144_vm6  ;;  %v5731_v17 = vand.u32 2147483647, %v1842_v1  ;;  %v2036_v1 = vsub.f32 %v5651_v44, %v5207_v32 }
 0x1b9   : > { %8192 = vst [vmem:[#allocation43_spill] sm:$0xff] %v5659_v47  ;;  %v1474_v40 = vpop.f32.mrf.mxu0  ;;  %v2718_v27 = vmax.f32 %v5655_v53, %v5659_v47  ;;  %v5693_v53 = vand.u32 2147483647, %v1841_v25  ;;  %v1660_v25 = vadd.s32 144, %v5180_v6  ;;  %v1758_v59 = vand.u32 15, %v1659_v45  ;;  %vm5761_vm5 = vmand %vm1953_vm1, %vm2145_vm2 }
 0x1ba   : > { %v5703_v35 = vsel %vm5665_vm3, %v1474_v40, -1e+30  ;;  %v1694_v40 = vshra.s32 %v1659_v45, 4  ;;  %vm1958_vm3 = vcmp.le.f32.partialorder %v5446_v9, 2.0  ;;  %v5740_v55 = vcvt.s32.f32 %v1757_v49 }
 0x1bb   : > { %2719 = vmax.xlane.f32.xlu1 %v2718_v27  ;;  %v1476_v47 = vpop.f32.mrf.mxu0  ;;  %8197 = vst [vmem:[#allocation44_spill] sm:$0xff] %v5703_v35  ;;  %v5736_v27 = vand.u32 2147483647, %v2034_v11  ;;  %v5744_v41 = vand.u32 2147483647, %v2035_v43  ;;  %vm2150_vm6 = vcmp.le.f32.partialorder %v5462_v0, 2.0  ;;  %v5790_v18 = vcvt.s32.f32 %v1758_v59 }
 0x1bc   : > { %v5707_v21 = vsel %vm5677_vm4, %v1476_v47, -1e+30  ;;  %v5733_v47 = vcvt.s32.f32 %v1693_v57  ;;  %8204 = vst [vmem:[#allocation47_spill] sm:$0xff] %v5740_v55  ;;  %v1661_v57 = vadd.s32 152, %v5180_v6  ;;  %vm5772_vm4 = vmand %vm1954_vm9, %vm2146_vm10  ;;  %vm1959_vm1 = vcmp.le.f32.partialorder %v5464_v29, 2.0 }
 0x1bd   : > { %8198 = vst [vmem:[#allocation45_spill] sm:$0xff] %v5707_v21  ;;  %v1480_v20 = vpop.f32.mrf.mxu0  ;;  %v2721_v4 = vmax.f32 %v5703_v35, %v5707_v21  ;;  %v5742_v35 = vand.u32 2147483647, %v1843_v51  ;;  %v1695_v51 = vshra.s32 %v1660_v25, 4  ;;  %vm2151_vm2 = vcmp.le.f32.partialorder %v5476_v52, 2.0  ;;  %8212 = vst [vmem:[#allocation51_spill] sm:$0xff] %v5790_v18 }
 0x1be   : > { %8203 = vst [vmem:[#allocation46_spill] sm:$0xff] %v5733_v47  ;;  %v5751_v11 = vsel %vm5713_vm14, %v1480_v20, -1e+30  ;;  %v1845_v5 = vsub.f32 %v5733_v47, %v5196_v24  ;;  %v5780_v60 = vcvt.s32.f32 %v1694_v40  ;;  %v1759_v20 = vand.u32 15, %v1660_v25  ;;  %vm5809_vm9 = vmand %vm1955_vm13, %vm2147_vm7 }
 0x1bf   : > { %2722 = vmax.xlane.f32.xlu1 %v2721_v4  ;;  %v1482_v21 = vpop.f32.mrf.mxu0  ;;  %8205 = vst [vmem:[#allocation48_spill] sm:$0xff] %v5751_v11  ;;  %vm1960_vm14 = vcmp.le.f32.partialorder %v5478_v38, 2.0  ;;  %v5784_v26 = vand.u32 2147483647, %v1844_v31  ;;  %v2037_v14 = vsub.f32 %v5740_v55, %v5202_v28  ;;  %v1846_v4 = vsub.f32 %v5733_v47, %v5205_v30  ;;  %vm5821_vm10 = vmand %vm1956_vm8, %vm2148_vm0 }
 0x1c0   : > { %v5755_v49 = vsel %vm5725_vm15, %v1482_v21, -1e+30  ;;  %8211 = vst [vmem:[#allocation50_spill] sm:$0xff] %v5780_v60  ;;  %vm2152_vm15 = vcmp.le.f32.partialorder %v5484_v2, 2.0  ;;  %v2038_v25 = vsub.f32 %v5740_v55, %v5207_v32  ;;  %v1696_v40 = vshra.s32 %v1661_v57, 4  ;;  %vm5861_vm8 = vmand %vm1957_vm11, %vm2149_vm12 }
 0x1c1   : > { %8206 = vst [vmem:[#allocation49_spill] sm:$0xff] %v5755_v49  ;;  %v1486_v45 = vpop.f32.mrf.mxu0  ;;  %v2724_v10 = vmax.f32 %v5751_v11, %v5755_v49  ;;  %v5792_v11 = vand.u32 2147483647, %v2036_v1  ;;  %v1662_v44 = vadd.s32 160, %v5180_v6  ;;  %v5813_v1 = vcvt.s32.f32 %v1695_v51  ;;  %vm5875_vm0 = vmand %vm1958_vm3, %vm2150_vm6 }
 0x1c2   : > { %v5799_v31 = vsel %vm5761_vm5, %v1486_v45, -1e+30  ;;  %vm1961_vm13 = vcmp.le.f32.partialorder %v5486_v61, 2.0  ;;  %vm2153_vm7 = vcmp.le.f32.partialorder %v5492_v8, 2.0  ;;  %v5827_v36 = vand.u32 2147483647, %v1845_v5  ;;  %vm5914_vm3 = vmand %vm1959_vm1, %vm2151_vm2 }
 0x1c3   : > { %2725 = vmax.xlane.f32.xlu1 %v2724_v10  ;;  %v1488_v49 = vpop.f32.mrf.mxu0  ;;  %8213 = vst [vmem:[#allocation52_spill] sm:$0xff] %v5799_v31  ;;  %8217 = vst [vmem:[#allocation54_spill] sm:$0xff] %v5813_v1  ;;  %v1760_v10 = vand.u32 15, %v1661_v57  ;;  %v1847_v34 = vsub.f32 %v5780_v60, %v5196_v24  ;;  %v5831_v57 = vcvt.s32.f32 %v1759_v20  ;;  %vm1962_vm5 = vcmp.le.f32.partialorder %v5527_v3, 2.0 }
 0x1c4   : > { %v5803_v46 = vsel %vm5772_vm4, %v1488_v49, -1e+30  ;;  %vm2154_vm4 = vcmp.le.f32.partialorder %v5535_v7, 2.0  ;;  %v5835_v63 = vand.u32 2147483647, %v2037_v14  ;;  %v2039_v51 = vsub.f32 %v5790_v18, %v5202_v28  ;;  %vm5928_vm6 = vmand %vm1960_vm14, %vm2152_vm15 }
 0x1c5   : > { %8214 = vst [vmem:[#allocation53_spill] sm:$0xff] %v5803_v46  ;;  %v1492_v55 = vpop.f32.mrf.mxu0  ;;  %v2727_v43 = vmax.f32 %v5799_v31, %v5803_v46  ;;  %8220 = vst [vmem:[#allocation55_spill] sm:$0xff] %v5831_v57  ;;  %v5837_v50 = vand.u32 2147483647, %v1846_v4  ;;  %v1848_v45 = vsub.f32 %v5780_v60, %v5205_v30  ;;  %v5843_v5 = vand.u32 2147483647, %v2038_v25 }
 0x1c6   : > { %v2040_v20 = vsub.f32 %v5790_v18, %v5207_v32  ;;  %v5847_v46 = vcvt.s32.f32 %v1696_v40  ;;  %v1697_v31 = vshra.s32 %v1662_v44, 4  ;;  %v5851_v14 = vsel %vm5809_vm9, %v1492_v55, -1e+30  ;;  %vm5965_vm14 = vmand %vm1961_vm13, %vm2153_vm7 }
 0x1c7   : > { %2728 = vmax.xlane.f32.xlu1 %v2727_v43  ;;  %v1494_v21 = vpop.f32.mrf.mxu0  ;;  %8222 = vst [vmem:[#allocation57_spill] sm:$0xff] %v5851_v14  ;;  %v1849_v40 = vsub.f32 %v5813_v1, %v5196_v24  ;;  %v5867_v43 = vcvt.s32.f32 %v1760_v10  ;;  %vm1963_vm11 = vcmp.le.f32.partialorder %v5542_v62, 2.0  ;;  %vm2155_vm12 = vcmp.le.f32.partialorder %v5586_v39, 2.0  ;;  %vm5977_vm15 = vmand %vm1962_vm5, %vm2154_vm4 }
 0x1c8   : > { %8221 = vst [vmem:[#allocation56_spill] sm:$0xff] %v5847_v46  ;;  %v5855_v4 = vsel %vm5821_vm10, %v1494_v21, -1e+30  ;;  %v5881_v58 = vand.u32 2147483647, %v1847_v34  ;;  %v2041_v10 = vsub.f32 %v5831_v57, %v5202_v28  ;;  %v1761_v49 = vand.u32 15, %v1662_v44  ;;  %vm6013_vm5 = vmand %vm1963_vm11, %vm2155_vm12 }
 0x1c9   : > { %8223 = vst [vmem:[#allocation58_spill] sm:$0xff] %v5855_v4  ;;  %8226 = vst [vmem:[#allocation59_spill] sm:$0xff] %v5867_v43  ;;  %v1498_v59 = vpop.f32.mrf.mxu0  ;;  %v2730_v55 = vmax.f32 %v5851_v14, %v5855_v4  ;;  %vm1964_vm9 = vcmp.le.f32.partialorder %v5578_v37, 2.0  ;;  %vm2156_vm10 = vcmp.le.f32.partialorder %v5588_v42, 2.0  ;;  %v5887_v0 = vand.u32 2147483647, %v2039_v51 }
 0x1ca   : > { %v5889_v9 = vand.u32 2147483647, %v1848_v45  ;;  %v1850_v21 = vsub.f32 %v5813_v1, %v5205_v30  ;;  %v1663_v4 = vadd.s32 168, %v5180_v6  ;;  %v5894_v14 = vand.u32 2147483647, %v2040_v20 }
 0x1cb   : > { %2731 = vmax.xlane.f32.xlu1 %v2730_v55  ;;  %v1500_v34 = vpop.f32.mrf.mxu0  ;;  %v2042_v44 = vsub.f32 %v5831_v57, %v5207_v32  ;;  %v1851_v18 = vsub.f32 %v5847_v46, %v5196_v24  ;;  %v5900_v60 = vcvt.s32.f32 %v1697_v31  ;;  %v5904_v51 = vsel %vm5861_vm8, %v1498_v59, -1e+30 }
 0x1cc   : > { %8230 = vst [vmem:[#allocation61_spill] sm:$0xff] %v5904_v51  ;;  %v5908_v45 = vsel %vm5875_vm0, %v1500_v34, -1e+30  ;;  %v5918_v55 = vand.u32 2147483647, %v1849_v40  ;;  %v2043_v31 = vsub.f32 %v5867_v43, %v5202_v28  ;;  %vm1965_vm1 = vcmp.le.f32.partialorder %v5614_v19, 2.0 }
 0x1cd   : > { %8229 = vst [vmem:[#allocation60_spill] sm:$0xff] %v5900_v60  ;;  %8231 = vst [vmem:[#allocation62_spill] sm:$0xff] %v5908_v45  ;;  %v1504_v25 = vpop.f32.mrf.mxu0  ;;  %v2733_v59 = vmax.f32 %v5904_v51, %v5908_v45  ;;  %vm2157_vm2 = vcmp.le.f32.partialorder %v5630_v48, 2.0  ;;  %v5934_v29 = vand.u32 2147483647, %v2041_v10  ;;  %v5936_v40 = vcvt.s32.f32 %v1761_v49 }
 0x1ce   : > { %v1664_v12 = vadd.s32 176, %v5180_v6  ;;  %vm1966_vm8 = vcmp.le.f32.partialorder %v5632_v13, 2.0  ;;  %vm2158_vm0 = vcmp.le.f32.partialorder %v5637_v54, 2.0  ;;  %v5941_v2 = vand.u32 2147483647, %v1850_v21 }
 0x1cf   : > { %8236 = vst [vmem:[#allocation63_spill] sm:$0xff] %v5936_v40  ;;  %v1852_v38 = vsub.f32 %v5847_v46, %v5205_v30  ;;  %v2044_v34 = vsub.f32 %v5867_v43, %v5207_v32  ;;  %v1698_v45 = vshra.s32 %v1663_v4, 4  ;;  %2734 = vmax.xlane.f32.xlu1 %v2733_v59  ;;  %v1506_v10 = vpop.f32.mrf.mxu0  ;;  %v5947_v51 = vand.u32 2147483647, %v2042_v44 }
 0x1d0   : > { %v5949_v49 = vand.u32 2147483647, %v1851_v18  ;;  %v1853_v57 = vsub.f32 %v5900_v60, %v5196_v24  ;;  %v1762_v1 = vand.u32 15, %v1663_v4  ;;  %v5955_v21 = vsel %vm5914_vm3, %v1504_v25, -1e+30 }
 0x1d1   : > { %8237 = vst [vmem:[#allocation64_spill] sm:$0xff] %v5955_v21  ;;  %v5959_v46 = vsel %vm5928_vm6, %v1506_v10, -1e+30  ;;  %v5969_v18 = vand.u32 2147483647, %v2043_v31  ;;  %v1510_v59 = vpop.f32.mrf.mxu0  ;;  %vm1967_vm3 = vcmp.le.f32.partialorder %v5645_v15, 2.0  ;;  %v2045_v61 = vsub.f32 %v5936_v40, %v5202_v28  ;;  %vm6027_vm6 = vmand %vm1964_vm9, %vm2156_vm10 }
 0x1d2   : > { %8238 = vst [vmem:[#allocation65_spill] sm:$0xff] %v5959_v46  ;;  %v2736_v4 = vmax.f32 %v5955_v21, %v5959_v46  ;;  %vm2159_vm13 = vcmp.le.f32.partialorder %v5669_v56, 2.0  ;;  %v1699_v8 = vshra.s32 %v1664_v12, 4  ;;  %v1665_v31 = vadd.s32 184, %v5180_v6  ;;  %vm6064_vm9 = vmand %vm1965_vm1, %vm2157_vm2 }
 0x1d3   : > { %vm1968_vm7 = vcmp.le.f32.partialorder %v5687_v22, 2.0  ;;  %v5987_v25 = vand.u32 2147483647, %v1852_v38  ;;  %v5989_v7 = vand.u32 2147483647, %v2044_v34  ;;  %v5991_v3 = vcvt.s32.f32 %v1698_v45  ;;  %v1512_v10 = vpop.f32.mrf.mxu0 }
 0x1d4   : > { %v1763_v52 = vand.u32 15, %v1664_v12  ;;  %2737 = vmax.xlane.f32.xlu1 %v2736_v4  ;;  %v5993_v46 = vand.u32 2147483647, %v1853_v57  ;;  %v1854_v21 = vsub.f32 %v5900_v60, %v5205_v30  ;;  %v2046_v43 = vsub.f32 %v5936_v40, %v5207_v32 }
 0x1d5   : > { %8243 = vst [vmem:[#allocation66_spill] sm:$0xff] %v5991_v3  ;;  %v5999_v47 = vcvt.s32.f32 %v1762_v1  ;;  %v6003_v38 = vsel %vm5965_vm14, %v1510_v59, -1e+30  ;;  %v6007_v45 = vsel %vm5977_vm15, %v1512_v10, -1e+30  ;;  %vm2160_vm4 = vcmp.le.f32.partialorder %v5689_v16, 2.0  ;;  %v1516_v12 = vpop.f32.mrf.mxu0  ;;  %vm6076_vm15 = vmand %vm1966_vm8, %vm2158_vm0 }
 0x1d6   : > { %8245 = vst [vmem:[#allocation68_spill] sm:$0xff] %v6003_v38  ;;  %8246 = vst [vmem:[#allocation69_spill] sm:$0xff] %v6007_v45  ;;  %v6019_v1 = vadd.s32 192, %v5180_v6  ;;  %v2739_v34 = vmax.f32 %v6003_v38, %v6007_v45  ;;  %vm1969_vm11 = vcmp.le.f32.partialorder %v5693_v53, 2.0  ;;  %vm2161_vm12 = vcmp.le.f32.partialorder %v5695_v33, 2.0 }
 0x1d7   : > { %8244 = vst [vmem:[#allocation67_spill] sm:$0xff] %v5999_v47  ;;  %v6033_v62 = vand.u32 2147483647, %v2045_v61  ;;  %v6035_v44 = vcvt.s32.f32 %v1699_v8  ;;  %v1700_v59 = vshra.s32 %v1665_v31, 4  ;;  %vm1970_vm14 = vcmp.le.f32.partialorder %v5731_v17, 2.0  ;;  %v1518_v10 = vpop.f32.mrf.mxu0  ;;  %vm6116_vm8 = vmand %vm1967_vm3, %vm2159_vm13 }
 0x1d8   : > { %v1855_v42 = vsub.f32 %v5991_v3, %v5196_v24  ;;  %v1856_v37 = vsub.f32 %v5991_v3, %v5205_v30  ;;  %v6042_v4 = vcvt.s32.f32 %v1763_v52  ;;  %v1764_v20 = vand.u32 15, %v1665_v31  ;;  %2740 = vmax.xlane.f32.xlu0 %v2739_v34  ;;  %vm6130_vm0 = vmand %vm1968_vm7, %vm2160_vm4 }
 0x1d9   : > { %8251 = vst [vmem:[#allocation70_spill] sm:$0xff] %v6035_v44  ;;  %v6044_v45 = vand.u32 2147483647, %v1854_v21  ;;  %v6046_v61 = vand.u32 2147483647, %v2046_v43  ;;  %v2047_v8 = vsub.f32 %v5999_v47, %v5202_v28  ;;  %v2048_v38 = vsub.f32 %v5999_v47, %v5207_v32  ;;  %v1522_v31 = vpop.f32.mrf.mxu0  ;;  %vm6167_vm7 = vmand %vm1969_vm11, %vm2161_vm12 }
 0x1da   : > { %8252 = vst [vmem:[#allocation71_spill] sm:$0xff] %v6042_v4  ;;  %v6054_v40 = vsel %vm6013_vm5, %v1516_v12, -1e+30  ;;  %v6058_v52 = vsel %vm6027_vm6, %v1518_v10, -1e+30  ;;  %vm2162_vm10 = vcmp.le.f32.partialorder %v5736_v27, 2.0  ;;  %v1857_v19 = vsub.f32 %v6035_v44, %v5196_v24 }
 0x1db   : > { %8253 = vst [vmem:[#allocation72_spill] sm:$0xff] %v6054_v40  ;;  %8254 = vst [vmem:[#allocation73_spill] sm:$0xff] %v6058_v52  ;;  %v1701_v21 = vshra.s32 %v6019_v1, 4  ;;  %v2742_v57 = vmax.f32 %v6054_v40, %v6058_v52  ;;  %vm1971_vm1 = vcmp.le.f32.partialorder %v5742_v35, 2.0  ;;  %vm2163_vm2 = vcmp.le.f32.partialorder %v5744_v41, 2.0  ;;  %v1524_v52 = vpop.f32.mrf.mxu0 }
 0x1dc   : > { %v6084_v12 = vcvt.s32.f32 %v1700_v59  ;;  %v1667_v34 = vadd.s32 200, %v5180_v6  ;;  %vm1972_vm5 = vcmp.le.f32.partialorder %v5784_v26, 2.0  ;;  %vm2164_vm6 = vcmp.le.f32.partialorder %v5792_v11, 2.0  ;;  %vm6181_vm4 = vmand %vm1970_vm14, %vm2162_vm10 }
 0x1dd   : > { %v6089_v13 = vand.u32 2147483647, %v1855_v42  ;;  %v6091_v54 = vand.u32 2147483647, %v1856_v37  ;;  %v2049_v39 = vsub.f32 %v6042_v4, %v5202_v28  ;;  %v6095_v10 = vcvt.s32.f32 %v1764_v20  ;;  %2743 = vmax.xlane.f32.xlu1 %v2742_v57  ;;  %vm6218_vm14 = vmand %vm1971_vm1, %vm2163_vm2 }
 0x1de   : > { %8259 = vst [vmem:[#allocation74_spill] sm:$0xff] %v6084_v12  ;;  %v6097_v40 = vand.u32 2147483647, %v2047_v8  ;;  %v6099_v59 = vand.u32 2147483647, %v2048_v38  ;;  %v1858_v47 = vsub.f32 %v6035_v44, %v5205_v30  ;;  %v1765_v3 = vand.u32 15, %v6019_v1  ;;  %v1528_v8 = vpop.f32.mrf.mxu0  ;;  %vm6232_vm10 = vmand %vm1972_vm5, %vm2164_vm6 }
 0x1df   : > { %8260 = vst [vmem:[#allocation75_spill] sm:$0xff] %v6095_v10  ;;  %v6106_v42 = vsel %vm6064_vm9, %v1522_v31, -1e+30  ;;  %v6110_v37 = vsel %vm6076_vm15, %v1524_v52, -1e+30  ;;  %v2050_v20 = vsub.f32 %v6042_v4, %v5207_v32  ;;  %v6122_v1 = vcvt.s32.f32 %v1701_v21 }
 0x1e0   : > { %8261 = vst [vmem:[#allocation76_spill] sm:$0xff] %v6106_v42  ;;  %8262 = vst [vmem:[#allocation77_spill] sm:$0xff] %v6110_v37  ;;  %v2745_v43 = vmax.f32 %v6106_v42, %v6110_v37  ;;  %vm1973_vm3 = vcmp.le.f32.partialorder %v5827_v36, 2.0  ;;  %vm2165_vm13 = vcmp.le.f32.partialorder %v5835_v63, 2.0  ;;  %v6136_v15 = vand.u32 2147483647, %v1857_v19  ;;  %v1530_v48 = vpop.f32.mrf.mxu0 }
 0x1e1   : > { %8265 = vst [vmem:[#allocation78_spill] sm:$0xff] %v6122_v1  ;;  %v1859_v52 = vsub.f32 %v6084_v12, %v5196_v24  ;;  %v1702_v21 = vshra.s32 %v1667_v34, 4  ;;  %vm1974_vm9 = vcmp.le.f32.partialorder %v5837_v50, 2.0  ;;  %vm2166_vm15 = vcmp.le.f32.partialorder %v5843_v5, 2.0  ;;  %vm6271_vm5 = vmand %vm1973_vm3, %vm2165_vm13 }
 0x1e2   : > { %v6142_v16 = vand.u32 2147483647, %v2049_v39  ;;  %v2051_v22 = vsub.f32 %v6095_v10, %v5202_v28  ;;  %v1766_v31 = vand.u32 15, %v1667_v34  ;;  %v1668_v57 = vadd.s32 208, %v5180_v6  ;;  %2746 = vmax.xlane.f32.xlu0 %v2745_v43  ;;  %v1534_v38 = vpop.f32.mrf.mxu0  ;;  %vm6283_vm6 = vmand %vm1974_vm9, %vm2166_vm15 }
 0x1e3   : > { %v6147_v19 = vand.u32 2147483647, %v1858_v47  ;;  %v1860_v37 = vsub.f32 %v6084_v12, %v5205_v30  ;;  %v2052_v42 = vsub.f32 %v6095_v10, %v5207_v32  ;;  %v6153_v4 = vcvt.s32.f32 %v1765_v3 }
 0x1e4   : > { %v6157_v39 = vsel %vm6116_vm8, %v1528_v8, -1e+30  ;;  %v6161_v34 = vsel %vm6130_vm0, %v1530_v48, -1e+30  ;;  %v6171_v43 = vand.u32 2147483647, %v2050_v20  ;;  %v1861_v3 = vsub.f32 %v6122_v1, %v5196_v24 }
 0x1e5   : > { %8268 = vst [vmem:[#allocation79_spill] sm:$0xff] %v6153_v4  ;;  %8269 = vst [vmem:[#allocation80_spill] sm:$0xff] %v6157_v39  ;;  %v2748_v8 = vmax.f32 %v6157_v39, %v6161_v34  ;;  %vm1975_vm11 = vcmp.le.f32.partialorder %v5881_v58, 2.0  ;;  %vm2167_vm12 = vcmp.le.f32.partialorder %v5887_v0, 2.0  ;;  %v6187_v53 = vand.u32 2147483647, %v1859_v52  ;;  %v1536_v39 = vpop.f32.mrf.mxu0 }
 0x1e6   : > { %8270 = vst [vmem:[#allocation81_spill] sm:$0xff] %v6161_v34  ;;  %v6189_v20 = vcvt.s32.f32 %v1702_v21  ;;  %v1669_v56 = vadd.s32 216, %v5180_v6  ;;  %vm1976_vm8 = vcmp.le.f32.partialorder %v5889_v9, 2.0  ;;  %vm2168_vm0 = vcmp.le.f32.partialorder %v5894_v14, 2.0  ;;  %vm6322_vm9 = vmand %vm1975_vm11, %vm2167_vm12 }
 0x1e7   : > { %v6194_v27 = vand.u32 2147483647, %v2051_v22  ;;  %v1862_v17 = vsub.f32 %v6122_v1, %v5205_v30  ;;  %v6198_v48 = vcvt.s32.f32 %v1766_v31  ;;  %v1703_v34 = vshra.s32 %v1668_v57, 4  ;;  %2749 = vmax.xlane.f32.xlu1 %v2748_v8 }
 0x1e8   : > { %v6200_v52 = vand.u32 2147483647, %v1860_v37  ;;  %v6202_v21 = vand.u32 2147483647, %v2052_v42  ;;  %v2053_v10 = vsub.f32 %v6153_v4, %v5202_v28  ;;  %v1767_v12 = vand.u32 15, %v1668_v57  ;;  %v1540_v57 = vpop.f32.mrf.mxu0 }
 0x1e9   : > { %8275 = vst [vmem:[#allocation82_spill] sm:$0xff] %v6198_v48  ;;  %v6208_v22 = vsel %vm6167_vm7, %v1534_v38, -1e+30  ;;  %v6212_v1 = vsel %vm6181_vm4, %v1536_v39, -1e+30  ;;  %v2054_v31 = vsub.f32 %v6153_v4, %v5207_v32  ;;  %vm1977_vm1 = vcmp.le.f32.partialorder %v5918_v55, 2.0 }
 0x1ea   : > { %8276 = vst [vmem:[#allocation83_spill] sm:$0xff] %v6208_v22  ;;  %8277 = vst [vmem:[#allocation84_spill] sm:$0xff] %v6212_v1  ;;  %v6222_v42 = vand.u32 2147483647, %v1861_v3  ;;  %v2751_v47 = vmax.f32 %v6208_v22, %v6212_v1  ;;  %vm2169_vm2 = vcmp.le.f32.partialorder %v5934_v29, 2.0  ;;  %v1863_v35 = vsub.f32 %v6189_v20, %v5196_v24  ;;  %v1542_v33 = vpop.f32.mrf.mxu0 }
 0x1eb   : > { %v1704_v39 = vshra.s32 %v1669_v56, 4  ;;  %v6241_v3 = vadd.s32 224, %v5180_v6  ;;  %vm1978_vm7 = vcmp.le.f32.partialorder %v5941_v2, 2.0  ;;  %vm2170_vm4 = vcmp.le.f32.partialorder %v5947_v51, 2.0 }
 0x1ec   : > { %v6245_v11 = vand.u32 2147483647, %v1862_v17  ;;  %v2055_v26 = vsub.f32 %v6198_v48, %v5202_v28  ;;  %v1864_v38 = vsub.f32 %v6189_v20, %v5205_v30  ;;  %v6251_v8 = vcvt.s32.f32 %v1703_v34  ;;  %2752 = vmax.xlane.f32.xlu0 %v2751_v47 }
 0x1ed   : > { %v6253_v1 = vand.u32 2147483647, %v2053_v10  ;;  %v2056_v22 = vsub.f32 %v6198_v48, %v5207_v32  ;;  %v6257_v4 = vcvt.s32.f32 %v1767_v12  ;;  %v1768_v44 = vand.u32 15, %v1669_v56  ;;  %v1546_v12 = vpop.f32.mrf.mxu0 }
 0x1ee   : > { %8282 = vst [vmem:[#allocation85_spill] sm:$0xff] %v6251_v8  ;;  %v6261_v17 = vsel %vm6218_vm14, %v1540_v57, -1e+30  ;;  %v6265_v60 = vsel %vm6232_vm10, %v1542_v33, -1e+30  ;;  %vm1979_vm14 = vcmp.le.f32.partialorder %v5949_v49, 2.0  ;;  %v6291_v63 = vcvt.s32.f32 %v1704_v39  ;;  %vm6334_vm10 = vmand %vm1976_vm8, %vm2168_vm0 }
 0x1ef   : > { %8283 = vst [vmem:[#allocation86_spill] sm:$0xff] %v6257_v4  ;;  %8284 = vst [vmem:[#allocation87_spill] sm:$0xff] %v6261_v17  ;;  %v6275_v34 = vand.u32 2147483647, %v2054_v31  ;;  %v2754_v56 = vmax.f32 %v6261_v17, %v6265_v60  ;;  %vm2171_vm3 = vcmp.le.f32.partialorder %v5969_v18, 2.0  ;;  %v1705_v31 = vshra.s32 %v6241_v3, 4  ;;  %v1548_v41 = vpop.f32.mrf.mxu0 }
 0x1f0   : > { %8285 = vst [vmem:[#allocation88_spill] sm:$0xff] %v6265_v60  ;;  %v6289_v36 = vand.u32 2147483647, %v1863_v35  ;;  %8290 = vst [vmem:[#allocation89_spill] sm:$0xff] %v6291_v63  ;;  %vm1980_vm13 = vcmp.le.f32.partialorder %v5987_v25, 2.0  ;;  %v1865_v50 = vsub.f32 %v6251_v8, %v5196_v24  ;;  %v1671_v47 = vadd.s32 232, %v5180_v6 }
 0x1f1   : > { %v6295_v57 = vand.u32 2147483647, %v2055_v26  ;;  %v6297_v5 = vand.u32 2147483647, %v1864_v38  ;;  %2755 = vmax.xlane.f32.xlu1 %v2754_v56  ;;  %v6302_v33 = vand.u32 2147483647, %v2056_v22  ;;  %v2057_v35 = vsub.f32 %v6257_v4, %v5202_v28  ;;  %v1552_v56 = vpop.f32.mrf.mxu0  ;;  %vm6373_vm8 = vmand %vm1977_vm1, %vm2169_vm2 }
 0x1f2   : > { %v1866_v39 = vsub.f32 %v6251_v8, %v5205_v30  ;;  %v6308_v60 = vcvt.s32.f32 %v1768_v44  ;;  %v6312_v26 = vsel %vm6271_vm5, %v1546_v12, -1e+30  ;;  %v6316_v38 = vsel %vm6283_vm6, %v1548_v41, -1e+30  ;;  %vm6385_vm0 = vmand %vm1978_vm7, %vm2170_vm4 }
 0x1f3   : > { %8292 = vst [vmem:[#allocation91_spill] sm:$0xff] %v6312_v26  ;;  %8293 = vst [vmem:[#allocation92_spill] sm:$0xff] %v6316_v38  ;;  %vm2172_vm15 = vcmp.le.f32.partialorder %v5989_v7, 2.0  ;;  %v1769_v44 = vand.u32 15, %v6241_v3  ;;  %v2757_v10 = vmax.f32 %v6312_v26, %v6316_v38  ;;  %vm1981_vm11 = vcmp.le.f32.partialorder %v5993_v46, 2.0  ;;  %v1554_v38 = vpop.f32.mrf.mxu0 }
 0x1f4   : > { %8291 = vst [vmem:[#allocation90_spill] sm:$0xff] %v6308_v60  ;;  %vm2173_vm12 = vcmp.le.f32.partialorder %v6033_v62, 2.0  ;;  %v2058_v58 = vsub.f32 %v6257_v4, %v5207_v32  ;;  %v1867_v3 = vsub.f32 %v6291_v63, %v5196_v24  ;;  %v6344_v12 = vcvt.s32.f32 %v1705_v31  ;;  %vm6421_vm7 = vmand %vm1979_vm14, %vm2171_vm3 }
 0x1f5   : > { %vm1982_vm5 = vcmp.le.f32.partialorder %v6044_v45, 2.0  ;;  %vm2174_vm6 = vcmp.le.f32.partialorder %v6046_v61, 2.0  ;;  %v6348_v14 = vand.u32 2147483647, %v1865_v50  ;;  %v1868_v9 = vsub.f32 %v6291_v63, %v5205_v30  ;;  %2758 = vmax.xlane.f32.xlu0 %v2757_v10  ;;  %vm6435_vm4 = vmand %vm1980_vm13, %vm2172_vm15 }
 0x1f6   : > { %8298 = vst [vmem:[#allocation93_spill] sm:$0xff] %v6344_v12  ;;  %v1706_v37 = vshra.s32 %v1671_v47, 4  ;;  %v1672_v41 = vadd.s32 240, %v5180_v6  ;;  %v6353_v26 = vand.u32 2147483647, %v2057_v35  ;;  %v2059_v31 = vsub.f32 %v6308_v60, %v5202_v28  ;;  %vm6472_vm13 = vmand %vm1981_vm11, %vm2173_vm12 }
 0x1f7   : > { %v6355_v4 = vand.u32 2147483647, %v1866_v39  ;;  %v2060_v8 = vsub.f32 %v6308_v60, %v5207_v32  ;;  %v6363_v50 = vsel %vm6322_vm9, %v1552_v56, -1e+30  ;;  %v6367_v63 = vsel %vm6334_vm10, %v1554_v38, -1e+30  ;;  %v1558_v60 = vpop.f32.mrf.mxu0  ;;  %vm6486_vm15 = vmand %vm1982_vm5, %vm2174_vm6 }
 0x1f8   : > { %8299 = vst [vmem:[#allocation94_spill] sm:$0xff] %v6363_v50  ;;  %8300 = vst [vmem:[#allocation95_spill] sm:$0xff] %v6367_v63  ;;  %v6377_v39 = vcvt.s32.f32 %v1769_v44  ;;  %v1770_v10 = vand.u32 15, %v1671_v47  ;;  %v2760_v22 = vmax.f32 %v6363_v50, %v6367_v63  ;;  %vm1983_vm1 = vcmp.le.f32.partialorder %v6089_v13, 2.0  ;;  %v8307_v50 = vld [vmem:[#allocation5_spill] sm:$0xff] }
 0x1f9   : > { %vm2175_vm2 = vcmp.le.f32.partialorder %v6097_v40, 2.0  ;;  %v6391_v55 = vand.u32 2147483647, %v2058_v58  ;;  %v6393_v29 = vand.u32 2147483647, %v1867_v3  ;;  %v1869_v47 = vsub.f32 %v6344_v12, %v5196_v24  ;;  %v1560_v0 = vpop.f32.mrf.mxu0 }
 0x1fa   : > { %8303 = vst [vmem:[#allocation96_spill] sm:$0xff] %v6377_v39  ;;  %vm1984_vm9 = vcmp.le.f32.partialorder %v6091_v54, 2.0  ;;  %vm2176_vm10 = vcmp.le.f32.partialorder %v6099_v59, 2.0  ;;  %v6399_v51 = vand.u32 2147483647, %v1868_v9  ;;  %v6401_v2 = vcvt.s32.f32 %v1706_v37  ;;  %2761 = vmax.xlane.f32.xlu1 %v2760_v22  ;;  %vm6523_vm5 = vmand %vm1983_vm1, %vm2175_vm2 }
 0x1fb   : > { %v1707_v44 = vshra.s32 %v1672_v41, 4  ;;  %v1771_v56 = vand.u32 15, %v1672_v41  ;;  %v6403_v63 = vand.u32 2147483647, %v2059_v31  ;;  %v6405_v58 = vand.u32 2147483647, %v2060_v8  ;;  %v1564_v31 = vpop.f32.mrf.mxu0  ;;  %vm6537_vm6 = vmand %vm1984_vm9, %vm2176_vm10 }
 0x1fc   : > { %8306 = vst [vmem:[#allocation97_spill] sm:$0xff] %v6401_v2  ;;  %v2293_v3 = vsub.f32 15.0, %v5194_v23  ;;  %v2453_v17 = vsub.f32 15.0, %v8307_v50  ;;  %v6411_v48 = vsel %vm6373_vm8, %v1558_v60, -1e+30  ;;  %v2061_v8 = vsub.f32 %v6377_v39, %v5202_v28 }
 0x1fd   : > { %8308 = vst [vmem:[#allocation5_spill] sm:$0xff] %v6411_v48  ;;  %v6415_v9 = vsel %vm6385_vm0, %v1560_v0, -1e+30  ;;  %v6427_v41 = vcvt.s32.f32 %v1770_v10  ;;  %vm1985_vm14 = vcmp.le.f32.partialorder %v6136_v15, 2.0  ;;  %vm2177_vm3 = vcmp.le.f32.partialorder %v6142_v16, 2.0  ;;  %v8336_v16 = vld [vmem:[#allocation8_spill] sm:$0xff] }
 0x1fe   : > { %8309 = vst [vmem:[#allocation98_spill] sm:$0xff] %v6415_v9  ;;  %v2763_v60 = vmax.f32 %v6411_v48, %v6415_v9  ;;  %v6441_v49 = vand.u32 2147483647, %v1869_v47  ;;  %v1870_v35 = vsub.f32 %v6344_v12, %v5205_v30  ;;  %v2062_v10 = vsub.f32 %v6377_v39, %v5207_v32  ;;  %v1566_v47 = vpop.f32.mrf.mxu0  ;;  %vm6572_vm9 = vmand %vm1985_vm14, %vm2177_vm3 }
 0x1ff   : > { %8312 = vst [vmem:[#allocation99_spill] sm:$0xff] %v6427_v41  ;;  %vm1986_vm8 = vcmp.le.f32.partialorder %v6147_v19, 2.0  ;;  %vm2178_vm0 = vcmp.le.f32.partialorder %v6171_v43, 2.0  ;;  %v1871_v25 = vsub.f32 %v6401_v2, %v5196_v24  ;;  %v6451_v7 = vcvt.s32.f32 %v1707_v44 }
 0x200   : > { %v6453_v22 = vcvt.s32.f32 %v1771_v56  ;;  %v6456_v38 = vadd.s32 248, %v5180_v6  ;;  %2764 = vmax.xlane.f32.xlu0 %v2763_v60  ;;  %v2261_v0 = vmin.f32 %v5194_v23, 2.0  ;;  %v2325_v12 = vmin.f32 %v2293_v3, 2.0  ;;  %vm6584_vm10 = vmand %vm1986_vm8, %vm2178_vm0 }
 0x201   : > { %8315 = vst [vmem:[#allocation100_spill] sm:$0xff] %v6451_v7  ;;  %v2421_v39 = vmin.f32 %v8307_v50, 2.0  ;;  %v2485_v9 = vmin.f32 %v2453_v17, 2.0  ;;  %v6462_v48 = vsel %vm6421_vm7, %v1564_v31, -1e+30  ;;  %v2063_v17 = vsub.f32 %v6427_v41, %v5202_v28  ;;  %v1570_v50 = vpop.f32.mrf.mxu0 }
 0x202   : > { %8316 = vst [vmem:[#allocation101_spill] sm:$0xff] %v6453_v22  ;;  %v6466_v44 = vsel %vm6435_vm4, %v1566_v47, -1e+30  ;;  %v6476_v23 = vand.u32 2147483647, %v2061_v8  ;;  %vm1987_vm11 = vcmp.le.f32.partialorder %v6187_v53, 2.0  ;;  %v1872_v3 = vsub.f32 %v6401_v2, %v5205_v30 }
 0x203   : > { %8317 = vst [vmem:[#allocation102_spill] sm:$0xff] %v6466_v44  ;;  %v2766_v56 = vmax.f32 %v6462_v48, %v6466_v44  ;;  %vm2179_vm12 = vcmp.le.f32.partialorder %v6194_v27, 2.0  ;;  %v6492_v46 = vand.u32 2147483647, %v1870_v35  ;;  %v2064_v37 = vsub.f32 %v6427_v41, %v5207_v32  ;;  %v1572_v60 = vpop.f32.mrf.mxu0 }
 0x204   : > { %vm1988_vm7 = vcmp.le.f32.partialorder %v6200_v52, 2.0  ;;  %vm2180_vm4 = vcmp.le.f32.partialorder %v6202_v21, 2.0  ;;  %v6500_v45 = vand.u32 2147483647, %v2062_v10  ;;  %v1873_v61 = vsub.f32 %v6451_v7, %v5196_v24  ;;  %vm6615_vm8 = vmand %vm1987_vm11, %vm2179_vm12 }
 0x205   : > { %v1874_v8 = vsub.f32 %v6451_v7, %v5205_v30  ;;  %v1708_v31 = vshra.s32 %v6456_v38, 4  ;;  %2767 = vmax.xlane.f32.xlu1 %v2766_v56  ;;  %v6507_v18 = vand.u32 2147483647, %v1871_v25  ;;  %v2065_v35 = vsub.f32 %v6453_v22, %v5202_v28  ;;  %v8329_v7 = vld [vmem:[#allocation7_spill] sm:$0xff]  ;;  %vm6627_vm0 = vmand %vm1988_vm7, %vm2180_vm4 }
 0x206   : > { %v2357_v47 = vadd.f32 %v2325_v12, %v2261_v0  ;;  %v2517_v41 = vadd.f32 %v2485_v9, %v2421_v39  ;;  %v6513_v10 = vsel %vm6472_vm13, %v1570_v50, -1e+30  ;;  %v6517_v2 = vsel %vm6486_vm15, %v1572_v60, -1e+30  ;;  %v1576_v39 = vpop.f32.mrf.mxu0  ;;  %v8328_v50 = vld [vmem:[#allocation6_spill] sm:$0xff] }
 0x207   : > { %8322 = vst [vmem:[#allocation103_spill] sm:$0xff] %v6513_v10  ;;  %8323 = vst [vmem:[#allocation104_spill] sm:$0xff] %v6517_v2  ;;  %v6527_v56 = vand.u32 2147483647, %v2063_v17  ;;  %v2066_v12 = vsub.f32 %v6453_v22, %v5207_v32  ;;  %v2769_v9 = vmax.f32 %v6513_v10, %v6517_v2  ;;  %vm1989_vm1 = vcmp.le.f32.partialorder %v6222_v42, 2.0 }
 0x208   : > { %vm2181_vm2 = vcmp.le.f32.partialorder %v6253_v1, 2.0  ;;  %v6543_v13 = vand.u32 2147483647, %v1872_v3  ;;  %v6545_v0 = vand.u32 2147483647, %v2064_v37  ;;  %v1772_v6 = vand.u32 15, %v6456_v38  ;;  %v1578_v60 = vpop.f32.mrf.mxu0 }
 0x209   : > { %vm1990_vm13 = vcmp.le.f32.partialorder %v6245_v11, 2.0  ;;  %vm2182_vm15 = vcmp.le.f32.partialorder %v6275_v34, 2.0  ;;  %v6550_v59 = vand.u32 2147483647, %v1873_v61  ;;  %v6552_v54 = vand.u32 2147483647, %v1874_v8  ;;  %2770 = vmax.xlane.f32.xlu0 %v2769_v9  ;;  %vm6659_vm7 = vmand %vm1989_vm1, %vm2181_vm2 }
 0x20a   : > { %v6554_v17 = vcvt.s32.f32 %v1708_v31  ;;  %v2294_v62 = vsub.f32 15.0, %v8328_v50  ;;  %v6557_v3 = vand.u32 2147483647, %v2065_v35  ;;  %v2389_v37 = vadd.f32 1.0, %v2357_v47  ;;  %vm6669_vm4 = vmand %vm1990_vm13, %vm2182_vm15  ;;  %v8349_v11 = vld [vmem:[#allocation12_spill] sm:$0xff] }
 0x20b   : > { %v2549_v22 = vadd.f32 1.0, %v2517_v41  ;;  %v2454_v38 = vsub.f32 15.0, %v8329_v7  ;;  %v6562_v2 = vsel %vm6523_vm5, %v1576_v39, -1e+30  ;;  %v6566_v61 = vsel %vm6537_vm6, %v1578_v60, -1e+30  ;;  %v1582_v41 = vpop.f32.mrf.mxu0 }
 0x20c   : > { %8330 = vst [vmem:[#allocation6_spill] sm:$0xff] %v6562_v2  ;;  %8331 = vst [vmem:[#allocation7_spill] sm:$0xff] %v6566_v61  ;;  %v6576_v31 = vand.u32 2147483647, %v2066_v12  ;;  %v2772_v35 = vmax.f32 %v6562_v2, %v6566_v61  ;;  %vm1991_vm5 = vcmp.le.f32.partialorder %v6289_v36, 2.0  ;;  %vm2183_vm14 = vcmp.le.f32.partialorder %v6295_v57, 2.0 }
 0x20d   : > { %v6590_v15 = vcvt.s32.f32 %v1772_v6  ;;  %v2295_v25 = vsub.f32 15.0, %v8336_v16  ;;  %v8337_v12 = vld [vmem:[#allocation9_spill] sm:$0xff]  ;;  %vm1992_vm3 = vcmp.le.f32.partialorder %v6297_v5, 2.0  ;;  %vm2184_vm6 = vcmp.le.f32.partialorder %v6302_v33, 2.0  ;;  %v1584_v40 = vpop.f32.mrf.mxu0  ;;  %vm6703_vm15 = vmand %vm1991_vm5, %vm2183_vm14 }
 0x20e   : > { %v2455_v39 = vsub.f32 15.0, %v8337_v12  ;;  %v1875_v19 = vsub.f32 %v6554_v17, %v5196_v24  ;;  %v2262_v43 = vmin.f32 %v8328_v50, 2.0  ;;  %v2326_v9 = vmin.f32 %v2294_v62, 2.0  ;;  %2773 = vmax.xlane.f32.xlu1 %v2772_v35  ;;  %v8342_v50 = vld [vmem:[#allocation11_spill] sm:$0xff] }
 0x20f   : > { %v6599_v60 = vmul.f32 %v2549_v22, %v2389_v37  ;;  %v2422_v6 = vmin.f32 %v8329_v7, 2.0  ;;  %v2486_v61 = vmin.f32 %v2454_v38, 2.0  ;;  %v2263_v2 = vmin.f32 %v8336_v16, 2.0  ;;  %v8341_v7 = vld [vmem:[#allocation10_spill] sm:$0xff]  ;;  %v1588_v37 = vpop.f32.mrf.mxu0 }
 0x210   : > { %v6605_v10 = vsel %vm6572_vm9, %v1582_v41, -1e+30  ;;  %v6609_v44 = vsel %vm6584_vm10, %v1584_v40, -1e+30  ;;  %v2296_v22 = vsub.f32 15.0, %v8341_v7  ;;  %v2456_v62 = vsub.f32 15.0, %v8342_v50 }
 0x211   : > { %8338 = vst [vmem:[#allocation8_spill] sm:$0xff] %v6599_v60  ;;  %v2775_v38 = vmax.f32 %v6605_v10, %v6609_v44  ;;  %vm1993_vm11 = vcmp.le.f32.partialorder %v6348_v14, 2.0  ;;  %vm2185_vm12 = vcmp.le.f32.partialorder %v6353_v26, 2.0  ;;  %v2327_v53 = vmin.f32 %v2295_v25, 2.0  ;;  %v1590_v16 = vpop.f32.mrf.mxu0 }
 0x212   : > { %v2423_v8 = vmin.f32 %v8337_v12, 2.0  ;;  %v2487_v41 = vmin.f32 %v2455_v39, 2.0  ;;  %vm1994_vm9 = vcmp.le.f32.partialorder %v6355_v4, 2.0  ;;  %vm2186_vm10 = vcmp.le.f32.partialorder %v6391_v55, 2.0 }
 0x213   : > { %v6636_v35 = vand.u32 2147483647, %v1875_v19  ;;  %v2067_v52 = vsub.f32 %v6590_v15, %v5202_v28  ;;  %v1876_v21 = vsub.f32 %v6554_v17, %v5205_v30  ;;  %2776 = vmax.xlane.f32.xlu0 %v2775_v38  ;;  %v8065_v25 = vsub.f32 25.0, %v6599_v60  ;;  %v8350_v38 = vld [vmem:[#allocation13_spill] sm:$0xff] }
 0x214   : > { %v2358_v12 = vadd.f32 %v2326_v9, %v2262_v43  ;;  %v2264_v39 = vmin.f32 %v8341_v7, 2.0  ;;  %v2424_v40 = vmin.f32 %v8342_v50, 2.0  ;;  %v6649_v19 = vsel %vm6615_vm8, %v1588_v37, -1e+30  ;;  %v1594_v7 = vpop.f32.mrf.mxu0 }
 0x215   : > { %v6653_v28 = vsel %vm6627_vm0, %v1590_v16, -1e+30  ;;  %v2328_v43 = vmin.f32 %v2296_v22, 2.0  ;;  %v2488_v9 = vmin.f32 %v2456_v62, 2.0  ;;  %vm1995_vm8 = vcmp.le.f32.partialorder %v6393_v29, 2.0 }
 0x216   : > { %v2778_v24 = vmax.f32 %v6649_v19, %v6653_v28  ;;  %vm2187_vm1 = vcmp.le.f32.partialorder %v6403_v63, 2.0  ;;  %v2518_v1 = vadd.f32 %v2486_v61, %v2422_v6  ;;  %v2359_v42 = vadd.f32 %v2327_v53, %v2263_v2  ;;  %v1596_v16 = vpop.f32.mrf.mxu0  ;;  %v8353_v6 = vld [vmem:[#allocation14_spill] sm:$0xff] }
 0x217   : > { %v2519_v22 = vadd.f32 %v2487_v41, %v2423_v8  ;;  %vm2188_vm0 = vcmp.le.f32.partialorder %v6405_v58, 2.0  ;;  %v6677_v62 = vand.u32 2147483647, %v2067_v52  ;;  %v6679_v34 = vand.u32 2147483647, %v1876_v21  ;;  %v8354_v8 = vld [vmem:[#allocation15_spill] sm:$0xff] }
 0x218   : > { %v2297_v37 = vsub.f32 15.0, %v8349_v11  ;;  %v2457_v27 = vsub.f32 15.0, %v8350_v38  ;;  %2779 = vmax.xlane.f32.xlu1 %v2778_v24  ;;  %vm6685_vm13 = vcmp.gt.f32.partialorder %v8065_v25, 0.0  ;;  %v2390_v2 = vadd.f32 1.0, %v2358_v12  ;;  %v1600_v47 = vpop.f32.mrf.mxu0 }
 0x219   : > { %v2298_v53 = vsub.f32 15.0, %v8353_v6  ;;  %v2458_v41 = vsub.f32 15.0, %v8354_v8  ;;  %v6693_v52 = vsel %vm6659_vm7, %v1594_v7, -1e+30  ;;  %v6697_v21 = vsel %vm6669_vm4, %v1596_v16, -1e+30  ;;  %vm6713_vm7 = vmand %vm1992_vm3, %vm2184_vm6 }
 0x21a   : > { %8355 = vst [vmem:[#allocation9_spill] sm:$0xff] %v6697_v21  ;;  %v2360_v12 = vadd.f32 %v2328_v43, %v2264_v39  ;;  %v2520_v25 = vadd.f32 %v2488_v9, %v2424_v40  ;;  %v2781_v30 = vmax.f32 %v6693_v52, %v6697_v21  ;;  %vm1997_vm4 = vcmp.le.f32.partialorder %v6441_v49, 2.0  ;;  %v1602_v9 = vpop.f32.mrf.mxu0  ;;  %vm6737_vm3 = vmand %vm1993_vm11, %vm2185_vm12 }
 0x21b   : > { %vm2189_vm5 = vcmp.le.f32.partialorder %v6476_v23, 2.0  ;;  %v2550_v36 = vadd.f32 1.0, %v2518_v1  ;;  %v2391_v57 = vadd.f32 1.0, %v2359_v42  ;;  %v2551_v39 = vadd.f32 1.0, %v2519_v22  ;;  %vm6747_vm6 = vmand %vm1994_vm9, %vm2186_vm10 }
 0x21c   : > { %vm1998_vm14 = vcmp.le.f32.partialorder %v6492_v46, 2.0  ;;  %vm2190_vm2 = vcmp.le.f32.partialorder %v6500_v45, 2.0  ;;  %v2265_v40 = vmin.f32 %v8349_v11, 2.0  ;;  %v2329_v33 = vmin.f32 %v2297_v37, 2.0  ;;  %2782 = vmax.xlane.f32.xlu0 %v2781_v30  ;;  %v8369_v30 = vld [vmem:[#allocation18_spill] sm:$0xff]  ;;  %vm6784_vm10 = vmand %vm1995_vm8, %vm2187_vm1 }
 0x21d   : > { %v2425_v5 = vmin.f32 %v8350_v38, 2.0  ;;  %v2489_v43 = vmin.f32 %v2457_v27, 2.0  ;;  %v2266_v50 = vmin.f32 %v8353_v6, 2.0  ;;  %v2330_v16 = vmin.f32 %v2298_v53, 2.0  ;;  %v1606_v27 = vpop.f32.mrf.mxu0 }
 0x21e   : > { %v2426_v60 = vmin.f32 %v8354_v8, 2.0  ;;  %v2490_v1 = vmin.f32 %v2458_v41, 2.0  ;;  %v6727_v42 = vsel %vm6703_vm15, %v1600_v47, -1e+30  ;;  %v6731_v22 = vsel %vm6713_vm7, %v1602_v9, -1e+30 }
 0x21f   : > { %8360 = vst [vmem:[#allocation10_spill] sm:$0xff] %v6727_v42  ;;  %8361 = vst [vmem:[#allocation11_spill] sm:$0xff] %v6731_v22  ;;  %v2392_v37 = vadd.f32 1.0, %v2360_v12  ;;  %v2552_v38 = vadd.f32 1.0, %v2520_v25  ;;  %v2784_v6 = vmax.f32 %v6727_v42, %v6731_v22  ;;  %vm1999_vm15 = vcmp.le.f32.partialorder %v6507_v18, 2.0  ;;  %v8367_v25 = vld [vmem:[#allocation16_spill] sm:$0xff]  ;;  %v1608_v7 = vpop.f32.mrf.mxu0 }
 0x220   : > { %vm2191_vm11 = vcmp.le.f32.partialorder %v6527_v56, 2.0  ;;  %v8366_v26 = vsub.f32 %v6590_v15, %v5207_v32  ;;  %v2299_v53 = vsub.f32 15.0, %v8367_v25  ;;  %v8368_v8 = vld [vmem:[#allocation17_spill] sm:$0xff]  ;;  %vm2000_vm12 = vcmp.le.f32.partialorder %v6543_v13, 2.0  ;;  %v8389_v56 = vld [vmem:[#allocation22_spill] sm:$0xff]  ;;  %v8394_v13 = vld [vmem:[#allocation27_spill] sm:$0xff] }
 0x221   : > { %v2459_v41 = vsub.f32 15.0, %v8368_v8  ;;  %vm2192_vm9 = vcmp.le.f32.partialorder %v6545_v0, 2.0  ;;  %v8070_v4 = vmov -1e+30   ;;  %v2361_v24 = vadd.f32 %v2329_v33, %v2265_v40  ;;  %2785 = vmax.xlane.f32.xlu1 %v2784_v6  ;;  %v8393_v0 = vld [vmem:[#allocation26_spill] sm:$0xff] }
 0x222   : > { %v6756_v14 = vand.u32 2147483647, %v8366_v26  ;;  %v6765_v55 = vsel %vm6685_vm13, 0.0, %v8070_v4  ;;  %v2521_v12 = vadd.f32 %v2489_v43, %v2425_v5  ;;  %v2300_v32 = vsub.f32 15.0, %v8369_v30 }
 0x223   : > { %v6768_v9 = vmul.f32 %v2550_v36, %v2390_v2  ;;  %v6770_v26 = vmul.f32 %v2551_v39, %v2391_v57  ;;  %v2362_v22 = vadd.f32 %v2330_v16, %v2266_v50  ;;  %v2522_v42 = vadd.f32 %v2490_v1, %v2426_v60  ;;  %v1612_v36 = vpop.f32.mrf.mxu0 }
 0x224   : > { %v6774_v21 = vsel %vm6737_vm3, %v1606_v27, -1e+30  ;;  %v6778_v61 = vsel %vm6747_vm6, %v1608_v7, -1e+30  ;;  %v6788_v2 = vmul.f32 %v2552_v38, %v2392_v37  ;;  %v2267_v60 = vmin.f32 %v8367_v25, 2.0  ;;  %v8378_v37 = vld [vmem:[#allocation19_spill] sm:$0xff] }
 0x225   : > { %8370 = vst [vmem:[#allocation12_spill] sm:$0xff] %v6768_v9  ;;  %8371 = vst [vmem:[#allocation13_spill] sm:$0xff] %v6770_v26  ;;  %v2787_v57 = vmax.f32 %v6774_v21, %v6778_v61  ;;  %vm8375_vm13 = vcmp.le.f32.partialorder %v6399_v51, 2.0  ;;  %vm2001_vm8 = vcmp.le.f32.partialorder %v6550_v59, 2.0  ;;  %vm2193_vm1 = vcmp.le.f32.partialorder %v6557_v3, 2.0  ;;  %v1614_v50 = vpop.f32.mrf.mxu0  ;;  %v8382_v25 = vld [vmem:[#allocation21_spill] sm:$0xff] }
 0x226   : > { %8374 = vst [vmem:[#allocation14_spill] sm:$0xff] %v6788_v2  ;;  %vm6797_vm7 = vmand %vm8375_vm13, %vm2188_vm0  ;;  %v2331_v29 = vmin.f32 %v2299_v53, 2.0  ;;  %v2427_v39 = vmin.f32 %v8368_v8, 2.0  ;;  %v2491_v33 = vmin.f32 %v2459_v41, 2.0  ;;  %vm2002_vm3 = vcmp.le.f32.partialorder %v6552_v54, 2.0 }
 0x227   : > { %vm2194_vm6 = vcmp.le.f32.partialorder %v6576_v31, 2.0  ;;  %v2393_v5 = vadd.f32 1.0, %v2361_v24  ;;  %v2553_v58 = vadd.f32 1.0, %v2521_v12  ;;  %v2268_v51 = vmin.f32 %v8369_v30, 2.0  ;;  %2788 = vmax.xlane.f32.xlu0 %v2787_v57  ;;  %vm6821_vm0 = vmand %vm1997_vm4, %vm2189_vm5  ;;  %v1618_v8 = vpop.f32.mrf.mxu0 }
 0x228   : > { %v2332_v43 = vmin.f32 %v2300_v32, 2.0  ;;  %v2394_v1 = vadd.f32 1.0, %v2362_v22  ;;  %v2554_v11 = vadd.f32 1.0, %v2522_v42  ;;  %v2460_v38 = vsub.f32 15.0, %v8378_v37  ;;  %v8381_v22 = vld [vmem:[#allocation20_spill] sm:$0xff] }
 0x229   : > { %v6811_v27 = vsel %vm6784_vm10, %v1612_v36, -1e+30  ;;  %v6815_v6 = vsel %vm6797_vm7, %v1614_v50, -1e+30  ;;  %v2301_v42 = vsub.f32 15.0, %v8381_v22  ;;  %v2461_v53 = vsub.f32 15.0, %v8382_v25  ;;  %vm6833_vm10 = vmand %vm1998_vm14, %vm2190_vm2  ;;  %v1620_v7 = vpop.f32.mrf.mxu0 }
 0x22a   : > { %v2790_v41 = vmax.f32 %v6811_v27, %v6815_v6  ;;  %vm2003_vm4 = vcmp.le.f32.partialorder %v6636_v35, 2.0  ;;  %vm2195_vm5 = vcmp.le.f32.partialorder %v6677_v62, 2.0  ;;  %v2363_v24 = vadd.f32 %v2331_v29, %v2267_v60  ;;  %vm6862_vm2 = vmand %vm1999_vm15, %vm2191_vm11 }
 0x22b   : > { %v2523_v12 = vadd.f32 %v2491_v33, %v2427_v39  ;;  %vm2004_vm13 = vcmp.le.f32.partialorder %v6679_v34, 2.0  ;;  %vm2196_vm7 = vcmp.le.f32.partialorder %v6756_v14, 2.0  ;;  %v6843_v30 = vmul.f32 %v2553_v58, %v2393_v5  ;;  %v1624_v58 = vpop.f32.mrf.mxu0  ;;  %vm2256_vm14 = vmand %vm2000_vm12, %vm2192_vm9 }
 0x22c   : > { %v2364_v46 = vadd.f32 %v2332_v43, %v2268_v51  ;;  %v2428_v32 = vmin.f32 %v8378_v37, 2.0  ;;  %2791 = vmax.xlane.f32.xlu1 %v2790_v41  ;;  %v6846_v40 = vmul.f32 %v2554_v11, %v2394_v1  ;;  %v2492_v36 = vmin.f32 %v2460_v38, 2.0  ;;  %v8390_v11 = vld [vmem:[#allocation23_spill] sm:$0xff]  ;;  %v8391_v38 = vld [vmem:[#allocation24_spill] sm:$0xff]  ;;  %vm6889_vm15 = vmand %vm2001_vm8, %vm2193_vm1 }
 0x22d   : > { %8385 = vst [vmem:[#allocation15_spill] sm:$0xff] %v6843_v30  ;;  %v2269_v57 = vmin.f32 %v8381_v22, 2.0  ;;  %v2429_v60 = vmin.f32 %v8382_v25, 2.0  ;;  %v6852_v63 = vsel %vm6821_vm0, %v1618_v8, -1e+30  ;;  %v2333_v33 = vmin.f32 %v2301_v42, 2.0  ;;  %v1626_v25 = vpop.f32.mrf.mxu0  ;;  %vm2258_vm11 = vmand %vm2002_vm3, %vm2194_vm6 }
 0x22e   : > { %8386 = vst [vmem:[#allocation16_spill] sm:$0xff] %v6846_v40  ;;  %v6856_v29 = vsel %vm6833_vm10, %v1620_v7, -1e+30  ;;  %v2493_v5 = vmin.f32 %v2461_v53, 2.0  ;;  %v2395_v43 = vadd.f32 1.0, %v2363_v24  ;;  %v2555_v50 = vadd.f32 1.0, %v2523_v12  ;;  %vm6914_vm12 = vmand %vm2003_vm4, %vm2195_vm5 }
 0x22f   : > { %v2793_v51 = vmax.f32 %v6852_v63, %v6856_v29  ;;  %v2302_v1 = vsub.f32 15.0, %v8389_v56  ;;  %v2396_v18 = vadd.f32 1.0, %v2364_v46  ;;  %v2462_v37 = vsub.f32 15.0, %v8390_v11  ;;  %v8392_v22 = vld [vmem:[#allocation25_spill] sm:$0xff]  ;;  %vm2260_vm9 = vmand %vm2004_vm13, %vm2196_vm7 }
 0x230   : > { %v2303_v47 = vsub.f32 15.0, %v8391_v38  ;;  %v2463_v42 = vsub.f32 15.0, %v8392_v22  ;;  %v2524_v53 = vadd.f32 %v2492_v36, %v2428_v32  ;;  %v2270_v8 = vmin.f32 %v8389_v56, 2.0  ;;  %v1630_v36 = vpop.f32.mrf.mxu0 }
 0x231   : > { %2794 = vmax.xlane.f32.xlu0 %v2793_v51  ;;  %v2304_v41 = vsub.f32 15.0, %v8393_v0  ;;  %v2464_v23 = vsub.f32 15.0, %v8394_v13  ;;  %v6881_v24 = vsel %vm6862_vm2, %v1624_v58, -1e+30  ;;  %v6883_v12 = vsel %vm2256_vm14, %v1626_v25, -1e+30 }
 0x232   : > { %v2365_v32 = vadd.f32 %v2333_v33, %v2269_v57  ;;  %v2525_v7 = vadd.f32 %v2493_v5, %v2429_v60  ;;  %v2796_v51 = vmax.f32 %v6881_v24, %v6883_v12  ;;  %v2334_v39 = vmin.f32 %v2302_v1, 2.0  ;;  %v1632_v60 = vpop.f32.mrf.mxu0 }
 0x233   : > { %v2430_v3 = vmin.f32 %v8390_v11, 2.0  ;;  %v2271_v59 = vmin.f32 %v8391_v38, 2.0  ;;  %v2494_v58 = vmin.f32 %v2462_v37, 2.0  ;;  %v2335_v56 = vmin.f32 %v2303_v47, 2.0  ;;  %v8399_v37 = vld [vmem:[#allocation30_spill] sm:$0xff]  ;;  %v8400_v47 = vld [vmem:[#allocation31_spill] sm:$0xff] }
 0x234   : > { %v2431_v25 = vmin.f32 %v8392_v22, 2.0  ;;  %v2495_v57 = vmin.f32 %v2463_v42, 2.0  ;;  %2797 = vmax.xlane.f32.xlu1 %v2796_v51  ;;  %v2272_v33 = vmin.f32 %v8393_v0, 2.0  ;;  %v2336_v5 = vmin.f32 %v2304_v41, 2.0  ;;  %v1636_v42 = vpop.f32.mrf.mxu0 }
 0x235   : > { %v2432_v31 = vmin.f32 %v8394_v13, 2.0  ;;  %v2496_v4 = vmin.f32 %v2464_v23, 2.0  ;;  %v6906_v54 = vsel %vm6889_vm15, %v1630_v36, -1e+30  ;;  %v6908_v1 = vsel %vm2258_vm11, %v1632_v60, -1e+30 }
 0x236   : > { %v2305_v38 = vsub.f32 15.0, %v8399_v37  ;;  %v2465_v22 = vsub.f32 15.0, %v8400_v47  ;;  %v2799_v0 = vmax.f32 %v6906_v54, %v6908_v1  ;;  %v2556_v62 = vadd.f32 1.0, %v2524_v53  ;;  %v1638_v51 = vpop.f32.mrf.mxu0 }
 0x237   : > { %v2397_v41 = vadd.f32 1.0, %v2365_v32  ;;  %v2557_v35 = vadd.f32 1.0, %v2525_v7  ;;  %v2366_v13 = vadd.f32 %v2334_v39, %v2270_v8  ;;  %v2526_v23 = vadd.f32 %v2494_v58, %v2430_v3 }
 0x238   : > { %v2367_v46 = vadd.f32 %v2335_v56, %v2271_v59  ;;  %v2527_v36 = vadd.f32 %v2495_v57, %v2431_v25  ;;  %2800 = vmax.xlane.f32.xlu0 %v2799_v0  ;;  %v2368_v60 = vadd.f32 %v2336_v5, %v2272_v33  ;;  %v2528_v45 = vadd.f32 %v2496_v4, %v2432_v31  ;;  %v8404_v5 = vld [vmem:[#allocation32_spill] sm:$0xff] }
 0x239   : > { %v2273_v49 = vmin.f32 %v8399_v37, 2.0  ;;  %v2433_v16 = vmin.f32 %v8400_v47, 2.0  ;;  %v6930_v14 = vsel %vm6914_vm12, %v1636_v42, -1e+30  ;;  %v6932_v34 = vsel %vm2260_vm9, %v1638_v51, -1e+30 }
 0x23a   : > { %v2337_v53 = vmin.f32 %v2305_v38, 2.0  ;;  %v2497_v32 = vmin.f32 %v2465_v22, 2.0  ;;  %v2802_v8 = vmax.f32 %v6930_v14, %v6932_v34  ;;  %v6936_v7 = vmul.f32 %v2555_v50, %v2395_v43  ;;  %v8408_v37 = vld [vmem:[#allocation35_spill] sm:$0xff] }
 0x23b   : > { %v6938_v39 = vmul.f32 %v2556_v62, %v2396_v18  ;;  %v6940_v4 = vmul.f32 %v2557_v35, %v2397_v41  ;;  %v2398_v3 = vadd.f32 1.0, %v2366_v13  ;;  %v2558_v59 = vadd.f32 1.0, %v2526_v23  ;;  %v8424_v13 = vld [vmem:[#allocation40_spill] sm:$0xff] }
 0x23c   : > { %8401 = vst [vmem:[#allocation17_spill] sm:$0xff] %v6936_v7  ;;  %v2399_v58 = vadd.f32 1.0, %v2367_v46  ;;  %v2559_v56 = vadd.f32 1.0, %v2527_v36  ;;  %2803 = vmax.xlane.f32.xlu1 %v2802_v8  ;;  %v8072_v25 = vsub.f32 25.0, %v6843_v30  ;;  %v2400_v57 = vadd.f32 1.0, %v2368_v60  ;;  %v8432_v30 = vld [vmem:[#allocation47_spill] sm:$0xff] }
 0x23d   : > { %8402 = vst [vmem:[#allocation18_spill] sm:$0xff] %v6938_v39  ;;  %8403 = vst [vmem:[#allocation19_spill] sm:$0xff] %v6940_v4  ;;  %v2560_v33 = vadd.f32 1.0, %v2528_v45  ;;  %v2306_v31 = vsub.f32 15.0, %v8404_v5  ;;  %v8405_v11 = vsub.f32 25.0, %v6768_v9  ;;  %v2369_v50 = vadd.f32 %v2337_v53, %v2273_v49 }
 0x23e   : > { %v2529_v18 = vadd.f32 %v2497_v32, %v2433_v16  ;;  %v2466_v38 = vsub.f32 15.0, %v8408_v37  ;;  %v8409_v47 = vsub.f32 25.0, %v6770_v26  ;;  %v8412_v45 = vsub.f32 25.0, %v6788_v2  ;;  %v8429_v2 = vld [vmem:[#allocation46_spill] sm:$0xff] }
 0x23f   : > { %vm6946_vm8 = vcmp.gt.f32.partialorder %v8405_v11, 0.0  ;;  %v8073_v0 = vsub.f32 25.0, %v6846_v40  ;;  %v8074_v62 = vsub.f32 25.0, %v6936_v7  ;;  %v8075_v16 = vsub.f32 25.0, %v6938_v39 }
 0x240   : > { %vm6953_vm1 = vcmp.gt.f32.partialorder %v8409_v47, 0.0  ;;  %vm6959_vm3 = vcmp.gt.f32.partialorder %v8412_v45, 0.0  ;;  %v8076_v49 = vsub.f32 25.0, %v6940_v4  ;;  %v6967_v41 = vmul.f32 %v2558_v59, %v2398_v3 }
 0x241   : > { %v6969_v35 = vmul.f32 %v2559_v56, %v2399_v58  ;;  %vm6973_vm6 = vcmp.gt.f32.partialorder %v8072_v25, 0.0  ;;  %v6977_v23 = vmul.f32 %v2560_v33, %v2400_v57  ;;  %v2274_v46 = vmin.f32 %v8404_v5, 2.0 }
 0x242   : > { %8415 = vst [vmem:[#allocation20_spill] sm:$0xff] %v6967_v41  ;;  %v2338_v36 = vmin.f32 %v2306_v31, 2.0  ;;  %v2401_v51 = vadd.f32 1.0, %v2369_v50  ;;  %v2561_v60 = vadd.f32 1.0, %v2529_v18  ;;  %v2434_v53 = vmin.f32 %v8408_v37, 2.0  ;;  %v8422_v50 = vld [vmem:[#allocation36_spill] sm:$0xff] }
 0x243   : > { %8416 = vst [vmem:[#allocation21_spill] sm:$0xff] %v6969_v35  ;;  %8419 = vst [vmem:[#allocation22_spill] sm:$0xff] %v6977_v23  ;;  %v2498_v32 = vmin.f32 %v2466_v38, 2.0  ;;  %v8420_v8 = vmov -1e+30   ;;  %vm2810_vm0 = vcmp.gt.f32.partialorder %v8073_v0, 0.0  ;;  %v2711_v0 = vpop.xlane.xlu0 %2710 }
 0x244   : > { %v2838_v3 = vsel %vm6946_vm8, 0.0, %v8420_v8  ;;  %v6987_v59 = vsel %vm6953_vm1, 0.0, %v8420_v8  ;;  %vm2811_vm10 = vcmp.gt.f32.partialorder %v8074_v62, 0.0  ;;  %vm2812_vm4 = vcmp.gt.f32.partialorder %v8075_v16, 0.0  ;;  %v8423_v37 = vld [vmem:[#allocation37_spill] sm:$0xff] }
 0x245   : > { %vm2813_vm5 = vcmp.gt.f32.partialorder %v8076_v49, 0.0  ;;  %v8077_v58 = vsub.f32 25.0, %v6967_v41  ;;  %v8078_v56 = vsub.f32 25.0, %v6969_v35  ;;  %v7002_v57 = vsel %vm6959_vm3, 0.0, %v8420_v8 }
 0x246   : > { %v7007_v33 = vsel %vm6973_vm6, 0.0, %v8420_v8  ;;  %v8080_v5 = vsub.f32 25.0, %v6977_v23  ;;  %v2370_v31 = vadd.f32 %v2338_v36, %v2274_v46  ;;  %v7010_v11 = vmul.f32 %v2561_v60, %v2401_v51  ;;  %v8425_v36 = vld [vmem:[#allocation41_spill] sm:$0xff] }
 0x247   : > { %v2530_v43 = vadd.f32 %v2498_v32, %v2434_v53  ;;  %v2307_v18 = vsub.f32 15.0, %v8422_v50  ;;  %v2467_v38 = vsub.f32 15.0, %v8423_v37  ;;  %v7015_v47 = vsel %vm2810_vm0, 0.0, %v8420_v8 }
 0x248   : > { %8421 = vst [vmem:[#allocation23_spill] sm:$0xff] %v7010_v11  ;;  %v7018_v22 = vsel %vm2811_vm10, 0.0, %v8420_v8  ;;  %v7021_v45 = vsel %vm2812_vm4, 0.0, %v8420_v8  ;;  %v7024_v42 = vsel %vm2813_vm5, 0.0, %v8420_v8  ;;  %vm2814_vm13 = vcmp.gt.f32.partialorder %v8077_v58, 0.0 }
 0x249   : > { %vm2815_vm7 = vcmp.gt.f32.partialorder %v8078_v56, 0.0  ;;  %v2308_v46 = vsub.f32 15.0, %v8424_v13  ;;  %v2468_v51 = vsub.f32 15.0, %v8425_v36  ;;  %vm7034_vm2 = vcmp.gt.f32.partialorder %v8080_v5, 0.0 }
 0x24a   : > { %v2402_v53 = vadd.f32 1.0, %v2370_v31  ;;  %v2275_v32 = vmin.f32 %v8422_v50, 2.0  ;;  %v2435_v25 = vmin.f32 %v8423_v37, 2.0  ;;  %v2562_v16 = vadd.f32 1.0, %v2530_v43  ;;  %v8430_v43 = vld [vmem:[#allocation28_spill] sm:$0xff] }
 0x24b   : > { %v2339_v49 = vmin.f32 %v2307_v18, 2.0  ;;  %v2499_v58 = vmin.f32 %v2467_v38, 2.0  ;;  %v7042_v56 = vmax.f32 %v2711_v0, %v6765_v55  ;;  %v7045_v9 = vsel %vm2814_vm13, 0.0, %v8420_v8  ;;  %v8431_v55 = vld [vmem:[#allocation29_spill] sm:$0xff] }
 0x24c   : > { %v7048_v5 = vsel %vm2815_vm7, 0.0, %v8420_v8  ;;  %v2276_v31 = vmin.f32 %v8424_v13, 2.0  ;;  %v2340_v50 = vmin.f32 %v2308_v46, 2.0  ;;  %v2436_v37 = vmin.f32 %v8425_v36, 2.0  ;;  %v2714_v13 = vpop.xlane.xlu1 %2713 }
 0x24d   : > { %8428 = vst [vmem:[#allocation24_spill] sm:$0xff] %v7042_v56  ;;  %v2500_v26 = vmin.f32 %v2468_v51, 2.0  ;;  %v2309_v62 = vsub.f32 15.0, %v8429_v2  ;;  %v2901_v18 = vsub.f32 %v8430_v43, %v7042_v56  ;;  %v2902_v0 = vsub.f32 %v8431_v55, %v7042_v56 }
 0x24e   : > { %v7060_v38 = vsel %vm7034_vm2, 0.0, %v8420_v8  ;;  %v2469_v40 = vsub.f32 15.0, %v8432_v30  ;;  %v8433_v46 = vsub.f32 25.0, %v7010_v11  ;;  %v7069_v51 = vmul.f32 %v2562_v16, %v2402_v53  ;;  %v8439_v16 = vld [vmem:[#allocation34_spill] sm:$0xff] }
 0x24f   : > { %v2371_v43 = vadd.f32 %v2339_v49, %v2275_v32  ;;  %v2531_v7 = vadd.f32 %v2499_v58, %v2435_v25  ;;  %v2965_v39 = vmul.f32 1.442695, %v2901_v18  ;;  %v2967_v55 = vmul.f32 1.442695, %v2902_v0  ;;  %v8441_v32 = vld [vmem:[#allocation51_spill] sm:$0xff] }
 0x250   : > { %vm7065_vm14 = vcmp.gt.f32.partialorder %v8433_v46, 0.0  ;;  %8436 = vst [vmem:[#allocation25_spill] sm:$0xff] %v7069_v51  ;;  %v7071_v56 = vmax.f32 %v2714_v13, %v2838_v3  ;;  %v2277_v60 = vmin.f32 %v8429_v2, 2.0  ;;  %v2372_v4 = vadd.f32 %v2340_v50, %v2276_v31  ;;  %v8438_v46 = vld [vmem:[#allocation33_spill] sm:$0xff]  ;;  %v2717_v25 = vpop.xlane.xlu1 %2716 }
 0x251   : > { %v2532_v41 = vadd.f32 %v2500_v26, %v2436_v37  ;;  %v2341_v35 = vmin.f32 %v2309_v62, 2.0  ;;  %v2437_v23 = vmin.f32 %v8432_v30, 2.0  ;;  %4397 = vpow2.f32 %v2965_v39  ;;  %v8440_v26 = vld [vmem:[#allocation50_spill] sm:$0xff] }
 0x252   : > { %8437 = vst [vmem:[#allocation26_spill] sm:$0xff] %v7071_v56  ;;  %v2903_v11 = vsub.f32 %v8438_v46, %v7071_v56  ;;  %v2904_v53 = vsub.f32 %v8439_v16, %v7071_v56  ;;  %v2501_v49 = vmin.f32 %v2469_v40, 2.0  ;;  %4399 = vpow2.f32 %v2967_v55 }
 0x253   : > { %v7082_v3 = vsel %vm7065_vm14, 0.0, %v8420_v8  ;;  %v2403_v2 = vadd.f32 1.0, %v2371_v43  ;;  %v2310_v62 = vsub.f32 15.0, %v8440_v26  ;;  %v2563_v39 = vadd.f32 1.0, %v2531_v7  ;;  %v8443_v43 = vld [vmem:[#allocation38_spill] sm:$0xff]  ;;  %v8444_v7 = vld [vmem:[#allocation39_spill] sm:$0xff] }
 0x254   : > { %v2969_v58 = vmul.f32 1.442695, %v2903_v11  ;;  %v2971_v30 = vmul.f32 1.442695, %v2904_v53  ;;  %v2470_v31 = vsub.f32 15.0, %v8441_v32  ;;  %v7087_v50 = vmax.f32 %v2717_v25, %v6987_v59  ;;  %v2720_v46 = vpop.xlane.xlu1 %2719  ;;  %v8448_v25 = vld [vmem:[#allocation55_spill] sm:$0xff] }
 0x255   : > { %v2404_v37 = vadd.f32 1.0, %v2372_v4  ;;  %v2564_v18 = vadd.f32 1.0, %v2532_v41  ;;  %v2373_v0 = vadd.f32 %v2341_v35, %v2277_v60  ;;  %v2533_v13 = vadd.f32 %v2501_v49, %v2437_v23  ;;  %v8447_v60 = vld [vmem:[#allocation54_spill] sm:$0xff] }
 0x256   : > { %8442 = vst [vmem:[#allocation27_spill] sm:$0xff] %v7087_v50  ;;  %4401 = vpow2.f32 %v2969_v58  ;;  %v2278_v36 = vmin.f32 %v8440_v26, 2.0  ;;  %v2905_v11 = vsub.f32 %v8443_v43, %v7087_v50  ;;  %v2906_v55 = vsub.f32 %v8444_v7, %v7087_v50  ;;  %v8449_v58 = vld [vmem:[#allocation42_spill] sm:$0xff]  ;;  %v8450_v43 = vld [vmem:[#allocation43_spill] sm:$0xff] }
 0x257   : > { %4403 = vpow2.f32 %v2971_v30  ;;  %v2342_v16 = vmin.f32 %v2310_v62, 2.0  ;;  %v7096_v59 = vmax.f32 %v2720_v46, %v7002_v57  ;;  %v7098_v53 = vmul.f32 %v2563_v39, %v2403_v2 }
 0x258   : > { %v2438_v4 = vmin.f32 %v8441_v32, 2.0  ;;  %v2502_v41 = vmin.f32 %v2470_v31, 2.0  ;;  %v2973_v35 = vmul.f32 1.442695, %v2905_v11  ;;  %v2975_v23 = vmul.f32 1.442695, %v2906_v55  ;;  %v2723_v2 = vpop.xlane.xlu1 %2722 }
 0x259   : > { %8445 = vst [vmem:[#allocation30_spill] sm:$0xff] %v7096_v59  ;;  %8446 = vst [vmem:[#allocation31_spill] sm:$0xff] %v7098_v53  ;;  %v2311_v49 = vsub.f32 15.0, %v8447_v60  ;;  %v2471_v26 = vsub.f32 15.0, %v8448_v25  ;;  %v2907_v30 = vsub.f32 %v8449_v58, %v7096_v59  ;;  %v2908_v62 = vsub.f32 %v8450_v43, %v7096_v59 }
 0x25a   : > { %v7107_v7 = vmul.f32 %v2564_v18, %v2404_v37  ;;  %v2405_v57 = vadd.f32 1.0, %v2373_v0  ;;  %4405 = vpow2.f32 %v2973_v35  ;;  %v2565_v39 = vadd.f32 1.0, %v2533_v13  ;;  %v8452_v0 = vld [vmem:[#allocation56_spill] sm:$0xff] }
 0x25b   : > { %v2374_v32 = vadd.f32 %v2342_v16, %v2278_v36  ;;  %v2279_v31 = vmin.f32 %v8447_v60, 2.0  ;;  %4407 = vpow2.f32 %v2975_v23  ;;  %v2977_v11 = vmul.f32 1.442695, %v2907_v30  ;;  %v8453_v16 = vld [vmem:[#allocation44_spill] sm:$0xff]  ;;  %v8455_v23 = vld [vmem:[#allocation59_spill] sm:$0xff] }
 0x25c   : > { %v2979_v55 = vmul.f32 1.442695, %v2908_v62  ;;  %v2534_v46 = vadd.f32 %v2502_v41, %v2438_v4  ;;  %v7111_v40 = vmax.f32 %v2723_v2, %v7007_v33  ;;  %v2343_v58 = vmin.f32 %v2311_v49, 2.0  ;;  %v8454_v4 = vld [vmem:[#allocation45_spill] sm:$0xff]  ;;  %v2726_v41 = vpop.xlane.xlu1 %2725 }
 0x25d   : > { %v2439_v56 = vmin.f32 %v8448_v25, 2.0  ;;  %v2503_v43 = vmin.f32 %v2471_v26, 2.0  ;;  %4409 = vpow2.f32 %v2977_v11  ;;  %v2312_v13 = vsub.f32 15.0, %v8452_v0 }
 0x25e   : > { %8451 = vst [vmem:[#allocation32_spill] sm:$0xff] %v7111_v40  ;;  %v4398_v36 = vpop.eup %4397  ;;  %4411 = vpow2.f32 %v2979_v55  ;;  %v2909_v35 = vsub.f32 %v8453_v16, %v7111_v40  ;;  %v2910_v33 = vsub.f32 %v8454_v4, %v7111_v40  ;;  %v2472_v60 = vsub.f32 15.0, %v8455_v23  ;;  %v8458_v16 = vld [vmem:[#allocation48_spill] sm:$0xff]  ;;  %v8459_v4 = vld [vmem:[#allocation49_spill] sm:$0xff]  ;;  %v8494_v40 = vld [vmem:[#allocation70_spill] sm:$0xff] }
 0x25f   : > { %v4400_v49 = vpop.eup %4399  ;;  %v7123_v25 = vmax.f32 %v2726_v41, %v7015_v47  ;;  %v7125_v26 = vmul.f32 %v2565_v39, %v2405_v57  ;;  %v2406_v30 = vadd.f32 1.0, %v2374_v32  ;;  %v2566_v62 = vadd.f32 1.0, %v2534_v46  ;;  %v8477_v32 = vld [vmem:[#allocation58_spill] sm:$0xff] }
 0x260   : > { %v2981_v2 = vmul.f32 1.442695, %v2909_v35  ;;  %v2983_v11 = vmul.f32 1.442695, %v2910_v33  ;;  %3157 = vmatprep.mubr.f32.mxu1 %v4400_v49  ;;  %v2375_v55 = vadd.f32 %v2343_v58, %v2279_v31  ;;  %v2535_v18 = vadd.f32 %v2503_v43, %v2439_v56  ;;  %v2729_v57 = vpop.xlane.xlu1 %2728  ;;  %v8478_v35 = vld [vmem:[#allocation63_spill] sm:$0xff] }
 0x261   : > { %8456 = vst [vmem:[#allocation35_spill] sm:$0xff] %v7123_v25  ;;  %8457 = vst [vmem:[#allocation36_spill] sm:$0xff] %v7125_v26  ;;  %v2911_v37 = vsub.f32 %v8458_v16, %v7123_v25  ;;  %v2912_v50 = vsub.f32 %v8459_v4, %v7123_v25  ;;  %3158 = vmatmul.mubr.f32.vlgmr.msra.gmra.mxu1 %v4398_v36  ;;  %v2280_v59 = vmin.f32 %v8452_v0, 2.0  ;;  %v2344_v47 = vmin.f32 %v2312_v13, 2.0 }
 0x262   : > { %4413 = vpow2.f32 %v2981_v2  ;;  %v8460_v39 = vsub.f32 25.0, %v7069_v51  ;;  %v2440_v56 = vmin.f32 %v8455_v23, 2.0  ;;  %v2504_v31 = vmin.f32 %v2472_v60, 2.0  ;;  %v8471_v60 = vld [vmem:[#allocation52_spill] sm:$0xff] }
 0x263   : > { %v4402_v41 = vpop.eup %4401  ;;  %4415 = vpow2.f32 %v2983_v11  ;;  %v2985_v58 = vmul.f32 1.442695, %v2911_v37  ;;  %v2987_v43 = vmul.f32 1.442695, %v2912_v50  ;;  %v7139_v36 = vmul.f32 %v2566_v62, %v2406_v30  ;;  %v8472_v62 = vld [vmem:[#allocation53_spill] sm:$0xff] }
 0x264   : > { %vm7134_vm15 = vcmp.gt.f32.partialorder %v8460_v39, 0.0  ;;  %v4404_v46 = vpop.eup %4403  ;;  %v7142_v0 = vmax.f32 %v2729_v57, %v7018_v22  ;;  %v8465_v13 = vsub.f32 25.0, %v7098_v53  ;;  %v2407_v33 = vadd.f32 1.0, %v2375_v55  ;;  %v2732_v11 = vpop.xlane.xlu1 %2731 }
 0x265   : > { %8463 = vst [vmem:[#allocation37_spill] sm:$0xff] %v7139_v36  ;;  %3162 = vmatprep.mubr.f32.mxu1 %v4404_v46  ;;  %v2567_v49 = vadd.f32 1.0, %v2535_v18  ;;  %4417 = vpow2.f32 %v2985_v58  ;;  %v8468_v23 = vsub.f32 25.0, %v7107_v7  ;;  %v8096_v22 = vsub.f32 25.0, %v7125_v26  ;;  %v8476_v46 = vld [vmem:[#allocation57_spill] sm:$0xff] }
 0x266   : > { %8464 = vst [vmem:[#allocation40_spill] sm:$0xff] %v7142_v0  ;;  %vm7146_vm11 = vcmp.gt.f32.partialorder %v8465_v13, 0.0  ;;  %3163 = vmatmul.mubr.f32.gmra.mxu1 %v4402_v41  ;;  %v2376_v37 = vadd.f32 %v2344_v47, %v2280_v59  ;;  %4419 = vpow2.f32 %v2987_v43  ;;  %v2913_v30 = vsub.f32 %v8471_v60, %v7142_v0 }
 0x267   : > { %vm7152_vm12 = vcmp.gt.f32.partialorder %v8468_v23, 0.0  ;;  %v2914_v2 = vsub.f32 %v8472_v62, %v7142_v0  ;;  %v2536_v18 = vadd.f32 %v2504_v31, %v2440_v56  ;;  %v4406_v55 = vpop.eup %4405  ;;  %v7162_v16 = vmax.f32 %v2732_v11, %v7021_v45  ;;  %v8475_v31 = vld [vmem:[#allocation60_spill] sm:$0xff] }
 0x268   : > { %v7167_v4 = vsel %vm7134_vm15, 0.0, %v8420_v8  ;;  %v7172_v59 = vsel %vm7146_vm11, 0.0, %v8420_v8  ;;  %v8097_v47 = vsub.f32 25.0, %v7139_v36  ;;  %v4408_v41 = vpop.eup %4407  ;;  %v2989_v57 = vmul.f32 1.442695, %v2913_v30 }
 0x269   : > { %8473 = vst [vmem:[#allocation41_spill] sm:$0xff] %v7162_v16  ;;  %v2991_v39 = vmul.f32 1.442695, %v2914_v2  ;;  %v7175_v56 = vmul.f32 %v2567_v49, %v2407_v33  ;;  %v2313_v45 = vsub.f32 15.0, %v8475_v31  ;;  %v2915_v58 = vsub.f32 %v8476_v46, %v7162_v16  ;;  %3167 = vmatprep.mubr.f32.mxu1 %v4408_v41  ;;  %v2735_v33 = vpop.xlane.xlu1 %2734  ;;  %v8491_v49 = vld [vmem:[#allocation64_spill] sm:$0xff] }
 0x26a   : > { %v2916_v43 = vsub.f32 %v8477_v32, %v7162_v16  ;;  %v7185_v13 = vsel %vm7152_vm12, 0.0, %v8420_v8  ;;  %v2473_v23 = vsub.f32 15.0, %v8478_v35  ;;  %v4410_v60 = vpop.eup %4409  ;;  %4421 = vpow2.f32 %v2989_v57  ;;  %3168 = vmatmul.mubr.f32.gmra.mxu1 %v4406_v55 }
 0x26b   : > { %8474 = vst [vmem:[#allocation46_spill] sm:$0xff] %v7175_v56  ;;  %vm7190_vm9 = vcmp.gt.f32.partialorder %v8096_v22, 0.0  ;;  %v2408_v30 = vadd.f32 1.0, %v2376_v37  ;;  %v2568_v62 = vadd.f32 1.0, %v2536_v18  ;;  %v4412_v2 = vpop.eup %4411  ;;  %4423 = vpow2.f32 %v2991_v39 }
 0x26c   : > { %v2993_v11 = vmul.f32 1.442695, %v2915_v58  ;;  %v2995_v50 = vmul.f32 1.442695, %v2916_v43  ;;  %v2281_v41 = vmin.f32 %v8475_v31, 2.0  ;;  %v7196_v46 = vmax.f32 %v2735_v33, %v7024_v42  ;;  %3172 = vmatprep.mubr.f32.mxu1 %v4412_v2  ;;  %v8484_v58 = vld [vmem:[#allocation66_spill] sm:$0xff] }
 0x26d   : > { %vm7200_vm8 = vcmp.gt.f32.partialorder %v8097_v47, 0.0  ;;  %v8099_v57 = vsub.f32 25.0, %v7175_v56  ;;  %v2345_v37 = vmin.f32 %v2313_v45, 2.0  ;;  %v2441_v18 = vmin.f32 %v8478_v35, 2.0  ;;  %v8485_v42 = vld [vmem:[#allocation61_spill] sm:$0xff]  ;;  %v8486_v43 = vld [vmem:[#allocation62_spill] sm:$0xff]  ;;  %v2738_v2 = vpop.xlane.xlu1 %2737 }
 0x26e   : > { %8481 = vst [vmem:[#allocation28_spill] sm:$0xff] %v7196_v46  ;;  %4425 = vpow2.f32 %v2993_v11  ;;  %v2505_v39 = vmin.f32 %v2473_v23, 2.0  ;;  %v2314_v32 = vsub.f32 15.0, %v8484_v58  ;;  %v2917_v31 = vsub.f32 %v8485_v42, %v7196_v46  ;;  %3173 = vmatmul.mubr.f32.gmra.mxu1 %v4410_v60 }
 0x26f   : > { %4427 = vpow2.f32 %v2995_v50  ;;  %v2918_v33 = vsub.f32 %v8486_v43, %v7196_v46  ;;  %v7211_v22 = vmul.f32 %v2568_v62, %v2408_v30  ;;  %v4414_v47 = vpop.eup %4413  ;;  %v7214_v45 = vmax.f32 %v2738_v2, %v7045_v9  ;;  %v8492_v43 = vld [vmem:[#allocation65_spill] sm:$0xff]  ;;  %v8506_v46 = vld [vmem:[#allocation78_spill] sm:$0xff] }
 0x270   : > { %v7219_v35 = vsel %vm7190_vm9, 0.0, %v8420_v8  ;;  %v7224_v23 = vsel %vm7200_vm8, 0.0, %v8420_v8  ;;  %v2282_v11 = vmin.f32 %v8484_v58, 2.0  ;;  %v4416_v60 = vpop.eup %4415  ;;  %v2997_v50 = vmul.f32 1.442695, %v2917_v31  ;;  %v2741_v31 = vpop.xlane.xlu0 %2740 }
 0x271   : > { %8487 = vst [vmem:[#allocation29_spill] sm:$0xff] %v7211_v22  ;;  %8488 = vst [vmem:[#allocation47_spill] sm:$0xff] %v7214_v45  ;;  %v2999_v30 = vmul.f32 1.442695, %v2918_v33  ;;  %vm7229_vm1 = vcmp.gt.f32.partialorder %v8099_v57, 0.0  ;;  %v2377_v62 = vadd.f32 %v2345_v37, %v2281_v41  ;;  %v2919_v42 = vsub.f32 %v8491_v49, %v7214_v45  ;;  %3177 = vmatprep.mubr.f32.mxu1 %v4416_v60  ;;  %v8493_v57 = vld [vmem:[#allocation67_spill] sm:$0xff] }
 0x272   : > { %v2920_v55 = vsub.f32 %v8492_v43, %v7214_v45  ;;  %v2537_v2 = vadd.f32 %v2505_v39, %v2441_v18  ;;  %v2346_v26 = vmin.f32 %v2314_v32, 2.0  ;;  %v4418_v58 = vpop.eup %4417  ;;  %4429 = vpow2.f32 %v2997_v50  ;;  %3178 = vmatmul.mubr.f32.gmra.mxu1 %v4414_v47  ;;  %v8496_v39 = vld [vmem:[#allocation71_spill] sm:$0xff] }
 0x273   : > { %v8105_v33 = vsub.f32 25.0, %v7211_v22  ;;  %v2442_v36 = vmin.f32 %v8493_v57, 2.0  ;;  %v2474_v56 = vsub.f32 15.0, %v8493_v57  ;;  %v4420_v41 = vpop.eup %4419  ;;  %4431 = vpow2.f32 %v2999_v30  ;;  %v8505_v22 = vld [vmem:[#allocation75_spill] sm:$0xff] }
 0x274   : > { %v3001_v37 = vmul.f32 1.442695, %v2919_v42  ;;  %v3003_v49 = vmul.f32 1.442695, %v2920_v55  ;;  %v2315_v25 = vsub.f32 15.0, %v8494_v40  ;;  %v7242_v60 = vmax.f32 %v2741_v31, %v7048_v5  ;;  %3182 = vmatprep.mubr.f32.mxu1 %v4420_v41  ;;  %v8497_v42 = vld [vmem:[#allocation68_spill] sm:$0xff]  ;;  %v2744_v31 = vpop.xlane.xlu1 %2743 }
 0x275   : > { %v7247_v47 = vsel %vm7229_vm1, 0.0, %v8420_v8  ;;  %v2409_v18 = vadd.f32 1.0, %v2377_v62  ;;  %v2475_v32 = vsub.f32 15.0, %v8496_v39  ;;  %v2569_v57 = vadd.f32 1.0, %v2537_v2  ;;  %v8498_v5 = vld [vmem:[#allocation69_spill] sm:$0xff] }
 0x276   : > { %8495 = vst [vmem:[#allocation33_spill] sm:$0xff] %v7242_v60  ;;  %4433 = vpow2.f32 %v3001_v37  ;;  %v2378_v50 = vadd.f32 %v2346_v26, %v2282_v11  ;;  %v2283_v30 = vmin.f32 %v8494_v40, 2.0  ;;  %v2921_v43 = vsub.f32 %v8497_v42, %v7242_v60  ;;  %3183 = vmatmul.mubr.f32.gmra.mxu1 %v4418_v58  ;;  %v8501_v58 = vld [vmem:[#allocation74_spill] sm:$0xff] }
 0x277   : > { %4435 = vpow2.f32 %v3003_v49  ;;  %v2922_v55 = vsub.f32 %v8498_v5, %v7242_v60  ;;  %v2506_v9 = vmin.f32 %v2474_v56, 2.0  ;;  %v4422_v41 = vpop.eup %4421  ;;  %v7256_v62 = vmax.f32 %v2744_v31, %v7060_v38  ;;  %v8502_v56 = vld [vmem:[#allocation72_spill] sm:$0xff]  ;;  %v8503_v38 = vld [vmem:[#allocation73_spill] sm:$0xff] }
 0x278   : > { %vm7260_vm3 = vcmp.gt.f32.partialorder %v8105_v33, 0.0  ;;  %v2347_v40 = vmin.f32 %v2315_v25, 2.0  ;;  %v2443_v11 = vmin.f32 %v8496_v39, 2.0  ;;  %v4424_v2 = vpop.eup %4423  ;;  %v3005_v37 = vmul.f32 1.442695, %v2921_v43  ;;  %v2747_v39 = vpop.xlane.xlu0 %2746 }
 0x279   : > { %v3007_v49 = vmul.f32 1.442695, %v2922_v55  ;;  %v2507_v42 = vmin.f32 %v2475_v32, 2.0  ;;  %v2316_v5 = vsub.f32 15.0, %v8501_v58  ;;  %v2923_v0 = vsub.f32 %v8502_v56, %v7256_v62  ;;  %3187 = vmatprep.mubr.f32.mxu1 %v4424_v2 }
 0x27a   : > { %v2924_v31 = vsub.f32 %v8503_v38, %v7256_v62  ;;  %v7270_v33 = vmul.f32 %v2569_v57, %v2409_v18  ;;  %v2476_v51 = vsub.f32 15.0, %v8505_v22  ;;  %4437 = vpow2.f32 %v3005_v37  ;;  %3188 = vmatmul.mubr.f32.gmra.mxu1 %v4422_v41 }
 0x27b   : > { %v4426_v25 = vpop.eup %4425  ;;  %v7276_v32 = vsel %vm7260_vm3, 0.0, %v8420_v8  ;;  %v2410_v43 = vadd.f32 1.0, %v2378_v50  ;;  %v2538_v55 = vadd.f32 %v2506_v9, %v2442_v36  ;;  %4439 = vpow2.f32 %v3007_v49  ;;  %v8507_v36 = vld [vmem:[#allocation76_spill] sm:$0xff] }
 0x27c   : > { %8504 = vst [vmem:[#allocation34_spill] sm:$0xff] %v7270_v33  ;;  %v4428_v56 = vpop.eup %4427  ;;  %v3009_v16 = vmul.f32 1.442695, %v2923_v0  ;;  %v3011_v38 = vmul.f32 1.442695, %v2924_v31  ;;  %v2379_v2 = vadd.f32 %v2347_v40, %v2283_v30  ;;  %v7279_v18 = vmax.f32 %v2747_v39, %v7082_v3  ;;  %v8508_v30 = vld [vmem:[#allocation77_spill] sm:$0xff]  ;;  %v2750_v3 = vpop.xlane.xlu1 %2749 }
 0x27d   : > { %3192 = vmatprep.mubr.f32.mxu1 %v4428_v56  ;;  %v2539_v57 = vadd.f32 %v2507_v42, %v2443_v11  ;;  %v2284_v41 = vmin.f32 %v8501_v58, 2.0  ;;  %v2348_v37 = vmin.f32 %v2316_v5, 2.0  ;;  %v2444_v26 = vmin.f32 %v8505_v22, 2.0  ;;  %v8509_v40 = vld [vmem:[#allocation79_spill] sm:$0xff] }
 0x27e   : > { %4441 = vpow2.f32 %v3009_v16  ;;  %v2508_v53 = vmin.f32 %v2476_v51, 2.0  ;;  %v2317_v50 = vsub.f32 15.0, %v8506_v46  ;;  %v2925_v0 = vsub.f32 %v8507_v36, %v7279_v18  ;;  %3193 = vmatmul.mubr.f32.gmra.mxu1 %v4426_v25  ;;  %v8511_v25 = vld [vmem:[#allocation81_spill] sm:$0xff] }
 0x27f   : > { %4443 = vpow2.f32 %v3011_v38  ;;  %v2926_v9 = vsub.f32 %v8508_v30, %v7279_v18  ;;  %v2477_v11 = vsub.f32 15.0, %v8509_v40  ;;  %v4430_v49 = vpop.eup %4429  ;;  %v7290_v42 = vmax.f32 %v2750_v3, %v7167_v4  ;;  %v8510_v38 = vld [vmem:[#allocation80_spill] sm:$0xff] }
 0x280   : > { %v2570_v16 = vadd.f32 1.0, %v2538_v55  ;;  %v2411_v22 = vadd.f32 1.0, %v2379_v2  ;;  %v2285_v51 = vmin.f32 %v8506_v46, 2.0  ;;  %v4432_v58 = vpop.eup %4431  ;;  %v3013_v5 = vmul.f32 1.442695, %v2925_v0  ;;  %v2753_v55 = vpop.xlane.xlu0 %2752 }
 0x281   : > { %v3015_v31 = vmul.f32 1.442695, %v2926_v9  ;;  %v2571_v39 = vadd.f32 1.0, %v2539_v57  ;;  %v2380_v56 = vadd.f32 %v2348_v37, %v2284_v41  ;;  %v2927_v36 = vsub.f32 %v8510_v38, %v7290_v42  ;;  %3197 = vmatprep.mubr.f32.mxu1 %v4432_v58  ;;  %v8516_v38 = vld [vmem:[#allocation84_spill] sm:$0xff] }
 0x282   : > { %v2928_v30 = vsub.f32 %v8511_v25, %v7290_v42  ;;  %v2540_v45 = vadd.f32 %v2508_v53, %v2444_v26  ;;  %v2349_v60 = vmin.f32 %v2317_v50, 2.0  ;;  %4445 = vpow2.f32 %v3013_v5  ;;  %3198 = vmatmul.mubr.f32.gmra.mxu1 %v4430_v49  ;;  %v8515_v5 = vld [vmem:[#allocation83_spill] sm:$0xff] }
 0x283   : > { %v4434_v4 = vpop.eup %4433  ;;  %v8113_v46 = vsub.f32 25.0, %v7270_v33  ;;  %v2445_v2 = vmin.f32 %v8509_v40, 2.0  ;;  %v2509_v0 = vmin.f32 %v2477_v11, 2.0  ;;  %4447 = vpow2.f32 %v3015_v31  ;;  %v8514_v40 = vld [vmem:[#allocation82_spill] sm:$0xff] }
 0x284   : > { %v4436_v57 = vpop.eup %4435  ;;  %v3017_v41 = vmul.f32 1.442695, %v2927_v36  ;;  %v3019_v37 = vmul.f32 1.442695, %v2928_v30  ;;  %v2318_v9 = vsub.f32 15.0, %v6189_v20  ;;  %v7301_v3 = vmax.f32 %v2753_v55, %v7172_v59  ;;  %v2756_v59 = vpop.xlane.xlu1 %2755  ;;  %v8519_v55 = vld [vmem:[#allocation87_spill] sm:$0xff] }
 0x285   : > { %3202 = vmatprep.mubr.f32.mxu1 %v4436_v57  ;;  %v7303_v53 = vmul.f32 %v2570_v16, %v2410_v43  ;;  %v7305_v26 = vmul.f32 %v2571_v39, %v2411_v22  ;;  %v2412_v50 = vadd.f32 1.0, %v2380_v56  ;;  %v2572_v49 = vadd.f32 1.0, %v2540_v45  ;;  %v8529_v45 = vld [vmem:[#allocation91_spill] sm:$0xff] }
 0x286   : > { %4449 = vpow2.f32 %v3017_v41  ;;  %v2381_v58 = vadd.f32 %v2349_v60, %v2285_v51  ;;  %v2478_v11 = vsub.f32 15.0, %v8514_v40  ;;  %v2929_v31 = vsub.f32 %v8515_v5, %v7301_v3  ;;  %3203 = vmatmul.mubr.f32.gmra.mxu1 %v4434_v4 }
 0x287   : > { %8512 = vst [vmem:[#allocation50_spill] sm:$0xff] %v7303_v53  ;;  %8513 = vst [vmem:[#allocation51_spill] sm:$0xff] %v7305_v26  ;;  %4451 = vpow2.f32 %v3019_v37  ;;  %v2930_v36 = vsub.f32 %v8516_v38, %v7301_v3  ;;  %v2541_v25 = vadd.f32 %v2509_v0, %v2445_v2  ;;  %v4438_v43 = vpop.eup %4437  ;;  %v7313_v16 = vmax.f32 %v2756_v59, %v7185_v13  ;;  %v8520_v2 = vld [vmem:[#allocation88_spill] sm:$0xff] }
 0x288   : > { %vm7317_vm6 = vcmp.gt.f32.partialorder %v8113_v46, 0.0  ;;  %v2286_v60 = vmin.f32 %v6189_v20, 2.0  ;;  %v2350_v22 = vmin.f32 %v2318_v9, 2.0  ;;  %v4440_v51 = vpop.eup %4439  ;;  %v3021_v39 = vmul.f32 1.442695, %v2929_v31  ;;  %v2759_v20 = vpop.xlane.xlu0 %2758 }
 0x289   : > { %v3023_v56 = vmul.f32 1.442695, %v2930_v36  ;;  %v8114_v30 = vsub.f32 25.0, %v7303_v53  ;;  %v8115_v4 = vsub.f32 25.0, %v7305_v26  ;;  %v2931_v13 = vsub.f32 %v8519_v55, %v7313_v16  ;;  %3207 = vmatprep.mubr.f32.mxu1 %v4440_v51 }
 0x28a   : > { %v2932_v0 = vsub.f32 %v8520_v2, %v7313_v16  ;;  %v2446_v57 = vmin.f32 %v8514_v40, 2.0  ;;  %v2510_v41 = vmin.f32 %v2478_v11, 2.0  ;;  %4453 = vpow2.f32 %v3021_v39  ;;  %3208 = vmatmul.mubr.f32.gmra.mxu1 %v4438_v43  ;;  %v2762_v39 = vpop.xlane.xlu1 %2761 }
 0x28b   : > { %v4442_v37 = vpop.eup %4441  ;;  %v7329_v9 = vmul.f32 %v2572_v49, %v2412_v50  ;;  %v2413_v5 = vadd.f32 1.0, %v2381_v58  ;;  %v2573_v31 = vadd.f32 1.0, %v2541_v25  ;;  %4455 = vpow2.f32 %v3023_v56  ;;  %v8525_v49 = vld [vmem:[#allocation85_spill] sm:$0xff]  ;;  %v8528_v25 = vld [vmem:[#allocation86_spill] sm:$0xff] }
 0x28c   : > { %v4444_v38 = vpop.eup %4443  ;;  %v3025_v36 = vmul.f32 1.442695, %v2931_v13  ;;  %v3027_v59 = vmul.f32 1.442695, %v2932_v0  ;;  %v2382_v55 = vadd.f32 %v2350_v22, %v2286_v60  ;;  %v7332_v46 = vmax.f32 %v2759_v20, %v7219_v35  ;;  %v8530_v22 = vld [vmem:[#allocation92_spill] sm:$0xff]  ;;  %v8539_v35 = vld [vmem:[#allocation98_spill] sm:$0xff] }
 0x28d   : > { %8521 = vst [vmem:[#allocation38_spill] sm:$0xff] %v7329_v9  ;;  %3212 = vmatprep.mubr.f32.mxu1 %v4444_v38  ;;  %v7337_v40 = vsel %vm7317_vm6, 0.0, %v8420_v8  ;;  %vm7341_vm0 = vcmp.gt.f32.partialorder %v8114_v30, 0.0  ;;  %v2319_v58 = vsub.f32 15.0, %v8525_v49  ;;  %vm7348_vm10 = vcmp.gt.f32.partialorder %v8115_v4, 0.0 }
 0x28e   : > { %8522 = vst [vmem:[#allocation39_spill] sm:$0xff] %v7332_v46  ;;  %4457 = vpow2.f32 %v3025_v36  ;;  %v2542_v11 = vadd.f32 %v2510_v41, %v2446_v57  ;;  %v2479_v43 = vsub.f32 15.0, %v8528_v25  ;;  %v2933_v60 = vsub.f32 %v8529_v45, %v7332_v46  ;;  %3213 = vmatmul.mubr.f32.gmra.mxu1 %v4442_v37  ;;  %v8532_v37 = vld [vmem:[#allocation94_spill] sm:$0xff]  ;;  %v2768_v4 = vpop.xlane.xlu1 %2767 }
 0x28f   : > { %4459 = vpow2.f32 %v3027_v59  ;;  %v2934_v51 = vsub.f32 %v8530_v22, %v7332_v46  ;;  %v7357_v56 = vmul.f32 %v2573_v31, %v2413_v5  ;;  %v4446_v13 = vpop.eup %4445  ;;  %v7360_v2 = vmax.f32 %v2762_v39, %v7224_v23  ;;  %v8533_v5 = vld [vmem:[#allocation95_spill] sm:$0xff] }
 0x290   : > { %v8116_v0 = vsub.f32 25.0, %v7329_v9  ;;  %v2414_v57 = vadd.f32 1.0, %v2382_v55  ;;  %v2287_v41 = vmin.f32 %v8525_v49, 2.0  ;;  %v4448_v20 = vpop.eup %4447  ;;  %v3029_v38 = vmul.f32 1.442695, %v2933_v60  ;;  %v2765_v55 = vpop.xlane.xlu0 %2764 }
 0x291   : > { %8531 = vst [vmem:[#allocation54_spill] sm:$0xff] %v7360_v2  ;;  %v3031_v36 = vmul.f32 1.442695, %v2934_v51  ;;  %v2351_v59 = vmin.f32 %v2319_v58, 2.0  ;;  %v2447_v45 = vmin.f32 %v8528_v25, 2.0  ;;  %v2935_v22 = vsub.f32 %v8532_v37, %v7360_v2  ;;  %3217 = vmatprep.mubr.f32.mxu1 %v4448_v20  ;;  %v8534_v25 = vld [vmem:[#allocation89_spill] sm:$0xff] }
 0x292   : > { %v2936_v31 = vsub.f32 %v8533_v5, %v7360_v2  ;;  %v2574_v23 = vadd.f32 1.0, %v2542_v11  ;;  %v2511_v39 = vmin.f32 %v2479_v43, 2.0  ;;  %4461 = vpow2.f32 %v3029_v38  ;;  %3218 = vmatmul.mubr.f32.gmra.mxu1 %v4446_v13  ;;  %v8535_v20 = vld [vmem:[#allocation90_spill] sm:$0xff] }
 0x293   : > { %v4450_v30 = vpop.eup %4449  ;;  %v7372_v49 = vsel %vm7341_vm0, 0.0, %v8420_v8  ;;  %v2320_v60 = vsub.f32 15.0, %v8534_v25  ;;  %4463 = vpow2.f32 %v3031_v36  ;;  %v3033_v37 = vmul.f32 1.442695, %v2935_v22 }
 0x294   : > { %v4452_v51 = vpop.eup %4451  ;;  %v3035_v5 = vmul.f32 1.442695, %v2936_v31  ;;  %v2480_v11 = vsub.f32 15.0, %v8535_v20  ;;  %v7378_v43 = vmax.f32 %v2765_v55, %v7247_v47  ;;  %v7383_v50 = vsel %vm7348_vm10, 0.0, %v8420_v8  ;;  %v8538_v31 = vld [vmem:[#allocation5_spill] sm:$0xff] }
 0x295   : > { %3222 = vmatprep.mubr.f32.mxu1 %v4452_v51  ;;  %vm7387_vm4 = vcmp.gt.f32.partialorder %v8116_v0, 0.0  ;;  %v2383_v38 = vadd.f32 %v2351_v59, %v2287_v41  ;;  %4465 = vpow2.f32 %v3033_v37  ;;  %v7391_v36 = vmul.f32 %v2574_v23, %v2414_v57 }
 0x296   : > { %v2543_v22 = vadd.f32 %v2511_v39, %v2447_v45  ;;  %v2288_v47 = vmin.f32 %v8534_v25, 2.0  ;;  %4467 = vpow2.f32 %v3035_v5  ;;  %v2937_v55 = vsub.f32 %v8538_v31, %v7378_v43  ;;  %3223 = vmatmul.mubr.f32.gmra.mxu1 %v4450_v30  ;;  %v8543_v30 = vld [vmem:[#allocation93_spill] sm:$0xff] }
 0x297   : > { %v2938_v51 = vsub.f32 %v8539_v35, %v7378_v43  ;;  %v2352_v0 = vmin.f32 %v2320_v60, 2.0  ;;  %v4454_v58 = vpop.eup %4453  ;;  %v7399_v33 = vmax.f32 %v2768_v4, %v7276_v32  ;;  %v8540_v57 = vsub.f32 25.0, %v7357_v56  ;;  %v8544_v32 = vld [vmem:[#allocation102_spill] sm:$0xff]  ;;  %v8545_v35 = vld [vmem:[#allocation96_spill] sm:$0xff]  ;;  %v2774_v41 = vpop.xlane.xlu1 %2773 }
 0x298   : > { %v2448_v59 = vmin.f32 %v8535_v20, 2.0  ;;  %v2512_v45 = vmin.f32 %v2480_v11, 2.0  ;;  %v4456_v23 = vpop.eup %4455  ;;  %v3037_v39 = vmul.f32 1.442695, %v2937_v55  ;;  %v2415_v37 = vadd.f32 1.0, %v2383_v38  ;;  %v2771_v20 = vpop.xlane.xlu0 %2770 }
 0x299   : > { %vm7403_vm5 = vcmp.gt.f32.partialorder %v8540_v57, 0.0  ;;  %v3039_v25 = vmul.f32 1.442695, %v2938_v51  ;;  %v2321_v5 = vsub.f32 15.0, %v8543_v30  ;;  %v2939_v60 = vsub.f32 %v6462_v48, %v7399_v33  ;;  %3227 = vmatprep.mubr.f32.mxu1 %v4456_v23 }
 0x29a   : > { %v2940_v4 = vsub.f32 %v8544_v32, %v7399_v33  ;;  %v2575_v31 = vadd.f32 1.0, %v2543_v22  ;;  %v2481_v57 = vsub.f32 15.0, %v8545_v35  ;;  %4469 = vpow2.f32 %v3037_v39  ;;  %3228 = vmatmul.mubr.f32.gmra.mxu1 %v4454_v58 }
 0x29b   : > { %v4458_v53 = vpop.eup %4457  ;;  %v7417_v11 = vsel %vm7387_vm4, 0.0, %v8420_v8  ;;  %v8120_v38 = vsub.f32 25.0, %v7391_v36  ;;  %v2384_v55 = vadd.f32 %v2352_v0, %v2288_v47  ;;  %4471 = vpow2.f32 %v3039_v25 }
 0x29c   : > { %v4460_v48 = vpop.eup %4459  ;;  %v3041_v51 = vmul.f32 1.442695, %v2939_v60  ;;  %v3043_v32 = vmul.f32 1.442695, %v2940_v4  ;;  %v2544_v23 = vadd.f32 %v2512_v45, %v2448_v59  ;;  %v7421_v22 = vmax.f32 %v2771_v20, %v7337_v40  ;;  %v8546_v59 = vld [vmem:[#allocation103_spill] sm:$0xff]  ;;  %v8547_v45 = vld [vmem:[#allocation104_spill] sm:$0xff] }
 0x29d   : > { %3232 = vmatprep.mubr.f32.mxu1 %v4460_v48  ;;  %v7426_v58 = vsel %vm7403_vm5, 0.0, %v8420_v8  ;;  %v2289_v13 = vmin.f32 %v8543_v30, 2.0  ;;  %v2449_v39 = vmin.f32 %v8545_v35, 2.0  ;;  %v7430_v0 = vmul.f32 %v2575_v31, %v2415_v37  ;;  %v8548_v4 = vld [vmem:[#allocation97_spill] sm:$0xff] }
 0x29e   : > { %4473 = vpow2.f32 %v3041_v51  ;;  %v2353_v47 = vmin.f32 %v2321_v5, 2.0  ;;  %v2513_v25 = vmin.f32 %v2481_v57, 2.0  ;;  %v2941_v40 = vsub.f32 %v8546_v59, %v7421_v22  ;;  %3233 = vmatmul.mubr.f32.gmra.mxu1 %v4458_v53 }
 0x29f   : > { %4475 = vpow2.f32 %v3043_v32  ;;  %v2942_v60 = vsub.f32 %v8547_v45, %v7421_v22  ;;  %v2322_v20 = vsub.f32 15.0, %v8548_v4  ;;  %v4462_v48 = vpop.eup %4461  ;;  %v7438_v30 = vmax.f32 %v2774_v41, %v7372_v49  ;;  %v8551_v32 = vld [vmem:[#allocation99_spill] sm:$0xff]  ;;  %v8552_v45 = vld [vmem:[#allocation6_spill] sm:$0xff] }
 0x2a0   : > { %vm7442_vm13 = vcmp.gt.f32.partialorder %v8120_v38, 0.0  ;;  %v2416_v5 = vadd.f32 1.0, %v2384_v55  ;;  %v2576_v31 = vadd.f32 1.0, %v2544_v23  ;;  %v4464_v35 = vpop.eup %4463  ;;  %v3045_v57 = vmul.f32 1.442695, %v2941_v40  ;;  %v8553_v49 = vld [vmem:[#allocation7_spill] sm:$0xff]  ;;  %v2777_v55 = vpop.xlane.xlu0 %2776 }
 0x2a1   : > { %v3047_v51 = vmul.f32 1.442695, %v2942_v60  ;;  %v2290_v53 = vmin.f32 %v8548_v4, 2.0  ;;  %v2482_v59 = vsub.f32 15.0, %v8551_v32  ;;  %v2943_v26 = vsub.f32 %v8552_v45, %v7438_v30  ;;  %3237 = vmatprep.mubr.f32.mxu1 %v4464_v35 }
 0x2a2   : > { %v2944_v41 = vsub.f32 %v8553_v49, %v7438_v30  ;;  %v2385_v38 = vadd.f32 %v2353_v47, %v2289_v13  ;;  %v2545_v46 = vadd.f32 %v2513_v25, %v2449_v39  ;;  %v4466_v9 = vpop.eup %4465  ;;  %4477 = vpow2.f32 %v3045_v57  ;;  %3238 = vmatmul.mubr.f32.gmra.mxu1 %v4462_v48  ;;  %v8554_v25 = vld [vmem:[#allocation100_spill] sm:$0xff] }
 0x2a3   : > { %v7455_v23 = vsel %vm7442_vm13, 0.0, %v8420_v8  ;;  %v8124_v40 = vsub.f32 25.0, %v7430_v0  ;;  %v2354_v60 = vmin.f32 %v2322_v20, 2.0  ;;  %v4468_v4 = vpop.eup %4467  ;;  %4479 = vpow2.f32 %v3047_v51 }
 0x2a4   : > { %v3049_v45 = vmul.f32 1.442695, %v2943_v26  ;;  %v3051_v2 = vmul.f32 1.442695, %v2944_v41  ;;  %v7458_v49 = vmul.f32 %v2576_v31, %v2416_v5  ;;  %v7461_v13 = vmax.f32 %v2777_v55, %v7383_v50  ;;  %3242 = vmatprep.mubr.f32.mxu1 %v4468_v4  ;;  %v2780_v50 = vpop.xlane.xlu1 %2779  ;;  %v8555_v31 = vld [vmem:[#allocation101_spill] sm:$0xff] }
 0x2a5   : > { %v2450_v39 = vmin.f32 %v8551_v32, 2.0  ;;  %v2514_v47 = vmin.f32 %v2482_v59, 2.0  ;;  %v2323_v48 = vsub.f32 15.0, %v8554_v25  ;;  %v2417_v37 = vadd.f32 1.0, %v2385_v38 }
 0x2a6   : > { %4481 = vpow2.f32 %v3049_v45  ;;  %v2577_v35 = vadd.f32 1.0, %v2545_v46  ;;  %v2291_v20 = vmin.f32 %v8554_v25, 2.0  ;;  %v2945_v26 = vsub.f32 %v6605_v10, %v7461_v13  ;;  %3243 = vmatmul.mubr.f32.gmra.mxu1 %v4466_v9 }
 0x2a7   : > { %4483 = vpow2.f32 %v3051_v2  ;;  %v2946_v5 = vsub.f32 %v6609_v44, %v7461_v13  ;;  %v2483_v57 = vsub.f32 15.0, %v8555_v31  ;;  %v4470_v51 = vpop.eup %4469  ;;  %v7472_v32 = vmax.f32 %v2780_v50, %v7417_v11 }
 0x2a8   : > { %vm7476_vm7 = vcmp.gt.f32.partialorder %v8124_v40, 0.0  ;;  %v8125_v2 = vsub.f32 25.0, %v7458_v49  ;;  %v2386_v10 = vadd.f32 %v2354_v60, %v2290_v53  ;;  %v4472_v38 = vpop.eup %4471  ;;  %v3053_v59 = vmul.f32 1.442695, %v2945_v26  ;;  %v2783_v53 = vpop.xlane.xlu0 %2782 }
 0x2a9   : > { %v3055_v44 = vmul.f32 1.442695, %v2946_v5  ;;  %v2546_v9 = vadd.f32 %v2514_v47, %v2450_v39  ;;  %v2355_v41 = vmin.f32 %v2323_v48, 2.0  ;;  %v2947_v55 = vsub.f32 %v6649_v19, %v7472_v32  ;;  %3247 = vmatprep.mubr.f32.mxu1 %v4472_v38 }
 0x2aa   : > { %v2948_v11 = vsub.f32 %v6653_v28, %v7472_v32  ;;  %v2324_v4 = vsub.f32 15.0, %v6554_v17  ;;  %v2484_v45 = vsub.f32 15.0, %v6590_v15  ;;  %4485 = vpow2.f32 %v3053_v59  ;;  %3248 = vmatmul.mubr.f32.gmra.mxu1 %v4470_v51 }
 0x2ab   : > { %v4474_v25 = vpop.eup %4473  ;;  %v7487_v60 = vmul.f32 %v2577_v35, %v2417_v37  ;;  %v2451_v39 = vmin.f32 %v8555_v31, 2.0  ;;  %v2515_v47 = vmin.f32 %v2483_v57, 2.0  ;;  %4487 = vpow2.f32 %v3055_v44  ;;  %v8558_v57 = vld [vmem:[#allocation9_spill] sm:$0xff] }
 0x2ac   : > { %v4476_v48 = vpop.eup %4475  ;;  %v3057_v19 = vmul.f32 1.442695, %v2947_v55  ;;  %v3059_v26 = vmul.f32 1.442695, %v2948_v11  ;;  %v2418_v5 = vadd.f32 1.0, %v2386_v10  ;;  %v7491_v28 = vmax.f32 %v2783_v53, %v7426_v58  ;;  %v2786_v58 = vpop.xlane.xlu1 %2785 }
 0x2ad   : > { %3252 = vmatprep.mubr.f32.mxu1 %v4476_v48  ;;  %v2578_v50 = vadd.f32 1.0, %v2546_v9  ;;  %v2387_v38 = vadd.f32 %v2355_v41, %v2291_v20  ;;  %v2292_v59 = vmin.f32 %v6554_v17, 2.0  ;;  %v2356_v51 = vmin.f32 %v2324_v4, 2.0 }
 0x2ae   : > { %4489 = vpow2.f32 %v3057_v19  ;;  %v2452_v37 = vmin.f32 %v6590_v15, 2.0  ;;  %v2516_v35 = vmin.f32 %v2484_v45, 2.0  ;;  %v2949_v31 = vsub.f32 %v6693_v52, %v7491_v28  ;;  %3253 = vmatmul.mubr.f32.gmra.mxu1 %v4474_v25  ;;  %v8562_v25 = vld [vmem:[#allocation11_spill] sm:$0xff] }
 0x2af   : > { %4491 = vpow2.f32 %v3059_v26  ;;  %v2950_v10 = vsub.f32 %v8558_v57, %v7491_v28  ;;  %v2547_v44 = vadd.f32 %v2515_v47, %v2451_v39  ;;  %v4478_v55 = vpop.eup %4477  ;;  %v7500_v20 = vmax.f32 %v2786_v58, %v7455_v23  ;;  %v8561_v23 = vld [vmem:[#allocation10_spill] sm:$0xff] }
 0x2b0   : > { %v2863_v17 = vsel %vm7476_vm7, 0.0, %v8420_v8  ;;  %vm7507_vm2 = vcmp.gt.f32.partialorder %v8125_v2, 0.0  ;;  %v4480_v52 = vpop.eup %4479  ;;  %v3061_v9 = vmul.f32 1.442695, %v2949_v31  ;;  %v8126_v11 = vsub.f32 25.0, %v7487_v60  ;;  %v2789_v48 = vpop.xlane.xlu0 %2788 }
 0x2b1   : > { %v3063_v41 = vmul.f32 1.442695, %v2950_v10  ;;  %v7512_v4 = vmul.f32 %v2578_v50, %v2418_v5  ;;  %v2951_v45 = vsub.f32 %v8561_v23, %v7500_v20  ;;  %v2952_v46 = vsub.f32 %v8562_v25, %v7500_v20  ;;  %3257 = vmatprep.mubr.f32.mxu1 %v4480_v52 }
 0x2b2   : > { %v2388_v53 = vadd.f32 %v2356_v51, %v2292_v59  ;;  %v2548_v39 = vadd.f32 %v2516_v35, %v2452_v37  ;;  %4493 = vpow2.f32 %v3061_v9  ;;  %3258 = vmatmul.mubr.f32.gmra.mxu1 %v4478_v55  ;;  %v2419_v19 = vadd.f32 1.0, %v2387_v38 }
 0x2b3   : > { %v4482_v47 = vpop.eup %4481  ;;  %v2579_v26 = vadd.f32 1.0, %v2547_v44  ;;  %4495 = vpow2.f32 %v3063_v41  ;;  %v3065_v57 = vmul.f32 1.442695, %v2951_v45  ;;  %v3067_v5 = vmul.f32 1.442695, %v2952_v46 }
 0x2b4   : > { %v4484_v31 = vpop.eup %4483  ;;  %v7518_v50 = vmax.f32 %v2789_v48, %v2863_v17  ;;  %v2864_v10 = vsel %vm7507_vm2, 0.0, %v8420_v8  ;;  %vm7525_vm14 = vcmp.gt.f32.partialorder %v8126_v11, 0.0  ;;  %v8128_v38 = vsub.f32 25.0, %v7512_v4 }
 0x2b5   : > { %3262 = vmatprep.mubr.f32.mxu1 %v4484_v31  ;;  %4497 = vpow2.f32 %v3065_v57  ;;  %v2420_v51 = vadd.f32 1.0, %v2388_v53  ;;  %v2580_v37 = vadd.f32 1.0, %v2548_v39  ;;  %v2792_v44 = vpop.xlane.xlu1 %2791  ;;  %v7534_v55 = vmul.f32 %v2579_v26, %v2419_v19 }
 0x2b6   : > { %4499 = vpow2.f32 %v3067_v5  ;;  %v2953_v35 = vsub.f32 %v6774_v21, %v7518_v50  ;;  %v2954_v58 = vsub.f32 %v6778_v61, %v7518_v50  ;;  %3263 = vmatmul.mubr.f32.gmra.mxu1 %v4482_v47  ;;  %v7536_v15 = vmax.f32 %v2792_v44, %v2864_v10 }
 0x2b7   : > { %v4486_v17 = vpop.eup %4485  ;;  %v2865_v23 = vsel %vm7525_vm14, 0.0, %v8420_v8  ;;  %vm2834_vm15 = vcmp.gt.f32.partialorder %v8128_v38, 0.0  ;;  %v7547_v45 = vmul.f32 %v2580_v37, %v2420_v51  ;;  %v8129_v53 = vsub.f32 25.0, %v7534_v55 }
 0x2b8   : > { %v4488_v52 = vpop.eup %4487  ;;  %v3069_v9 = vmul.f32 1.442695, %v2953_v35  ;;  %v3071_v41 = vmul.f32 1.442695, %v2954_v58  ;;  %v2955_v21 = vsub.f32 %v6811_v27, %v7536_v15  ;;  %v2956_v61 = vsub.f32 %v6815_v6, %v7536_v15 }
 0x2b9   : > { %3267 = vmatprep.mubr.f32.mxu1 %v4488_v52  ;;  %v2866_v6 = vsel %vm2834_vm15, 0.0, %v8420_v8  ;;  %v8127_v19 = vsub.f32 25.0, %v7547_v45  ;;  %vm2835_vm11 = vcmp.gt.f32.partialorder %v8129_v53, 0.0  ;;  %vm3703_vm9 = vcmask 39936  }
 0x2ba   : > { %4501 = vpow2.f32 %v3069_v9  ;;  %3268 = vmatmul.mubr.f32.gmra.mxu1 %v4486_v17  ;;  %v2795_v46 = vpop.xlane.xlu0 %2794  ;;  %v3073_v47 = vmul.f32 1.442695, %v2955_v21  ;;  %v3075_v48 = vmul.f32 1.442695, %v2956_v61 }
 0x2bb   : > { %v4490_v25 = vpop.eup %4489  ;;  %4503 = vpow2.f32 %v3071_v41  ;;  %v7550_v27 = vmax.f32 %v2795_v46, %v2865_v23  ;;  %vm2836_vm12 = vcmp.gt.f32.partialorder %v8127_v19, 0.0 }
 0x2bc   : > { %v4492_v39 = vpop.eup %4491  ;;  %4505 = vpow2.f32 %v3073_v47 }
 0x2bd   : > { %3272 = vmatprep.mubr.f32.mxu1 %v4492_v39  ;;  %4507 = vpow2.f32 %v3075_v48  ;;  %v2957_v26 = vsub.f32 %v6852_v63, %v7550_v27  ;;  %v2958_v31 = vsub.f32 %v6856_v29, %v7550_v27  ;;  %v2798_v57 = vpop.xlane.xlu1 %2797  ;;  %v2867_v29 = vsel %vm2835_vm11, 0.0, %v8420_v8 }
 0x2be   : > { %3273 = vmatmul.mubr.f32.gmra.mxu1 %v4490_v25  ;;  %v7560_v10 = vmax.f32 %v2798_v57, %v2866_v6 }
 0x2bf   : > { %v4494_v5 = vpop.eup %4493  ;;  %v3077_v51 = vmul.f32 1.442695, %v2957_v26  ;;  %v3079_v37 = vmul.f32 1.442695, %v2958_v31 }
 0x2c0   : > { %v4496_v59 = vpop.eup %4495  ;;  %v2959_v35 = vsub.f32 %v6881_v24, %v7560_v10  ;;  %v2960_v63 = vsub.f32 %v6883_v12, %v7560_v10  ;;  %v2868_v24 = vsel %vm2836_vm12, 0.0, %v8420_v8 }
 0x2c1   : > { %3277 = vmatprep.mubr.f32.mxu1 %v4496_v59  ;;  %4509 = vpow2.f32 %v3077_v51  ;;  %v2801_v44 = vpop.xlane.xlu0 %2800 }
 0x2c2   : > { %v4498_v58 = vpop.eup %4497  ;;  %3278 = vmatmul.mubr.f32.gmra.mxu1 %v4494_v5  ;;  %4511 = vpow2.f32 %v3079_v37  ;;  %v3081_v52 = vmul.f32 1.442695, %v2959_v35  ;;  %v3083_v9 = vmul.f32 1.442695, %v2960_v63  ;;  %v7569_v41 = vmax.f32 %v2801_v44, %v2867_v29 }
 0x2c3   : > { %v4500_v17 = vpop.eup %4499 }
 0x2c4   : > { %3282 = vmatprep.mubr.f32.mxu1 %v4500_v17  ;;  %4513 = vpow2.f32 %v3081_v52  ;;  %v2961_v12 = vsub.f32 %v6906_v54, %v7569_v41  ;;  %v2962_v23 = vsub.f32 %v6908_v1, %v7569_v41 }
 0x2c5   : > { %4515 = vpow2.f32 %v3083_v9  ;;  %v2804_v21 = vpop.xlane.xlu1 %2803 }
 0x2c6   : > { %3283 = vmatmul.mubr.f32.gmra.mxu1 %v4498_v58  ;;  %v7576_v25 = vmax.f32 %v2804_v21, %v2868_v24  ;;  %v3085_v39 = vmul.f32 1.442695, %v2961_v12  ;;  %v3087_v47 = vmul.f32 1.442695, %v2962_v23 }
 0x2c7   : > { %v4502_v61 = vpop.eup %4501 }
 0x2c8   : > { %v4504_v46 = vpop.eup %4503  ;;  %v2963_v48 = vsub.f32 %v6930_v14, %v7576_v25  ;;  %v2964_v8 = vsub.f32 %v6932_v34, %v7576_v25  ;;  %4517 = vpow2.f32 %v3085_v39  ;;  %v3349_v2 = vsub.f32 0.0, %v7576_v25 }
 0x2c9   : > { %3287 = vmatprep.mubr.f32.mxu1 %v4504_v46  ;;  %v4506_v6 = vpop.eup %4505  ;;  %4519 = vpow2.f32 %v3087_v47 }
 0x2ca   : > { %3288 = vmatmul.mubr.f32.gmra.mxu1 %v4502_v61  ;;  %v4508_v54 = vpop.eup %4507  ;;  %v3089_v1 = vmul.f32 1.442695, %v2963_v48  ;;  %v3091_v26 = vmul.f32 1.442695, %v2964_v8 }
 0x2cb   : > { %3292 = vmatprep.mubr.f32.mxu1 %v4508_v54 }
 0x2cc   : > { %4521 = vpow2.f32 %v3089_v1 }
 0x2cd   : > { %4523 = vpow2.f32 %v3091_v26 }
 0x2ce   : > { %3293 = vmatmul.mubr.f32.gmra.mxu1 %v4506_v6  ;;  %v4510_v31 = vpop.eup %4509  ;;  %v3333_v6 = vsub.f32 0.0, %v7313_v16 }
 0x2cf   : > { %v4512_v57 = vpop.eup %4511 }
 0x2d0   : > { %3297 = vmatprep.mubr.f32.mxu1 %v4512_v57  ;;  %v3380_v26 = vmul.f32 1.442695, %v3333_v6 }
 0x2d1   : > { %v4514_v5 = vpop.eup %4513 }
 0x2d2   : > { %3298 = vmatmul.mubr.f32.gmra.mxu1 %v4510_v31  ;;  %v4516_v14 = vpop.eup %4515  ;;  %4525 = vpow2.f32 %v3380_v26 }
 0x2d3   : > { %3302 = vmatprep.mubr.f32.mxu1 %v4516_v14 }
 0x2d5   : > { %v4518_v34 = vpop.eup %4517 }
 0x2d6   : > { %3303 = vmatmul.mubr.f32.gmra.mxu1 %v4514_v5  ;;  %v4520_v59 = vpop.eup %4519 }
 0x2d7   : > { %3307 = vmatprep.mubr.f32.mxu1 %v4520_v59 }
 0x2d9   : > { %v4522_v51 = vpop.eup %4521 }
 0x2da   : > { %3308 = vmatmul.mubr.f32.gmra.mxu1 %v4518_v34  ;;  %v4524_v37 = vpop.eup %4523 }
 0x2db   : > { %3312 = vmatprep.mubr.f32.mxu1 %v4524_v37 }
 0x2de   : > { %3313 = vmatmul.mubr.f32.gmra.mxu1 %v4522_v51 }
 0x321   : > { %v7582_v35 = vpop.f32.mrf.mxu1 }
 0x323   : > { %v3161_v63 = vpop.f32.mrf.mxu1 }
 0x324   : > { %v4526_v63 = vpop.eup %4525 }
 0x326   : > { %v7584_v29 = vpop.f32.mrf.mxu1 }
 0x328   : > { %v3166_v58 = vpop.f32.mrf.mxu1 }
 0x32a   : > { %v7586_v44 = vpop.f32.mrf.mxu1 }
 0x32c   : > { %v3171_v17 = vpop.f32.mrf.mxu1 }
 0x32d   : > { %v8565_v17 = vsub.f32 25.0, %v7107_v7 }
 0x32e   : > { %v7588_v52 = vpop.f32.mrf.mxu1 }
 0x330   : > { %v3176_v9 = vpop.f32.mrf.mxu1 }
 0x331   : > { %v3429_v9 = vmul.f32 %v4526_v63, %v8565_v17 }
 0x332   : > { %v7590_v24 = vpop.f32.mrf.mxu1 }
 0x334   : > { %v3181_v12 = vpop.f32.mrf.mxu1 }
 0x336   : > { %v7592_v23 = vpop.f32.mrf.mxu1 }
 0x338   : > { %v3186_v21 = vpop.f32.mrf.mxu1 }
 0x33a   : > { %v7594_v61 = vpop.f32.mrf.mxu1 }
 0x33c   : > { %v3191_v46 = vpop.f32.mrf.mxu1 }
 0x33e   : > { %v7596_v39 = vpop.f32.mrf.mxu1 }
 0x340   : > { %v3196_v47 = vpop.f32.mrf.mxu1 }
 0x342   : > { %v7598_v48 = vpop.f32.mrf.mxu1 }
 0x344   : > { %v3201_v8 = vpop.f32.mrf.mxu1 }
 0x346   : > { %v7601_v54 = vpop.f32.mrf.mxu1 }
 0x348   : > { %v3206_v1 = vpop.f32.mrf.mxu1 }
 0x34a   : > { %v7603_v31 = vpop.f32.mrf.mxu1 }
 0x34c   : > { %v3211_v57 = vpop.f32.mrf.mxu1 }
 0x34e   : > { %v7605_v5 = vpop.f32.mrf.mxu1 }
 0x350   : > { %v3216_v14 = vpop.f32.mrf.mxu1 }
 0x352   : > { %v7607_v34 = vpop.f32.mrf.mxu1 }
 0x354   : > { %v3221_v59 = vpop.f32.mrf.mxu1 }
 0x356   : > { %v7609_v51 = vpop.f32.mrf.mxu1 }
 0x358   : > { %v3226_v37 = vpop.f32.mrf.mxu1 }
 0x35a   : > { %v7611_v58 = vpop.f32.mrf.mxu1 }
 0x35c   : > { %v3231_v16 = vpop.f32.mrf.mxu1 }
 0x35e   : > { %v7615_v12 = vpop.f32.mrf.mxu1 }
 0x35f   : > { %8566 = vst [vmem:[#allocation55_spill] sm:$0xff] %v7615_v12  ;;  %v3461_v21 = vadd.f32 %v3429_v9, %v7615_v12  ;;  %v3341_v12 = vsub.f32 0.0, %v7472_v32 }
 0x360   : > { %v3236_v46 = vpop.f32.mrf.mxu1 }
 0x361   : > { %4527 = vrcp.f32 %v3461_v21 }
 0x362   : > { %v7618_v47 = vpop.f32.mrf.mxu1 }
 0x364   : > { %v3241_v8 = vpop.f32.mrf.mxu1 }
 0x366   : > { %v7620_v6 = vpop.f32.mrf.mxu1 }
 0x368   : > { %v3246_v1 = vpop.f32.mrf.mxu1 }
 0x369   : > { %v3348_v1 = vsub.f32 0.0, %v7569_v41  ;;  %v3331_v41 = vsub.f32 0.0, %v7290_v42 }
 0x36a   : > { %v7622_v26 = vpop.f32.mrf.mxu1 }
 0x36c   : > { %v3251_v57 = vpop.f32.mrf.mxu1 }
 0x36d   : > { %v3347_v57 = vsub.f32 0.0, %v7560_v10 }
 0x36e   : > { %v4528_v14 = vpop.eup %4527  ;;  %v7624_v59 = vpop.f32.mrf.mxu1 }
 0x36f   : > { %3587 = vperm.xlu1 %4396, %v4528_v14   ;;  %v3408_v11 = vmul.f32 1.442695, %v3347_v57  ;;  %v3376_v57 = vmul.f32 1.442695, %v3331_v41 }
 0x370   : > { %v3256_v7 = vpop.f32.mrf.mxu1 }
 0x371   : > { %v3410_v7 = vmul.f32 1.442695, %v3348_v1  ;;  %v3345_v1 = vsub.f32 0.0, %v7536_v15  ;;  %v3343_v15 = vsub.f32 0.0, %v7500_v20 }
 0x372   : > { %v7626_v37 = vpop.f32.mrf.mxu1 }
 0x373   : > { %4529 = vpow2.f32 %v3410_v7 }
 0x374   : > { %v3261_v63 = vpop.f32.mrf.mxu1  ;;  %4531 = vpow2.f32 %v3408_v11  ;;  %v3329_v11 = vsub.f32 0.0, %v7256_v62  ;;  %v3400_v62 = vmul.f32 1.442695, %v3343_v15 }
 0x375   : > { %v3332_v63 = vsub.f32 0.0, %v7301_v3  ;;  %v3330_v3 = vsub.f32 0.0, %v7279_v18 }
 0x376   : > { %v7628_v16 = vpop.f32.mrf.mxu1  ;;  %v3372_v41 = vmul.f32 1.442695, %v3329_v11 }
 0x377   : > { %v3378_v38 = vmul.f32 1.442695, %v3332_v63 }
 0x378   : > { %v3266_v17 = vpop.f32.mrf.mxu1 }
 0x37a   : > { %v7630_v9 = vpop.f32.mrf.mxu1 }
 0x37c   : > { %v3271_v21 = vpop.f32.mrf.mxu1 }
 0x37d   : > { %v3346_v21 = vsub.f32 0.0, %v7550_v27  ;;  %v3344_v27 = vsub.f32 0.0, %v7518_v50 }
 0x37e   : > { %v7632_v46 = vpop.f32.mrf.mxu1 }
 0x37f   : > { %v3402_v63 = vmul.f32 1.442695, %v3344_v27  ;;  %v8569_v27 = vld [vmem:[#allocation47_spill] sm:$0xff] }
 0x380   : > { %v3276_v8 = vpop.f32.mrf.mxu1 }
 0x381   : > { %v3412_v8 = vmul.f32 1.442695, %v3349_v2  ;;  %v3404_v2 = vmul.f32 1.442695, %v3345_v1 }
 0x382   : > { %v7636_v40 = vpop.f32.mrf.mxu1 }
 0x383   : > { %4533 = vpow2.f32 %v3412_v8 }
 0x384   : > { %v3281_v14 = vpop.f32.mrf.mxu1  ;;  %4535 = vpow2.f32 %v3378_v38  ;;  %v8567_v38 = vld [vmem:[#allocation33_spill] sm:$0xff] }
 0x385   : > { %v3406_v14 = vmul.f32 1.442695, %v3346_v21  ;;  %v4530_v21 = vpop.eup %4529  ;;  %v3328_v8 = vsub.f32 0.0, %v8567_v38 }
 0x386   : > { %v7640_v17 = vpop.f32.mrf.mxu1  ;;  %v4532_v1 = vpop.eup %4531 }
 0x387   : > { %4537 = vpow2.f32 %v3406_v14  ;;  %v3342_v14 = vsub.f32 0.0, %v7491_v28 }
 0x388   : > { %v3286_v19 = vpop.f32.mrf.mxu1  ;;  %4539 = vpow2.f32 %v3376_v57 }
 0x389   : > { %v3374_v19 = vmul.f32 1.442695, %v3330_v3  ;;  %4541 = vpow2.f32 %v3404_v2  ;;  %v8568_v3 = vsub.f32 25.0, %v7534_v55  ;;  %v3327_v2 = vsub.f32 0.0, %v8569_v27  ;;  %v8573_v27 = vld [vmem:[#allocation31_spill] sm:$0xff] }
 0x38a   : > { %v7644_v10 = vpop.f32.mrf.mxu1  ;;  %v3398_v28 = vmul.f32 1.442695, %v3342_v14  ;;  %v8574_v32 = vsub.f32 25.0, %v8573_v27 }
 0x38b   : > { %4543 = vpow2.f32 %v3374_v19  ;;  %v3444_v57 = vmul.f32 %v4530_v21, %v8568_v3 }
 0x38c   : > { %v3291_v25 = vpop.f32.mrf.mxu1  ;;  %4545 = vpow2.f32 %v3402_v63 }
 0x38d   : > { %4547 = vpow2.f32 %v3372_v41  ;;  %v3368_v41 = vmul.f32 1.442695, %v3327_v2  ;;  %v8576_v2 = vld [vmem:[#allocation41_spill] sm:$0xff] }
 0x38e   : > { %v7648_v53 = vpop.f32.mrf.mxu1  ;;  %4549 = vpow2.f32 %v3400_v62 }
 0x390   : > { %v3296_v42 = vpop.f32.mrf.mxu1  ;;  %v4534_v20 = vpop.eup %4533 }
 0x391   : > { %v3370_v42 = vmul.f32 1.442695, %v3328_v8  ;;  %v4536_v38 = vpop.eup %4535  ;;  %v8572_v8 = vsub.f32 25.0, %v7547_v45 }
 0x392   : > { %v7652_v7 = vpop.f32.mrf.mxu1  ;;  %v3428_v14 = vmul.f32 %v4536_v38, %v8574_v32 }
 0x394   : > { %v3301_v18 = vpop.f32.mrf.mxu1  ;;  %v4538_v63 = vpop.eup %4537  ;;  %v3460_v45 = vadd.f32 %v3428_v14, %v7611_v58 }
 0x395   : > { %v8570_v18 = vsub.f32 25.0, %v7512_v4  ;;  %v3445_v4 = vmul.f32 %v4534_v20, %v8572_v8  ;;  %v8577_v8 = vld [vmem:[#allocation25_spill] sm:$0xff] }
 0x396   : > { %v7656_v50 = vpop.f32.mrf.mxu1 }
 0x397   : > { %v3443_v11 = vmul.f32 %v4532_v1, %v8570_v18  ;;  %v3340_v1 = vsub.f32 0.0, %v7461_v13  ;;  %v3396_v18 = vmul.f32 1.442695, %v3341_v12  ;;  %v8578_v12 = vsub.f32 25.0, %v8577_v8 }
 0x398   : > { %v3306_v25 = vpop.f32.mrf.mxu1 }
 0x399   : > { %v3475_v55 = vadd.f32 %v3443_v11, %v7656_v50  ;;  %v8571_v25 = vld [vmem:[#allocation28_spill] sm:$0xff]  ;;  %v8575_v11 = vsub.f32 25.0, %v7487_v60  ;;  %v3339_v60 = vsub.f32 0.0, %v7438_v30 }
 0x39a   : > { %v7664_v19 = vpop.f32.mrf.mxu1  ;;  %v3326_v3 = vsub.f32 0.0, %v8571_v25 }
 0x39b   : > { %v3476_v15 = vadd.f32 %v3444_v57, %v7664_v19  ;;  %v4540_v57 = vpop.eup %4539 }
 0x39c   : > { %v3311_v21 = vpop.f32.mrf.mxu1  ;;  %v4542_v25 = vpop.eup %4541  ;;  %v3366_v38 = vmul.f32 1.442695, %v3326_v3  ;;  %v8580_v3 = vld [vmem:[#allocation40_spill] sm:$0xff] }
 0x39d   : > { %4551 = vrcp.f32 %v3476_v15  ;;  %v3442_v21 = vmul.f32 %v4538_v63, %v8575_v11  ;;  %v4544_v27 = vpop.eup %4543  ;;  %v3394_v63 = vmul.f32 1.442695, %v3340_v1  ;;  %v3338_v1 = vsub.f32 0.0, %v7421_v22 }
 0x39e   : > { %4553 = vpow2.f32 %v3370_v42  ;;  %v7675_v62 = vpop.f32.mrf.mxu1  ;;  %v3325_v42 = vsub.f32 0.0, %v8576_v2 }
 0x39f   : > { %4555 = vpow2.f32 %v3398_v28  ;;  %v3477_v15 = vadd.f32 %v3445_v4, %v7675_v62  ;;  %v3474_v13 = vadd.f32 %v3442_v21, %v7652_v7  ;;  %v3427_v28 = vmul.f32 %v4540_v57, %v8578_v12  ;;  %v8581_v57 = vld [vmem:[#allocation23_spill] sm:$0xff] }
 0x3a0   : > { %4557 = vrcp.f32 %v3475_v55  ;;  %v3316_v20 = vpop.f32.mrf.mxu1  ;;  %v8579_v4 = vsub.f32 25.0, %v7458_v49  ;;  %v4546_v55 = vpop.eup %4545  ;;  %v3364_v21 = vmul.f32 1.442695, %v3325_v42  ;;  %v8583_v49 = vsub.f32 25.0, %v7430_v0 }
 0x3a1   : > { %4559 = vrcp.f32 %v3477_v15  ;;  %v3459_v14 = vadd.f32 %v3427_v28, %v7609_v51  ;;  %v8582_v15 = vsub.f32 25.0, %v8581_v57  ;;  %v4548_v30 = vpop.eup %4547  ;;  %v8585_v28 = vld [vmem:[#allocation22_spill] sm:$0xff]  ;;  %v3390_v0 = vmul.f32 1.442695, %v3338_v1 }
 0x3a2   : > { %4561 = vpow2.f32 %v3368_v41  ;;  %v3441_v32 = vmul.f32 %v4542_v25, %v8579_v4  ;;  %v3324_v41 = vsub.f32 0.0, %v8580_v3  ;;  %v3440_v25 = vmul.f32 %v4546_v55, %v8583_v49  ;;  %v4550_v2 = vpop.eup %4549 }
 0x3a3   : > { %4563 = vpow2.f32 %v3396_v18  ;;  %v3426_v20 = vmul.f32 %v4544_v27, %v8582_v15  ;;  %v3392_v18 = vmul.f32 1.442695, %v3339_v60  ;;  %v8586_v27 = vsub.f32 25.0, %v8585_v28 }
 0x3a4   : > { %4565 = vrcp.f32 %v3460_v45  ;;  %v3473_v11 = vadd.f32 %v3441_v32, %v7648_v53  ;;  %v3362_v12 = vmul.f32 1.442695, %v3324_v41  ;;  %v8587_v4 = vsub.f32 25.0, %v7391_v36 }
 0x3a5   : > { %4567 = vrcp.f32 %v3474_v13  ;;  %v3458_v45 = vadd.f32 %v3426_v20, %v7607_v34  ;;  %v3472_v13 = vadd.f32 %v3440_v25, %v7644_v10  ;;  %v3425_v22 = vmul.f32 %v4548_v30, %v8586_v27 }
 0x3a6   : > { %4569 = vpow2.f32 %v3366_v38  ;;  %v8584_v38 = vld [vmem:[#allocation35_spill] sm:$0xff]  ;;  %v3439_v32 = vmul.f32 %v4550_v2, %v8587_v4  ;;  %v3336_v36 = vsub.f32 0.0, %v7378_v43  ;;  %v8591_v49 = vsub.f32 25.0, %v7357_v56  ;;  %v8593_v43 = vld [vmem:[#allocation20_spill] sm:$0xff]  ;;  %v8596_v4 = vld [vmem:[#allocation38_spill] sm:$0xff] }
 0x3a7   : > { %4571 = vpow2.f32 %v3394_v63  ;;  %v3323_v8 = vsub.f32 0.0, %v8584_v38  ;;  %v3337_v63 = vsub.f32 0.0, %v7399_v33  ;;  %v8589_v33 = vld [vmem:[#allocation21_spill] sm:$0xff]  ;;  %v8594_v27 = vsub.f32 25.0, %v8593_v43 }
 0x3a8   : > { %4573 = vrcp.f32 %v3459_v14  ;;  %v3457_v14 = vadd.f32 %v3425_v22, %v7605_v5  ;;  %v3471_v3 = vadd.f32 %v3439_v32, %v7640_v17  ;;  %v8590_v20 = vsub.f32 25.0, %v8589_v33 }
 0x3a9   : > { %4575 = vrcp.f32 %v3473_v11  ;;  %v3360_v15 = vmul.f32 1.442695, %v3323_v8  ;;  %v8592_v8 = vld [vmem:[#allocation30_spill] sm:$0xff]  ;;  %v8597_v32 = vsub.f32 25.0, %v8596_v4 }
 0x3aa   : > { %v4552_v42 = vpop.eup %4551  ;;  %4577 = vpow2.f32 %v3364_v21  ;;  %v8588_v21 = vld [vmem:[#allocation32_spill] sm:$0xff] }
 0x3ab   : > { %v4554_v60 = vpop.eup %4553  ;;  %4579 = vpow2.f32 %v3392_v18  ;;  %3662 = vperm.xlu1 %4396, %v4552_v42   ;;  %v3322_v57 = vsub.f32 0.0, %v8588_v21  ;;  %v3388_v18 = vmul.f32 1.442695, %v3337_v63 }
 0x3ac   : > { %v4556_v55 = vpop.eup %4555  ;;  %4581 = vrcp.f32 %v3458_v45  ;;  %v3424_v30 = vmul.f32 %v4554_v60, %v8590_v20  ;;  %v8595_v60 = vld [vmem:[#allocation54_spill] sm:$0xff]  ;;  %v8599_v20 = vld [vmem:[#allocation19_spill] sm:$0xff] }
 0x3ad   : > { %v4558_v11 = vpop.eup %4557  ;;  %4583 = vrcp.f32 %v3472_v13  ;;  %v3438_v25 = vmul.f32 %v4556_v55, %v8591_v49  ;;  %v3358_v28 = vmul.f32 1.442695, %v3322_v57  ;;  %v3335_v63 = vsub.f32 0.0, %v8595_v60  ;;  %v8598_v57 = vld [vmem:[#allocation27_spill] sm:$0xff] }
 0x3ae   : > { %v4560_v41 = vpop.eup %4559  ;;  %4585 = vpow2.f32 %v3362_v12  ;;  %v3456_v45 = vadd.f32 %v3424_v30, %v7603_v31  ;;  %v3321_v12 = vsub.f32 0.0, %v8592_v8  ;;  %v8600_v30 = vsub.f32 25.0, %v8599_v20 }
 0x3af   : > { %v4562_v1 = vpop.eup %4561  ;;  %4587 = vpow2.f32 %v3390_v0  ;;  %3657 = vperm.xlu1 %4396, %v4558_v11   ;;  %3667 = vperm.xlu0 %4395, %v4560_v41   ;;  %v3470_v42 = vadd.f32 %v3438_v25, %v7636_v40  ;;  %v3386_v0 = vmul.f32 1.442695, %v3336_v36  ;;  %v3384_v25 = vmul.f32 1.442695, %v3335_v63  ;;  %v8606_v63 = vld [vmem:[#allocation26_spill] sm:$0xff] }
 0x3b0   : > { %v4564_v2 = vpop.eup %4563  ;;  %4589 = vrcp.f32 %v3457_v14  ;;  %v3423_v22 = vmul.f32 %v4562_v1, %v8594_v27  ;;  %v3356_v33 = vmul.f32 1.442695, %v3321_v12  ;;  %v8604_v27 = vld [vmem:[#allocation18_spill] sm:$0xff] }
 0x3b1   : > { %v4566_v13 = vpop.eup %4565  ;;  %4591 = vrcp.f32 %v3471_v3  ;;  %v3437_v55 = vmul.f32 %v4564_v2, %v8597_v32  ;;  %v8602_v2 = vld [vmem:[#allocation51_spill] sm:$0xff]  ;;  %v8607_v32 = vld [vmem:[#allocation50_spill] sm:$0xff] }
 0x3b2   : > { %v4568_v38 = vpop.eup %4567  ;;  %4593 = vpow2.f32 %v3360_v15  ;;  %v3455_v11 = vadd.f32 %v3423_v22, %v7601_v54  ;;  %v3320_v15 = vsub.f32 0.0, %v8598_v57  ;;  %v8605_v22 = vsub.f32 25.0, %v8604_v27 }
 0x3b3   : > { %v4570_v56 = vpop.eup %4569  ;;  %4595 = vpow2.f32 %v3388_v18  ;;  %3652 = vperm.xlu1 %4396, %v4568_v38   ;;  %3582 = vperm.xlu0 %4395, %v4566_v13   ;;  %v3469_v41 = vadd.f32 %v3437_v55, %v7632_v46  ;;  %v8601_v18 = vld [vmem:[#allocation39_spill] sm:$0xff]  ;;  %v8603_v13 = vsub.f32 25.0, %v8602_v2  ;;  %v8608_v55 = vsub.f32 25.0, %v8607_v32 }
 0x3b4   : > { %v4572_v14 = vpop.eup %4571  ;;  %4597 = vrcp.f32 %v3456_v45  ;;  %v3422_v1 = vmul.f32 %v4570_v56, %v8600_v30  ;;  %v3334_v49 = vsub.f32 0.0, %v8601_v18  ;;  %v3354_v43 = vmul.f32 1.442695, %v3320_v15  ;;  %v8609_v15 = vld [vmem:[#allocation17_spill] sm:$0xff] }
 0x3b5   : > { %v4574_v3 = vpop.eup %4573  ;;  %4599 = vrcp.f32 %v3470_v42  ;;  %v3436_v45 = vmul.f32 %v4572_v14, %v8603_v13 }
 0x3b6   : > { %v4576_v21 = vpop.eup %4575  ;;  %4601 = vpow2.f32 %v3358_v28  ;;  %v3454_v42 = vadd.f32 %v3422_v1, %v7598_v48  ;;  %v3382_v4 = vmul.f32 1.442695, %v3334_v49  ;;  %v8611_v1 = vld [vmem:[#allocation24_spill] sm:$0xff]  ;;  %v8612_v49 = vld [vmem:[#allocation34_spill] sm:$0xff] }
 0x3b7   : > { %v4578_v36 = vpop.eup %4577  ;;  %4603 = vpow2.f32 %v3386_v0  ;;  %3647 = vperm.xlu1 %4396, %v4576_v21   ;;  %3577 = vperm.xlu0 %4395, %v4574_v3   ;;  %v3468_v12 = vadd.f32 %v3436_v45, %v7630_v9  ;;  %v3319_v0 = vsub.f32 0.0, %v8606_v63 }
 0x3b8   : > { %v4580_v38 = vpop.eup %4579  ;;  %4605 = vrcp.f32 %v3455_v11  ;;  %v3421_v56 = vmul.f32 %v4578_v36, %v8605_v22  ;;  %v3318_v36 = vsub.f32 0.0, %v8611_v1 }
 0x3b9   : > { %v4582_v8 = vpop.eup %4581  ;;  %4607 = vrcp.f32 %v3469_v41  ;;  %v3435_v14 = vmul.f32 %v4580_v38, %v8608_v55  ;;  %v3352_v18 = vmul.f32 1.442695, %v3319_v0 }
 0x3ba   : > { %v4584_v28 = vpop.eup %4583  ;;  %4609 = vpow2.f32 %v3356_v33  ;;  %v3453_v3 = vadd.f32 %v3421_v56, %v7596_v39  ;;  %v8610_v33 = vsub.f32 25.0, %v8609_v15  ;;  %v3350_v22 = vmul.f32 1.442695, %v3318_v36  ;;  %v8616_v56 = vld [vmem:[#allocation29_spill] sm:$0xff] }
 0x3bb   : > { %v4586_v60 = vpop.eup %4585  ;;  %4611 = vpow2.f32 %v3384_v25  ;;  %3642 = vperm.xlu1 %4396, %v4584_v28   ;;  %3572 = vperm.xlu0 %4395, %v4582_v8   ;;  %v3467_v21 = vadd.f32 %v3435_v14, %v7628_v16  ;;  %v8613_v25 = vsub.f32 25.0, %v8612_v49  ;;  %v8622_v49 = vld [vmem:[#allocation14_spill] sm:$0xff] }
 0x3bc   : > { %v4588_v11 = vpop.eup %4587  ;;  %4613 = vrcp.f32 %v3454_v42  ;;  %v3420_v20 = vmul.f32 %v4586_v60, %v8610_v33  ;;  %v8617_v60 = vsub.f32 25.0, %v8616_v56 }
 0x3bd   : > { %v4590_v41 = vpop.eup %4589  ;;  %4615 = vrcp.f32 %v3468_v12  ;;  %v3434_v2 = vmul.f32 %v4588_v11, %v8613_v25  ;;  %v8614_v12 = vld [vmem:[#allocation16_spill] sm:$0xff]  ;;  %v8618_v11 = vld [vmem:[#allocation15_spill] sm:$0xff]  ;;  %v8623_v25 = vsub.f32 25.0, %v8622_v49 }
 0x3be   : > { %v4592_v57 = vpop.eup %4591  ;;  %4617 = vpow2.f32 %v3354_v43  ;;  %v3452_v45 = vadd.f32 %v3420_v20, %v7594_v61  ;;  %v8615_v28 = vsub.f32 25.0, %v8614_v12 }
 0x3bf   : > { %v4594_v30 = vpop.eup %4593  ;;  %4619 = vpow2.f32 %v3382_v4  ;;  %3637 = vperm.xlu1 %4396, %v4592_v57   ;;  %3567 = vperm.xlu0 %4395, %v4590_v41   ;;  %v3466_v42 = vadd.f32 %v3434_v2, %v7626_v37  ;;  %v8620_v57 = vld [vmem:[#allocation46_spill] sm:$0xff] }
 0x3c0   : > { %v4596_v13 = vpop.eup %4595  ;;  %4621 = vrcp.f32 %v3453_v3  ;;  %v3419_v43 = vmul.f32 %v4594_v30, %v8615_v28  ;;  %v8619_v3 = vsub.f32 25.0, %v8618_v11  ;;  %v8621_v15 = vsub.f32 25.0, %v8620_v57 }
 0x3c1   : > { %v4598_v38 = vpop.eup %4597  ;;  %4623 = vrcp.f32 %v3467_v21  ;;  %v3433_v63 = vmul.f32 %v4596_v13, %v8617_v60 }
 0x3c2   : > { %v4600_v8 = vpop.eup %4599  ;;  %4625 = vpow2.f32 %v3352_v18  ;;  %v3451_v4 = vadd.f32 %v3419_v43, %v7592_v23 }
 0x3c3   : > { %v4602_v27 = vpop.eup %4601  ;;  %3632 = vperm.xlu1 %4396, %v4600_v8   ;;  %3562 = vperm.xlu0 %4395, %v4598_v38   ;;  %4627 = vrcp.f32 %v3452_v45  ;;  %v3465_v55 = vadd.f32 %v3433_v63, %v7624_v59  ;;  %v8624_v45 = vld [vmem:[#allocation37_spill] sm:$0xff]  ;;  %v8628_v63 = vld [vmem:[#allocation36_spill] sm:$0xff] }
 0x3c4   : > { %v4604_v0 = vpop.eup %4603  ;;  %4629 = vrcp.f32 %v3466_v42  ;;  %v3418_v41 = vmul.f32 %v4602_v27, %v8619_v3  ;;  %v8625_v38 = vsub.f32 25.0, %v8624_v45 }
 0x3c5   : > { %v4606_v32 = vpop.eup %4605  ;;  %4631 = vpow2.f32 %v3350_v22  ;;  %v3432_v33 = vmul.f32 %v4604_v0, %v8621_v15  ;;  %v8626_v22 = vld [vmem:[#allocation13_spill] sm:$0xff]  ;;  %v8629_v0 = vsub.f32 25.0, %v8628_v63 }
 0x3c6   : > { %v4608_v14 = vpop.eup %4607  ;;  %v3450_v30 = vadd.f32 %v3418_v41, %v7590_v24  ;;  %4633 = vrcp.f32 %v3451_v4  ;;  %v8627_v56 = vsub.f32 25.0, %v8626_v22  ;;  %v8630_v41 = vld [vmem:[#allocation12_spill] sm:$0xff] }
 0x3c7   : > { %v4610_v21 = vpop.eup %4609  ;;  %3627 = vperm.xlu1 %4396, %v4608_v14   ;;  %3557 = vperm.xlu0 %4395, %v4606_v32   ;;  %v3464_v36 = vadd.f32 %v3432_v33, %v7622_v26  ;;  %4635 = vrcp.f32 %v3465_v55 }
 0x3c8   : > { %v4612_v20 = vpop.eup %4611  ;;  %v3417_v2 = vmul.f32 %v4610_v21, %v8623_v25  ;;  %4637 = vrcp.f32 %v3450_v30  ;;  %v8631_v21 = vsub.f32 25.0, %v8630_v41 }
 0x3c9   : > { %v4614_v1 = vpop.eup %4613  ;;  %v3431_v42 = vmul.f32 %v4612_v20, %v8625_v38  ;;  %4639 = vrcp.f32 %v3464_v36 }
 0x3ca   : > { %v4616_v18 = vpop.eup %4615  ;;  %v3449_v12 = vadd.f32 %v3417_v2, %v7588_v52 }
 0x3cb   : > { %v4618_v13 = vpop.eup %4617  ;;  %3622 = vperm.xlu1 %4396, %v4616_v18   ;;  %3552 = vperm.xlu0 %4395, %v4614_v1   ;;  %v3463_v43 = vadd.f32 %v3431_v42, %v7620_v6  ;;  %v8632_v1 = vld [vmem:[#allocation8_spill] sm:$0xff] }
 0x3cc   : > { %v4620_v8 = vpop.eup %4619  ;;  %v3416_v60 = vmul.f32 %v4618_v13, %v8627_v56  ;;  %4641 = vrcp.f32 %v3449_v12  ;;  %v8633_v36 = vsub.f32 25.0, %v8632_v1 }
 0x3cd   : > { %v4622_v28 = vpop.eup %4621  ;;  %v3430_v4 = vmul.f32 %v4620_v8, %v8629_v0  ;;  %4643 = vrcp.f32 %v3463_v43  ;;  %v3876_v8 = vld [vmem:[%s7900_s11] sm:$0xff]  ;;  %v8634_v0 = vld [vmem:[#allocation55_spill] sm:$0xff] }
 0x3ce   : > { %v4624_v27 = vpop.eup %4623  ;;  %v3448_v55 = vadd.f32 %v3416_v60, %v7586_v44  ;;  %v7780_v43 = vld [vmem:[%s7899_s10] sm:$0xff] }
 0x3cf   : > { %3617 = vperm.xlu1 %4396, %v4624_v27   ;;  %3547 = vperm.xlu0 %4395, %v4622_v28   ;;  %v4626_v32 = vpop.eup %4625  ;;  %v3462_v11 = vadd.f32 %v3430_v4, %v7618_v47 }
 0x3d0   : > { %v4628_v14 = vpop.eup %4627  ;;  %v3415_v57 = vmul.f32 %v4626_v32, %v8631_v21  ;;  %4645 = vrcp.f32 %v3448_v55  ;;  %4251 = vmatprep.mubr.msk.f32.mxu0 %vm3703_vm9, %v7780_v43 }
 0x3d1   : > { %v4630_v3 = vpop.eup %4629  ;;  %4647 = vrcp.f32 %v3462_v11 }
 0x3d2   : > { %v4632_v15 = vpop.eup %4631  ;;  %v3447_v20 = vadd.f32 %v3415_v57, %v7584_v29 }
 0x3d3   : > { %3612 = vperm.xlu1 %4396, %v4630_v3   ;;  %3542 = vperm.xlu0 %4395, %v4628_v14   ;;  %v4634_v33 = vpop.eup %4633  ;;  %v3414_v18 = vmul.f32 %v4632_v15, %v8633_v36 }
 0x3d4   : > { %v4636_v30 = vpop.eup %4635  ;;  %4649 = vrcp.f32 %v3447_v20 }
 0x3d5   : > { %v4638_v49 = vpop.eup %4637  ;;  %v3446_v25 = vadd.f32 %v3414_v18, %v7582_v35 }
 0x3d6   : > { %v4640_v2 = vpop.eup %4639 }
 0x3d7   : > { %3607 = vperm.xlu1 %4396, %v4636_v30   ;;  %3537 = vperm.xlu0 %4395, %v4634_v33   ;;  %4651 = vrcp.f32 %v3446_v25 }
 0x3d9   : > { %v4642_v13 = vpop.eup %4641 }
 0x3da   : > { %v4644_v45 = vpop.eup %4643 }
 0x3db   : > { %3602 = vperm.xlu1 %4396, %v4640_v2   ;;  %3532 = vperm.xlu0 %4395, %v4638_v49  }
 0x3dd   : > { %v4646_v38 = vpop.eup %4645 }
 0x3de   : > { %v4648_v42 = vpop.eup %4647 }
 0x3df   : > { %3597 = vperm.xlu1 %4396, %v4644_v45   ;;  %3527 = vperm.xlu0 %4395, %v4642_v13  }
 0x3e1   : > { %v4650_v12 = vpop.eup %4649 }
 0x3e3   : > { %3592 = vperm.xlu1 %4396, %v4648_v42   ;;  %3522 = vperm.xlu0 %4395, %v4646_v38  }
 0x3e4   : > { %v4652_v28 = vpop.eup %4651 }
 0x3e7   : > { %3879 = vperm.xlu1 %4396, %v3876_v8   ;;  %3517 = vperm.xlu0 %4395, %v4650_v12  }
 0x3ea   : > { %v3588_v27 = vpop.permute.xlu1 %3587 }
 0x3eb   : > { %3512 = vperm.xlu0 %4395, %v4652_v28   ;;  %v3685_v4 = vmul.f32 %v3588_v27, %v8634_v0 }
 0x426   : > { %v3663_v22 = vpop.permute.xlu1 %3662 }
 0x427   : > { %v3700_v32 = vmul.f32 %v3663_v22, %v7664_v19 }
 0x42a   : > { %v3668_v56 = vpop.permute.xlu0 %3667  ;;  %v3658_v60 = vpop.permute.xlu1 %3657 }
 0x42b   : > { %v3701_v63 = vmul.f32 %v3668_v56, %v7675_v62  ;;  %v3699_v3 = vmul.f32 %v3658_v60, %v7656_v50 }
 0x42d   : > { %4219 = vmatprep.subr.msk.mxu0 %vm3703_vm9, %v3701_v63 }
 0x42e   : > { %v3583_v55 = vpop.permute.xlu0 %3582  ;;  %4220 = vmatpush3.xpose.msk.msra.mxu0 %vm3703_vm9, %v3685_v4  ;;  %v3653_v14 = vpop.permute.xlu1 %3652 }
 0x42f   : > { %v3684_v11 = vmul.f32 %v3583_v55, %v7611_v58  ;;  %4221 = vmatprep.subr.msk.mxu0 %vm3703_vm9, %v3700_v32  ;;  %v3698_v19 = vmul.f32 %v3653_v14, %v7652_v7 }
 0x432   : > { %v3578_v41 = vpop.permute.xlu0 %3577  ;;  %4222 = vmatpush3.xpose.msk.msra.mxu0 %vm3703_vm9, %v3684_v11  ;;  %v3648_v62 = vpop.permute.xlu1 %3647 }
 0x433   : > { %v3683_v21 = vmul.f32 %v3578_v41, %v7609_v51  ;;  %4223 = vmatprep.subr.msk.mxu0 %vm3703_vm9, %v3699_v3  ;;  %v3697_v50 = vmul.f32 %v3648_v62, %v7648_v53 }
 0x436   : > { %v3573_v57 = vpop.permute.xlu0 %3572  ;;  %4224 = vmatpush3.xpose.msk.msra.mxu0 %vm3703_vm9, %v3683_v21  ;;  %v3643_v15 = vpop.permute.xlu1 %3642 }
 0x437   : > { %v3682_v58 = vmul.f32 %v3573_v57, %v7607_v34  ;;  %4225 = vmatprep.subr.msk.mxu0 %vm3703_vm9, %v3698_v19  ;;  %v3696_v7 = vmul.f32 %v3643_v15, %v7644_v10 }
 0x43a   : > { %v3568_v33 = vpop.permute.xlu0 %3567  ;;  %4226 = vmatpush3.xpose.msk.msra.mxu0 %vm3703_vm9, %v3682_v58  ;;  %v3638_v20 = vpop.permute.xlu1 %3637 }
 0x43b   : > { %v3681_v51 = vmul.f32 %v3568_v33, %v7605_v5  ;;  %4227 = vmatprep.subr.msk.mxu0 %vm3703_vm9, %v3697_v50  ;;  %v3695_v53 = vmul.f32 %v3638_v20, %v7640_v17 }
 0x43e   : > { %v3563_v30 = vpop.permute.xlu0 %3562  ;;  %4228 = vmatpush3.xpose.msk.msra.mxu0 %vm3703_vm9, %v3681_v51  ;;  %v3633_v1 = vpop.permute.xlu1 %3632 }
 0x43f   : > { %v3680_v34 = vmul.f32 %v3563_v30, %v7603_v31  ;;  %4229 = vmatprep.subr.msk.mxu0 %vm3703_vm9, %v3696_v7  ;;  %v3694_v10 = vmul.f32 %v3633_v1, %v7636_v40 }
 0x442   : > { %v3558_v36 = vpop.permute.xlu0 %3557  ;;  %4230 = vmatpush3.xpose.msk.msra.mxu0 %vm3703_vm9, %v3680_v34  ;;  %v3628_v18 = vpop.permute.xlu1 %3627 }
 0x443   : > { %v3679_v5 = vmul.f32 %v3558_v36, %v7601_v54  ;;  %4231 = vmatprep.subr.msk.mxu0 %vm3703_vm9, %v3695_v53  ;;  %v3693_v17 = vmul.f32 %v3628_v18, %v7632_v46 }
 0x446   : > { %v3553_v49 = vpop.permute.xlu0 %3552  ;;  %4232 = vmatpush3.xpose.msk.msra.mxu0 %vm3703_vm9, %v3679_v5  ;;  %v3623_v25 = vpop.permute.xlu1 %3622 }
 0x447   : > { %v3678_v31 = vmul.f32 %v3553_v49, %v7598_v48  ;;  %4233 = vmatprep.subr.msk.mxu0 %vm3703_vm9, %v3694_v10  ;;  %v3692_v40 = vmul.f32 %v3623_v25, %v7630_v9 }
 0x44a   : > { %v3548_v2 = vpop.permute.xlu0 %3547  ;;  %4234 = vmatpush3.xpose.msk.msra.mxu0 %vm3703_vm9, %v3678_v31  ;;  %v3618_v13 = vpop.permute.xlu1 %3617 }
 0x44b   : > { %v3677_v54 = vmul.f32 %v3548_v2, %v7596_v39  ;;  %4235 = vmatprep.subr.msk.mxu0 %vm3703_vm9, %v3693_v17  ;;  %v3691_v46 = vmul.f32 %v3618_v13, %v7628_v16 }
 0x44e   : > { %v3543_v45 = vpop.permute.xlu0 %3542  ;;  %4236 = vmatpush3.xpose.msk.msra.mxu0 %vm3703_vm9, %v3677_v54  ;;  %v3613_v38 = vpop.permute.xlu1 %3612 }
 0x44f   : > { %v3676_v48 = vmul.f32 %v3543_v45, %v7594_v61  ;;  %4237 = vmatprep.subr.msk.mxu0 %vm3703_vm9, %v3692_v40  ;;  %v3690_v9 = vmul.f32 %v3613_v38, %v7626_v37 }
 0x452   : > { %v3538_v42 = vpop.permute.xlu0 %3537  ;;  %4238 = vmatpush3.xpose.msk.msra.mxu0 %vm3703_vm9, %v3676_v48  ;;  %v3608_v8 = vpop.permute.xlu1 %3607 }
 0x453   : > { %v3675_v39 = vmul.f32 %v3538_v42, %v7592_v23  ;;  %4239 = vmatprep.subr.msk.mxu0 %vm3703_vm9, %v3691_v46  ;;  %v3689_v16 = vmul.f32 %v3608_v8, %v7624_v59 }
 0x456   : > { %v3533_v12 = vpop.permute.xlu0 %3532  ;;  %4240 = vmatpush3.xpose.msk.msra.mxu0 %vm3703_vm9, %v3675_v39  ;;  %v3603_v28 = vpop.permute.xlu1 %3602 }
 0x457   : > { %v3674_v61 = vmul.f32 %v3533_v12, %v7590_v24  ;;  %4241 = vmatprep.subr.msk.mxu0 %vm3703_vm9, %v3690_v9  ;;  %v3688_v37 = vmul.f32 %v3603_v28, %v7622_v26 }
 0x45a   : > { %v3528_v27 = vpop.permute.xlu0 %3527  ;;  %4242 = vmatpush3.xpose.msk.msra.mxu0 %vm3703_vm9, %v3674_v61  ;;  %v3598_v23 = vpop.permute.xlu1 %3597 }
 0x45b   : > { %v3673_v22 = vmul.f32 %v3528_v27, %v7588_v52  ;;  %4243 = vmatprep.subr.msk.mxu0 %vm3703_vm9, %v3689_v16  ;;  %v3687_v59 = vmul.f32 %v3598_v23, %v7620_v6  ;;  %v473_v6 = vld [vmem:[%s456_s17 + $0x8] sm:$0xff] }
 0x45e   : > { %v3523_v56 = vpop.permute.xlu0 %3522  ;;  %4244 = vmatpush3.xpose.msk.msra.mxu0 %vm3703_vm9, %v3673_v22  ;;  %v3593_v60 = vpop.permute.xlu1 %3592 }
 0x45f   : > { %v3672_v24 = vmul.f32 %v3523_v56, %v7586_v44  ;;  %4245 = vmatprep.subr.msk.mxu0 %vm3703_vm9, %v3688_v37  ;;  %v3686_v26 = vmul.f32 %v3593_v60, %v7618_v47 }
 0x462   : > { %v3518_v63 = vpop.permute.xlu0 %3517  ;;  %4246 = vmatpush3.xpose.msk.msra.mxu0 %vm3703_vm9, %v3672_v24 }
 0x463   : > { %v3671_v52 = vmul.f32 %v3518_v63, %v7584_v29  ;;  %4247 = vmatprep.subr.msk.mxu0 %vm3703_vm9, %v3687_v59  ;;  %v472_v29 = vld [vmem:[%s456_s17] sm:$0xff]  ;;  %s4718_s17 = smov [#allocation2]  }
 0x464   : > { %s4657_s25 = sshll.u32 %s4718_s17, 4  ;;  %s4658_s25 = int_to_ptr.vmem [resolvable:$false] %s4657_s25 }
 0x465   : > { %s4659_s18 = scalar_lea.vmem %s4658_s25, 512  ;;  %p4660_p0 = scmp.lt.s32.totalorder %s3902_s28, %s4658_s25 }
 0x466   : > { %v3513_v0 = vpop.permute.xlu0 %3512  ;;  %4248 = vmatpush3.xpose.msk.msra.mxu0 %vm3703_vm9, %v3671_v52  ;;  %p4661_p1 = scmp.lt.s32.totalorder %s4659_s18, %s4653_s15 }
 0x467   : > { %v3670_v44 = vmul.f32 %v3513_v0, %v7582_v35  ;;  %4249 = vmatprep.subr.msk.mxu0 %vm3703_vm9, %v3686_v26  ;;  %v3880_v35 = vpop.permute.xlu1 %3879 }
 0x468   : > { %p4662_p2 = por %p4661_p1, %p4660_p0 }
 0x46a   : > { %4250 = vmatpush3.xpose.msk.msra.mxu0 %vm3703_vm9, %v3670_v44  ;;  %p4663_p3 = pnand %p4662_p2, %p4656_p13 }
 0x46d   : > { %4252 = vmatmul.mubr.msk.f32.vlgmr.msra.gmra.mxu0 %vm3703_vm9, %v7780_v43 }
 0x52d   : > { %v3869_v47 = vpop.f32.mrf.mxu0 }
 0x52e   : > { %v3874_v4 = vadd.f32 %v3869_v47, %v472_v29 }
 0x52f   : > { %v3871_v32 = vpop.f32.mrf.mxu0 }
 0x530   : > { %v3882_v55 = vadd.f32 %v3880_v35, %v3874_v4  ;;  %v3875_v14 = vadd.f32 %v3871_v32, %v473_v6 }
 0x532   : > { %3884 = vst [vmem:[%s451_s7] sm:$0xff] %v3882_v55  ;;  %v3883_v43 = vadd.f32 %v3880_v35, %v3875_v14 }
 0x534   : > { %3885 = vst [vmem:[%s451_s7 + $0x8] sm:$0xff] %v3883_v43 }
 0x535   : > { %4666 = shalt.err (!%p4663_p3)
}
 0x536   : > { %s4667_s0 = scalar_lea.hbm %s3899_s26, 256  ;;  %s4671_s7 = scalar_lea.hbm %s7901_s12, 512 }
 0x537   : > { %p4668_p4 = scmp.ne.s32.totalorder %s3899_s26, %s4667_s0  ;;  %p4672_p9 = scmp.lt.s32.totalorder %s3899_s26, %s7901_s12 }
 0x538   : > { %p4673_p10 = scmp.lt.s32.totalorder %s4671_s7, %s4667_s0 }
 0x539   : > { %p4669_p7 = pnand %p4668_p4, %p4822_p5 }
 0x53a   : > { %p4674_p11 = por %p4673_p10, %p4672_p9 }
 0x53b   : > { %p4670_p8 = pneg %p4669_p7 }
 0x53d   : > { %p4675_p12 = pnand %p4674_p11, %p4670_p8 }
 0x53f   : > { %4678 = shalt.err (!%p4675_p12)
}
 0x540   : > { %4353 = dma.vmem_to_hbm [thread:$0]  (%p4822_p5), %s3902_s28, 256, %s3899_s26, %s3887_s20  }
 0x541 PF: > { %p4359_p13 = scmp.ge.s32.totalorder %s4713_s24, 2  ;;  %s3913_s15 = sand.u32 1, %s4701_s21  }
 0x542   : > { %s3914_s17 = scalar_lea.sflag [#allocation3], %s3913_s15 }
 0x543   : > { %p4356_p0 = pnand %p4359_p13, %p4826_p6 }
 0x545   : > { %p4357_p1 = pneg %p4356_p0 }
 0x547   : > { %4696 = dma.done.wait (%p4357_p1), %s3914_s17, 256  }
 0x548   : > { %4698 = vsyncadd (%p4357_p1), %s3914_s17, 4294967040  ;;  %p22_p2 = scmp.ge.s32.totalorder %s4809_s27, 4   ;;  %s8636_s21 = smov %s4705_s22 }
 0x549   : > { %s8637_s22 = smov %s4709_s23  ;;  %s8638_s23 = smov %s4820_s30 }
 0x54a   : > { %s8639_s24 = smov %s4809_s27  ;;  %24 = sbr.rel (!%p22_p2) target bundleno = 7 (0x7), region = 112 }
 0x54f   :  { %3919 = vsyncpa [#allocation3], 1 }
 0x550   :  { %3921 = vsyncpa [#allocation3 + $0x1], 1 }

</bundles_post_ra>
